<compile_context>
chip_gen: v7x
topology: tpu7x:2x2x1
jax: 0.10.0
libtpu: 0.0.40
codegen_flags: <defaults>
</compile_context>

<pallas_src>
import math
from functools import partial

import jax
import jax.numpy as jnp
from jax.experimental import pallas as pl
from jax.experimental.pallas import tpu as pltpu


# ----------------------------------------------------------------------------
# helpers
# ----------------------------------------------------------------------------
def _pick_tile(dim, target, quantum):
    """Largest tile <= target that is a multiple of `quantum` and divides dim.
    Falls back to the full extent (always a legal block shape)."""
    if dim <= target:
        return dim
    t = (target // quantum) * quantum
    while t >= quantum:
        if dim % t == 0:
            return t
        t -= quantum
    return dim


def _gelu_tanh(x):
    # TODO(synk): PyTorch nn.GELU default is the exact erf formulation; the tanh
    # approximation is used here (erf lowering is not guaranteed in Mosaic).
    return 0.5 * x * (1.0 + jnp.tanh(0.7978845608028654 * (x + 0.044715 * x * x * x)))


# ----------------------------------------------------------------------------
# Pallas kernels
# ----------------------------------------------------------------------------
def _linear_kernel(*refs, act, has_res, nk):
    """Tiled matmul with K-axis accumulation; bias (+GELU) (+residual) epilogue."""
    if has_res:
        x_ref, w_ref, b_ref, res_ref, o_ref, acc_ref = refs
    else:
        x_ref, w_ref, b_ref, o_ref, acc_ref = refs

    @pl.when(pl.program_id(2) == 0)
    def _():
        acc_ref[...] = jnp.zeros_like(acc_ref)

    acc_ref[...] += jnp.dot(x_ref[...].astype(jnp.bfloat16), w_ref[...],
                            preferred_element_type=jnp.float32)

    @pl.when(pl.program_id(2) == nk - 1)
    def _():
        r = acc_ref[...] + b_ref[...]
        if act == "gelu":
            r = _gelu_tanh(r)
        if has_res:
            r = r + res_ref[...]
        o_ref[...] = r


def linear(x, w, b, residual=None, act=None):
    """x: (M, K) f32, w: (K, N) bf16, b: (N,) f32 -> (M, N) f32."""
    M, K = x.shape
    N = w.shape[1]
    tm = _pick_tile(M, 256, 8)
    tn = _pick_tile(N, 512, 128)
    tk = _pick_tile(K, 512, 128)
    gm, gn, gk = M // tm, N // tn, K // tk

    in_specs = [
        pl.BlockSpec((tm, tk), lambda i, j, k: (i, k)),
        pl.BlockSpec((tk, tn), lambda i, j, k: (k, j)),
        pl.BlockSpec((1, tn), lambda i, j, k: (0, j)),
    ]
    args = [x, w, b.reshape(1, N)]
    if residual is not None:
        in_specs.append(pl.BlockSpec((tm, tn), lambda i, j, k: (i, j)))
        args.append(residual)

    return pl.pallas_call(
        partial(_linear_kernel, act=act, has_res=residual is not None, nk=gk),
        out_shape=jax.ShapeDtypeStruct((M, N), jnp.float32),
        grid=(gm, gn, gk),
        in_specs=in_specs,
        out_specs=pl.BlockSpec((tm, tn), lambda i, j, k: (i, j)),
        scratch_shapes=[pltpu.VMEM((tm, tn), jnp.float32)],
        compiler_params=pltpu.CompilerParams(
            dimension_semantics=("parallel", "parallel", "arbitrary")),
    )(*args)


def _ln_linear_kernel(x_ref, g_ref, bln_ref, w_ref, b_ref, o_ref, *, act, eps):
    """Fused LayerNorm (full feature dim in-tile) + matmul + bias (+GELU)."""
    x = x_ref[...]
    mu = jnp.mean(x, axis=-1, keepdims=True)
    xc = x - mu
    var = jnp.mean(xc * xc, axis=-1, keepdims=True)
    h = (xc * jax.lax.rsqrt(var + eps)) * g_ref[...] + bln_ref[...]
    acc = jnp.dot(h.astype(jnp.bfloat16), w_ref[...],
                  preferred_element_type=jnp.float32)
    acc = acc + b_ref[...]
    if act == "gelu":
        acc = _gelu_tanh(acc)
    o_ref[...] = acc


def ln_linear(x, g, bln, w, b, act=None, eps=1e-6):
    """LayerNorm(x) @ w + b with LN fused into the matmul kernel (full-K tiles)."""
    M, K = x.shape
    N = w.shape[1]
    tm = _pick_tile(M, 256, 8)
    tn = _pick_tile(N, 512, 128)
    return pl.pallas_call(
        partial(_ln_linear_kernel, act=act, eps=eps),
        out_shape=jax.ShapeDtypeStruct((M, N), jnp.float32),
        grid=(M // tm, N // tn),
        in_specs=[
            pl.BlockSpec((tm, K), lambda i, j: (i, 0)),
            pl.BlockSpec((1, K), lambda i, j: (0, 0)),
            pl.BlockSpec((1, K), lambda i, j: (0, 0)),
            pl.BlockSpec((K, tn), lambda i, j: (0, j)),
            pl.BlockSpec((1, tn), lambda i, j: (0, j)),
        ],
        out_specs=pl.BlockSpec((tm, tn), lambda i, j: (i, j)),
        compiler_params=pltpu.CompilerParams(
            dimension_semantics=("parallel", "parallel")),
    )(x, g.reshape(1, K), bln.reshape(1, K), w, b.reshape(1, N))


def _ln_kernel(x_ref, g_ref, b_ref, o_ref, *, eps):
    x = x_ref[...]
    mu = jnp.mean(x, axis=-1, keepdims=True)
    xc = x - mu
    var = jnp.mean(xc * xc, axis=-1, keepdims=True)
    o_ref[...] = xc * jax.lax.rsqrt(var + eps) * g_ref[...] + b_ref[...]


def layernorm(x, g, b, eps=1e-6):
    M, D = x.shape
    tm = _pick_tile(M, 512, 8)
    return pl.pallas_call(
        partial(_ln_kernel, eps=eps),
        out_shape=jax.ShapeDtypeStruct((M, D), jnp.float32),
        grid=(M // tm,),
        in_specs=[
            pl.BlockSpec((tm, D), lambda i: (i, 0)),
            pl.BlockSpec((1, D), lambda i: (0, 0)),
            pl.BlockSpec((1, D), lambda i: (0, 0)),
        ],
        out_specs=pl.BlockSpec((tm, D), lambda i: (i, 0)),
        compiler_params=pltpu.CompilerParams(dimension_semantics=("parallel",)),
    )(x, g.reshape(1, D), b.reshape(1, D))


def _head_attend(q, k, v, scale):
    """One head: q (Nq, Dh), k/v (Nk, Dh) -> (Nq, Dh); f32 softmax epilogue."""
    s = jax.lax.dot_general(q, k, (((1,), (1,)), ((), ())),
                            preferred_element_type=jnp.float32) * scale
    s = s - jnp.max(s, axis=-1, keepdims=True)
    p = jnp.exp(s)
    p = p * pl.reciprocal(jnp.sum(p, axis=-1, keepdims=True), approx=True)
    return jnp.dot(p.astype(jnp.bfloat16), v, preferred_element_type=jnp.float32)


def _attn_self_kernel(qkv_ref, o_ref, *, num_heads, scale):
    D = qkv_ref.shape[-1] // 3
    Dh = D // num_heads
    qkv = qkv_ref[0]                                   # (N, 3D)
    outs = []
    for h in range(num_heads):
        q = qkv[:, h * Dh:(h + 1) * Dh].astype(jnp.bfloat16)
        k = qkv[:, D + h * Dh:D + (h + 1) * Dh].astype(jnp.bfloat16)
        v = qkv[:, 2 * D + h * Dh:2 * D + (h + 1) * Dh].astype(jnp.bfloat16)
        outs.append(_head_attend(q, k, v, scale))
    o_ref[0] = jnp.concatenate(outs, axis=-1)          # lane-dense (N, D) write


def attention_self(qkv, num_heads):
    """qkv: (B, N, 3D) packed -> (B, N, D). All heads per grid step."""
    B, N, D3 = qkv.shape
    D = D3 // 3
    scale = (D // num_heads) ** -0.5
    return pl.pallas_call(
        partial(_attn_self_kernel, num_heads=num_heads, scale=scale),
        out_shape=jax.ShapeDtypeStruct((B, N, D), jnp.float32),
        grid=(B,),
        in_specs=[pl.BlockSpec((1, N, D3), lambda b: (b, 0, 0))],
        out_specs=pl.BlockSpec((1, N, D), lambda b: (b, 0, 0)),
        compiler_params=pltpu.CompilerParams(dimension_semantics=("parallel",)),
    )(qkv)


def _attn_cross_kernel(qkv_ref, kv_ref, o_ref, *, num_heads, scale):
    """Lane-token queries attend over [lane ; image] keys/values."""
    D = qkv_ref.shape[-1] // 3
    Dh = D // num_heads
    sq = qkv_ref[0]                                    # (P, 3D) lane q/k/v
    kv = kv_ref[0]                                     # (N, 3D) image q/k/v (reused)
    outs = []
    for h in range(num_heads):
        q = sq[:, h * Dh:(h + 1) * Dh].astype(jnp.bfloat16)
        k = jnp.concatenate(
            [sq[:, D + h * Dh:D + (h + 1) * Dh],
             kv[:, D + h * Dh:D + (h + 1) * Dh]], axis=0).astype(jnp.bfloat16)
        v = jnp.concatenate(
            [sq[:, 2 * D + h * Dh:2 * D + (h + 1) * Dh],
             kv[:, 2 * D + h * Dh:2 * D + (h + 1) * Dh]], axis=0).astype(jnp.bfloat16)
        outs.append(_head_attend(q, k, v, scale))
    o_ref[0] = jnp.concatenate(outs, axis=-1)


def attention_cross(qkv_lane, qkv_img, num_heads):
    """qkv_lane: (B, P, 3D), qkv_img: (B, N, 3D) -> (B, P, D)."""
    B, P, D3 = qkv_lane.shape
    N = qkv_img.shape[1]
    D = D3 // 3
    scale = (D // num_heads) ** -0.5
    return pl.pallas_call(
        partial(_attn_cross_kernel, num_heads=num_heads, scale=scale),
        out_shape=jax.ShapeDtypeStruct((B, P, D), jnp.float32),
        grid=(B,),
        in_specs=[
            pl.BlockSpec((1, P, D3), lambda b: (b, 0, 0)),
            pl.BlockSpec((1, N, D3), lambda b: (b, 0, 0)),
        ],
        out_specs=pl.BlockSpec((1, P, D), lambda b: (b, 0, 0)),
        compiler_params=pltpu.CompilerParams(dimension_semantics=("parallel",)),
    )(qkv_lane, qkv_img)


# ----------------------------------------------------------------------------
# ViT building blocks (Pallas kernels + thin JAX glue)
# ----------------------------------------------------------------------------
def transformer_block(p, x, num_heads):
    """Pre-norm block on image tokens.  x: (B, N, D).  Also returns the packed
    qkv of the block input so the multi-lane branch can reuse its K/V."""
    B, N, D = x.shape
    M = B * N
    x2 = x.reshape(M, D)

    qkv = ln_linear(x2, p["n1_g"], p["n1_b"], p["qkv_w"], p["qkv_b"])     # (M, 3D)
    qkv_img = qkv.reshape(B, N, 3 * D)
    attn = attention_self(qkv_img, num_heads).reshape(M, D)               # (M, D)
    x2 = linear(attn, p["proj_w"], p["proj_b"], residual=x2)              # + residual

    h = ln_linear(x2, p["n2_g"], p["n2_b"], p["fc1_w"], p["fc1_b"], act="gelu")
    x2 = linear(h, p["fc2_w"], p["fc2_b"], residual=x2)                   # + residual
    return x2.reshape(B, N, D), qkv_img


def lane_block(p, lane, qkv_img, num_heads):
    """Lane-token rows of the block applied to [lane ; image] input.
    Only the P lane query rows are computed; image K/V are reused from the
    main pass (identical result to running the full concatenated block and
    keeping the first P rows)."""
    B, P, D = lane.shape
    M = B * P
    l2 = lane.reshape(M, D)

    qkv_lane = ln_linear(l2, p["n1_g"], p["n1_b"], p["qkv_w"], p["qkv_b"])
    qkv_lane = qkv_lane.reshape(B, P, 3 * D)
    attn = attention_cross(qkv_lane, qkv_img, num_heads).reshape(M, D)
    l2 = linear(attn, p["proj_w"], p["proj_b"], residual=l2)

    h = ln_linear(l2, p["n2_g"], p["n2_b"], p["fc1_w"], p["fc1_b"], act="gelu")
    l2 = linear(h, p["fc2_w"], p["fc2_b"], residual=l2)
    return l2.reshape(B, P, D)


def forward_features(params, cfg, x_img):
    B, C, H, W = x_img.shape
    psz = cfg["patch_size"]
    D = cfg["embed_dim"]
    Hg, Wg = H // psz, W // psz

    # PatchEmbed: Conv2d(C, D, k=psz, s=psz) == per-patch flatten + matmul.
    patches = x_img.reshape(B, C, Hg, psz, Wg, psz)
    patches = jnp.transpose(patches, (0, 2, 4, 1, 3, 5)).reshape(B * Hg * Wg, C * psz * psz)
    x = linear(patches, params["patch_w"], params["patch_b"]).reshape(B, Hg * Wg, D)

    # _pos_embed: prepend cls token then add positional embedding (dropout p=0).
    cls = jnp.broadcast_to(params["cls_token"], (B, 1, D))
    x = jnp.concatenate([cls, x], axis=1) + params["pos_embed"]
    N = x.shape[1]

    # Multi-lane task tokens: training mode -> single lane (selectors[t:t+1]).
    sel = params["selectors"][cfg["t"]:cfg["t"] + 1]                     # (T, S, D)
    T, S, _ = sel.shape
    task_tokens = jnp.broadcast_to(sel[:, None], (T, B, S, D))
    cls_rep = jnp.broadcast_to(params["cls_token"][None], (T, B, 1, D))
    task_tokens = jnp.concatenate([cls_rep, task_tokens], axis=2)        # (T, B, P, D)
    P = task_tokens.shape[2]

    for blk in params["blocks"]:
        # TODO(synk): the custom `Block` class is not provided in the source; lane
        # tokens are processed with the same block weights via self-attention over
        # [lane_tokens ; image_tokens] (image K/V reused from the main pass).
        x, qkv_img = transformer_block(blk, x, cfg["num_heads"])
        new_lanes = [lane_block(blk, task_tokens[t], qkv_img, cfg["num_heads"])
                     for t in range(T)]
        task_tokens = jnp.stack(new_lanes, axis=0)

    x = layernorm(x.reshape(B * N, D), params["norm_g"], params["norm_b"]).reshape(B, N, D)
    task_tokens = layernorm(task_tokens.reshape(T * B * P, D),
                            params["norm_g"], params["norm_b"]).reshape(T, B, P, D)
    return x, task_tokens


def forward_head(params, cfg, x, task_tokens):
    # eval=False path of forward_head (head_mode='concat', no task_identifier,
    # normalize != 'pre-head').
    B = x.shape[0]
    x_cls = x[:, 0]                                                       # (B, D)
    sim = jnp.array([1.0], dtype=jnp.float32)
    tasks = jnp.zeros((B,), dtype=jnp.int32)
    features = jnp.transpose(task_tokens, (1, 0, 2, 3))                   # (B, T, P, D)
    tt = jnp.transpose(task_tokens[:, :, 0], (1, 0, 2))                   # (B, T, D)
    tt = tt[jnp.arange(B), tasks]                                         # (B, D)

    # Pad the classifier output lane dim to a multiple of 128 (unmasked stores),
    # slice back afterwards.
    n_cls = params["head_w"].shape[1]
    pad = (-n_cls) % 128
    w_pad = jnp.pad(params["head_w"], ((0, 0), (0, pad)))
    b_pad = jnp.pad(params["head_b"], ((0, pad),))
    logits = linear(tt, w_pad, b_pad)[:, :n_cls]                          # (B, num_classes)
    return logits, features, x_cls, sim, tasks


def forward(params, cfg, x_img):
    feats, task_feats = forward_features(params, cfg, x_img)
    return forward_head(params, cfg, feats, task_feats)


# ----------------------------------------------------------------------------
# Deterministic parameter init (shapes follow VisionTransformer.__init__)
# Matmul weights stored in bf16 (MXU inputs); LN/bias/embedding params in f32.
# ----------------------------------------------------------------------------
def init_params(key, cfg):
    D = cfg["embed_dim"]
    C = cfg["in_chans"]
    psz = cfg["patch_size"]
    num_patches = (cfg["img_size"] // psz) ** 2
    hidden = int(D * cfg["mlp_ratio"])
    ks = iter(jax.random.split(key, 16 + 8 * cfg["depth"]))

    def nrm(shape, std, dtype=jnp.float32):
        return (std * jax.random.normal(next(ks), shape, jnp.float32)).astype(dtype)

    bf16 = jnp.bfloat16
    params = {
        "patch_w": nrm((C * psz * psz, D), 0.02, bf16),
        "patch_b": jnp.zeros((D,), jnp.float32),
        "cls_token": nrm((1, 1, D), 1e-6),
        "pos_embed": nrm((1, num_patches + 1, D), 0.02),
        "norm_g": jnp.ones((D,), jnp.float32),
        "norm_b": jnp.zeros((D,), jnp.float32),
        "head_w": nrm((D, cfg["num_classes"]), 0.02, bf16),
        "head_b": jnp.zeros((cfg["num_classes"],), jnp.float32),
        "selectors": jax.random.uniform(next(ks), (cfg["num_tasks"], cfg["num_selectors"], D),
                                        jnp.float32, -1.0, 1.0),
        "blocks": [],
    }
    for _ in range(cfg["depth"]):
        params["blocks"].append({
            "n1_g": jnp.ones((D,), jnp.float32), "n1_b": jnp.zeros((D,), jnp.float32),
            "qkv_w": nrm((D, 3 * D), 0.02, bf16), "qkv_b": jnp.zeros((3 * D,), jnp.float32),
            "proj_w": nrm((D, D), 0.02, bf16), "proj_b": jnp.zeros((D,), jnp.float32),
            "n2_g": jnp.ones((D,), jnp.float32), "n2_b": jnp.zeros((D,), jnp.float32),
            "fc1_w": nrm((D, hidden), 0.02, bf16), "fc1_b": jnp.zeros((hidden,), jnp.float32),
            "fc2_w": nrm((hidden, D), 0.02, bf16), "fc2_b": jnp.zeros((D,), jnp.float32),
        })
    return params


# ----------------------------------------------------------------------------
if __name__ == "__main__":
    cfg = dict(
        img_size=16, patch_size=8, in_chans=3,
        embed_dim=32, depth=2, num_heads=4, mlp_ratio=4.0,
        num_classes=10, num_tasks=2, num_selectors=2, t=0,
    )
    key = jax.random.PRNGKey(0)
    pkey, xkey = jax.random.split(key)
    params = init_params(pkey, cfg)
    x = jax.random.normal(xkey, (2, cfg["in_chans"], cfg["img_size"], cfg["img_size"]), jnp.float32)

    fwd = jax.jit(lambda p, img: forward(p, cfg, img))
    logits, feats, frozen_feats, sim, tasks = fwd(params, x)
    jax.block_until_ready((logits, feats, frozen_feats, sim, tasks))
    assert logits.shape == (2, cfg["num_classes"])
    assert frozen_feats.shape == (2, cfg["embed_dim"])
    print("KERNEL_OK")
</pallas_src>

<mosaic_0001>
module attributes {stable_mosaic.version = 11 : i64} {
  func.func @_linear_kernel(%arg0: i32, %arg1: i32, %arg2: i32, %arg3: memref<8x192xf32, #tpu.memory_space<vmem>>, %arg4: memref<192x32xbf16, #tpu.memory_space<vmem>>, %arg5: memref<1x32xf32, #tpu.memory_space<vmem>>, %arg6: memref<8x32xf32, #tpu.memory_space<vmem>>, %arg7: memref<8x32xf32, #tpu.memory_space<vmem>>) attributes {dimension_semantics = [#tpu.dimension_semantics<parallel>, #tpu.dimension_semantics<parallel>, #tpu.dimension_semantics<arbitrary>], iteration_bounds = array<i64: 1, 1, 1>, scalar_prefetch = 0 : i64, scratch_operands = 1 : i64, tpu.core_type = #tpu.core_type<tc>, window_params = [{transform_indices = @transform_0, window_bounds = array<i64: 8, 192>}, {transform_indices = @transform_1, window_bounds = array<i64: 192, 32>}, {transform_indices = @transform_2, window_bounds = array<i64: 1, 32>}, {transform_indices = @transform_3, window_bounds = array<i64: 8, 32>}]} {
    %c0_i32 = arith.constant 0 : i32
    %0 = arith.cmpi eq, %arg2, %c0_i32 : i32
    %1 = arith.extui %0 : i1 to i32
    %c0_i32_0 = arith.constant 0 : i32
    %2 = arith.cmpi ne, %1, %c0_i32_0 : i32
    scf.if %2 {
      %cst_10 = arith.constant 0.000000e+00 : f32
      %13 = vector.broadcast %cst_10 : f32 to vector<8x32xf32>
      %c0_11 = arith.constant 0 : index
      %c0_12 = arith.constant 0 : index
      %14 = vector.load %arg7[%c0_11, %c0_12] : memref<8x32xf32, #tpu.memory_space<vmem>>, vector<8x32xf32>
      tpu.vector_store %arg7[%c0_11, %c0_12], %13 {strides = array<i32>} : memref<8x32xf32, #tpu.memory_space<vmem>>, vector<8x32xf32>,
    } else {
    }
    %c0 = arith.constant 0 : index
    %c0_1 = arith.constant 0 : index
    %3 = vector.load %arg7[%c0, %c0_1] : memref<8x32xf32, #tpu.memory_space<vmem>>, vector<8x32xf32>
    %c0_2 = arith.constant 0 : index
    %c0_3 = arith.constant 0 : index
    %4 = vector.load %arg3[%c0_2, %c0_3] : memref<8x192xf32, #tpu.memory_space<vmem>>, vector<8x192xf32>
    %5 = arith.truncf %4 : vector<8x192xf32> to vector<8x192xbf16>
    %c0_4 = arith.constant 0 : index
    %c0_5 = arith.constant 0 : index
    %6 = vector.load %arg4[%c0_4, %c0_5] : memref<192x32xbf16, #tpu.memory_space<vmem>>, vector<192x32xbf16>
    %cst = arith.constant dense<0.000000e+00> : vector<8x32xf32>
    %7 = tpu.matmul %5, %6, %cst {dimension_numbers = #tpu.dot_dimension_numbers<[1], [0], [0], [1], [0, 0, 1, 1], [], []>} : vector<8x192xbf16>, vector<192x32xbf16>, vector<8x32xf32> -> vector<8x32xf32>
    %8 = arith.addf %3, %7 : vector<8x32xf32>
    %c0_6 = arith.constant 0 : index
    %c0_7 = arith.constant 0 : index
    %9 = vector.load %arg7[%c0_6, %c0_7] : memref<8x32xf32, #tpu.memory_space<vmem>>, vector<8x32xf32>
    tpu.vector_store %arg7[%c0_6, %c0_7], %8 {strides = array<i32>} : memref<8x32xf32, #tpu.memory_space<vmem>>, vector<8x32xf32>,
    %c0_i32_8 = arith.constant 0 : i32
    %10 = arith.cmpi eq, %arg2, %c0_i32_8 : i32
    %11 = arith.extui %10 : i1 to i32
    %c0_i32_9 = arith.constant 0 : i32
    %12 = arith.cmpi ne, %11, %c0_i32_9 : i32
    scf.if %12 {
      %c0_10 = arith.constant 0 : index
      %c0_11 = arith.constant 0 : index
      %13 = vector.load %arg7[%c0_10, %c0_11] : memref<8x32xf32, #tpu.memory_space<vmem>>, vector<8x32xf32>
      %c0_12 = arith.constant 0 : index
      %c0_13 = arith.constant 0 : index
      %14 = vector.load %arg5[%c0_12, %c0_13] : memref<1x32xf32, #tpu.memory_space<vmem>>, vector<1x32xf32>
      %15 = vector.broadcast %14 : vector<1x32xf32> to vector<8x32xf32>
      %16 = arith.addf %13, %15 : vector<8x32xf32>
      %c0_14 = arith.constant 0 : index
      %c0_15 = arith.constant 0 : index
      %17 = vector.load %arg6[%c0_14, %c0_15] : memref<8x32xf32, #tpu.memory_space<vmem>>, vector<8x32xf32>
      tpu.vector_store %arg6[%c0_14, %c0_15], %16 {strides = array<i32>} : memref<8x32xf32, #tpu.memory_space<vmem>>, vector<8x32xf32>,
    } else {
    }
    return
  }
  func.func @transform_0(%arg0: i32, %arg1: i32, %arg2: i32) -> (i32, i32) {
    %c0_i32 = arith.constant 0 : i32
    return %arg0, %arg2 : i32, i32
  }
  func.func @transform_1(%arg0: i32, %arg1: i32, %arg2: i32) -> (i32, i32) {
    %c0_i32 = arith.constant 0 : i32
    return %arg2, %arg1 : i32, i32
  }
  func.func @transform_2(%arg0: i32, %arg1: i32, %arg2: i32) -> (i32, i32) {
    %c0_i32 = arith.constant 0 : i32
    %c0_i32_0 = arith.constant 0 : i32
    return %c0_i32, %arg1 : i32, i32
  }
  func.func @transform_3(%arg0: i32, %arg1: i32, %arg2: i32) -> (i32, i32) {
    %c0_i32 = arith.constant 0 : i32
    return %arg0, %arg1 : i32, i32
  }
}

module attributes {stable_mosaic.version = 11 : i64} {
  func.func @_linear_kernel(%arg0: i32, %arg1: i32, %arg2: i32, %arg3: memref<10x32xf32, #tpu.memory_space<vmem>>, %arg4: memref<32x32xbf16, #tpu.memory_space<vmem>>, %arg5: memref<1x32xf32, #tpu.memory_space<vmem>>, %arg6: memref<10x32xf32, #tpu.memory_space<vmem>>, %arg7: memref<10x32xf32, #tpu.memory_space<vmem>>, %arg8: memref<10x32xf32, #tpu.memory_space<vmem>>) attributes {dimension_semantics = [#tpu.dimension_semantics<parallel>, #tpu.dimension_semantics<parallel>, #tpu.dimension_semantics<arbitrary>], iteration_bounds = array<i64: 1, 1, 1>, scalar_prefetch = 0 : i64, scratch_operands = 1 : i64, tpu.core_type = #tpu.core_type<tc>, window_params = [{transform_indices = @transform_0, window_bounds = array<i64: 10, 32>}, {transform_indices = @transform_1, window_bounds = array<i64: 32, 32>}, {transform_indices = @transform_2, window_bounds = array<i64: 1, 32>}, {transform_indices = @transform_3, window_bounds = array<i64: 10, 32>}, {transform_indices = @transform_4, window_bounds = array<i64: 10, 32>}]} {
    %c0_i32 = arith.constant 0 : i32
    %0 = arith.cmpi eq, %arg2, %c0_i32 : i32
    %1 = arith.extui %0 : i1 to i32
    %c0_i32_0 = arith.constant 0 : i32
    %2 = arith.cmpi ne, %1, %c0_i32_0 : i32
    scf.if %2 {
      %cst_10 = arith.constant 0.000000e+00 : f32
      %13 = vector.broadcast %cst_10 : f32 to vector<10x32xf32>
      %c0_11 = arith.constant 0 : index
      %c0_12 = arith.constant 0 : index
      %14 = vector.load %arg8[%c0_11, %c0_12] : memref<10x32xf32, #tpu.memory_space<vmem>>, vector<10x32xf32>
      tpu.vector_store %arg8[%c0_11, %c0_12], %13 {strides = array<i32>} : memref<10x32xf32, #tpu.memory_space<vmem>>, vector<10x32xf32>,
    } else {
    }
    %c0 = arith.constant 0 : index
    %c0_1 = arith.constant 0 : index
    %3 = vector.load %arg8[%c0, %c0_1] : memref<10x32xf32, #tpu.memory_space<vmem>>, vector<10x32xf32>
    %c0_2 = arith.constant 0 : index
    %c0_3 = arith.constant 0 : index
    %4 = vector.load %arg3[%c0_2, %c0_3] : memref<10x32xf32, #tpu.memory_space<vmem>>, vector<10x32xf32>
    %5 = arith.truncf %4 : vector<10x32xf32> to vector<10x32xbf16>
    %c0_4 = arith.constant 0 : index
    %c0_5 = arith.constant 0 : index
    %6 = vector.load %arg4[%c0_4, %c0_5] : memref<32x32xbf16, #tpu.memory_space<vmem>>, vector<32x32xbf16>
    %cst = arith.constant dense<0.000000e+00> : vector<10x32xf32>
    %7 = tpu.matmul %5, %6, %cst {dimension_numbers = #tpu.dot_dimension_numbers<[1], [0], [0], [1], [0, 0, 1, 1], [], []>} : vector<10x32xbf16>, vector<32x32xbf16>, vector<10x32xf32> -> vector<10x32xf32>
    %8 = arith.addf %3, %7 : vector<10x32xf32>
    %c0_6 = arith.constant 0 : index
    %c0_7 = arith.constant 0 : index
    %9 = vector.load %arg8[%c0_6, %c0_7] : memref<10x32xf32, #tpu.memory_space<vmem>>, vector<10x32xf32>
    tpu.vector_store %arg8[%c0_6, %c0_7], %8 {strides = array<i32>} : memref<10x32xf32, #tpu.memory_space<vmem>>, vector<10x32xf32>,
    %c0_i32_8 = arith.constant 0 : i32
    %10 = arith.cmpi eq, %arg2, %c0_i32_8 : i32
    %11 = arith.extui %10 : i1 to i32
    %c0_i32_9 = arith.constant 0 : i32
    %12 = arith.cmpi ne, %11, %c0_i32_9 : i32
    scf.if %12 {
      %c0_10 = arith.constant 0 : index
      %c0_11 = arith.constant 0 : index
      %13 = vector.load %arg8[%c0_10, %c0_11] : memref<10x32xf32, #tpu.memory_space<vmem>>, vector<10x32xf32>
      %c0_12 = arith.constant 0 : index
      %c0_13 = arith.constant 0 : index
      %14 = vector.load %arg5[%c0_12, %c0_13] : memref<1x32xf32, #tpu.memory_space<vmem>>, vector<1x32xf32>
      %15 = vector.broadcast %14 : vector<1x32xf32> to vector<10x32xf32>
      %16 = arith.addf %13, %15 : vector<10x32xf32>
      %c0_14 = arith.constant 0 : index
      %c0_15 = arith.constant 0 : index
      %17 = vector.load %arg6[%c0_14, %c0_15] : memref<10x32xf32, #tpu.memory_space<vmem>>, vector<10x32xf32>
      %18 = arith.addf %16, %17 : vector<10x32xf32>
      %c0_16 = arith.constant 0 : index
      %c0_17 = arith.constant 0 : index
      %19 = vector.load %arg7[%c0_16, %c0_17] : memref<10x32xf32, #tpu.memory_space<vmem>>, vector<10x32xf32>
      tpu.vector_store %arg7[%c0_16, %c0_17], %18 {strides = array<i32>} : memref<10x32xf32, #tpu.memory_space<vmem>>, vector<10x32xf32>,
    } else {
    }
    return
  }
  func.func @transform_0(%arg0: i32, %arg1: i32, %arg2: i32) -> (i32, i32) {
    %c0_i32 = arith.constant 0 : i32
    return %arg0, %arg2 : i32, i32
  }
  func.func @transform_1(%arg0: i32, %arg1: i32, %arg2: i32) -> (i32, i32) {
    %c0_i32 = arith.constant 0 : i32
    return %arg2, %arg1 : i32, i32
  }
  func.func @transform_2(%arg0: i32, %arg1: i32, %arg2: i32) -> (i32, i32) {
    %c0_i32 = arith.constant 0 : i32
    %c0_i32_0 = arith.constant 0 : i32
    return %c0_i32, %arg1 : i32, i32
  }
  func.func @transform_3(%arg0: i32, %arg1: i32, %arg2: i32) -> (i32, i32) {
    %c0_i32 = arith.constant 0 : i32
    return %arg0, %arg1 : i32, i32
  }
  func.func @transform_4(%arg0: i32, %arg1: i32, %arg2: i32) -> (i32, i32) {
    %c0_i32 = arith.constant 0 : i32
    return %arg0, %arg1 : i32, i32
  }
}

module attributes {stable_mosaic.version = 11 : i64} {
  func.func @_attn_self_kernel(%arg0: i32, %arg1: memref<1x5x96xf32, #tpu.memory_space<vmem>>, %arg2: memref<1x5x32xf32, #tpu.memory_space<vmem>>) attributes {dimension_semantics = [#tpu.dimension_semantics<parallel>], iteration_bounds = array<i64: 2>, scalar_prefetch = 0 : i64, scratch_operands = 0 : i64, tpu.core_type = #tpu.core_type<tc>, window_params = [{transform_indices = @transform_0, window_bounds = array<i64: 1, 5, 96>}, {transform_indices = @transform_1, window_bounds = array<i64: 1, 5, 32>}]} {
    %c0 = arith.constant 0 : index
    %c0_0 = arith.constant 0 : index
    %c0_1 = arith.constant 0 : index
    %0 = vector.load %arg1[%c0, %c0_0, %c0_1] : memref<1x5x96xf32, #tpu.memory_space<vmem>>, vector<1x5x96xf32>
    %1 = vector.shape_cast %0 : vector<1x5x96xf32> to vector<5x96xf32>
    %2 = vector.extract_strided_slice %1 {offsets = [0, 0], sizes = [5, 8], strides = [1, 1]} : vector<5x96xf32> to vector<5x8xf32>
    %3 = arith.truncf %2 : vector<5x8xf32> to vector<5x8xbf16>
    %4 = vector.extract_strided_slice %1 {offsets = [0, 32], sizes = [5, 8], strides = [1, 1]} : vector<5x96xf32> to vector<5x8xf32>
    %5 = arith.truncf %4 : vector<5x8xf32> to vector<5x8xbf16>
    %6 = vector.extract_strided_slice %1 {offsets = [0, 64], sizes = [5, 8], strides = [1, 1]} : vector<5x96xf32> to vector<5x8xf32>
    %7 = arith.truncf %6 : vector<5x8xf32> to vector<5x8xbf16>
    %cst = arith.constant dense<0.000000e+00> : vector<5x5xf32>
    %8 = tpu.matmul %3, %5, %cst {dimension_numbers = #tpu.dot_dimension_numbers<[1], [1], [0], [0], [0, 0, 1, 0], [], []>} : vector<5x8xbf16>, vector<5x8xbf16>, vector<5x5xf32> -> vector<5x5xf32>
    %cst_2 = arith.constant 0.353553385 : f32
    %9 = vector.broadcast %cst_2 : f32 to vector<5x5xf32>
    %10 = arith.mulf %8, %9 : vector<5x5xf32>
    %cst_3 = arith.constant dense<0xFF800000> : vector<5xf32>
    %11 = vector.multi_reduction <maximumf>, %10, %cst_3 [1] : vector<5x5xf32> to vector<5xf32>
    %12 = vector.shape_cast %11 : vector<5xf32> to vector<5x1xf32>
    %13 = vector.broadcast %12 : vector<5x1xf32> to vector<5x5xf32>
    %14 = arith.subf %10, %13 : vector<5x5xf32>
    %15 = math.exp %14 : vector<5x5xf32>
    %cst_4 = arith.constant dense<0.000000e+00> : vector<5xf32>
    %16 = vector.multi_reduction <add>, %15, %cst_4 [1] : vector<5x5xf32> to vector<5xf32>
    %17 = vector.shape_cast %16 : vector<5xf32> to vector<5x1xf32>
    %18 = tpu.reciprocal %17 {approx = true} : vector<5x1xf32> -> vector<5x1xf32>
    %19 = vector.broadcast %18 : vector<5x1xf32> to vector<5x5xf32>
    %20 = arith.mulf %15, %19 : vector<5x5xf32>
    %21 = arith.truncf %20 : vector<5x5xf32> to vector<5x5xbf16>
    %cst_5 = arith.constant dense<0.000000e+00> : vector<5x8xf32>
    %22 = tpu.matmul %21, %7, %cst_5 {dimension_numbers = #tpu.dot_dimension_numbers<[1], [0], [0], [1], [0, 0, 1, 1], [], []>} : vector<5x5xbf16>, vector<5x8xbf16>, vector<5x8xf32> -> vector<5x8xf32>
    %23 = vector.extract_strided_slice %1 {offsets = [0, 8], sizes = [5, 8], strides = [1, 1]} : vector<5x96xf32> to vector<5x8xf32>
    %24 = arith.truncf %23 : vector<5x8xf32> to vector<5x8xbf16>
    %25 = vector.extract_strided_slice %1 {offsets = [0, 40], sizes = [5, 8], strides = [1, 1]} : vector<5x96xf32> to vector<5x8xf32>
    %26 = arith.truncf %25 : vector<5x8xf32> to vector<5x8xbf16>
    %27 = vector.extract_strided_slice %1 {offsets = [0, 72], sizes = [5, 8], strides = [1, 1]} : vector<5x96xf32> to vector<5x8xf32>
    %28 = arith.truncf %27 : vector<5x8xf32> to vector<5x8xbf16>
    %cst_6 = arith.constant dense<0.000000e+00> : vector<5x5xf32>
    %29 = tpu.matmul %24, %26, %cst_6 {dimension_numbers = #tpu.dot_dimension_numbers<[1], [1], [0], [0], [0, 0, 1, 0], [], []>} : vector<5x8xbf16>, vector<5x8xbf16>, vector<5x5xf32> -> vector<5x5xf32>
    %cst_7 = arith.constant 0.353553385 : f32
    %30 = vector.broadcast %cst_7 : f32 to vector<5x5xf32>
    %31 = arith.mulf %29, %30 : vector<5x5xf32>
    %cst_8 = arith.constant dense<0xFF800000> : vector<5xf32>
    %32 = vector.multi_reduction <maximumf>, %31, %cst_8 [1] : vector<5x5xf32> to vector<5xf32>
    %33 = vector.shape_cast %32 : vector<5xf32> to vector<5x1xf32>
    %34 = vector.broadcast %33 : vector<5x1xf32> to vector<5x5xf32>
    %35 = arith.subf %31, %34 : vector<5x5xf32>
    %36 = math.exp %35 : vector<5x5xf32>
    %cst_9 = arith.constant dense<0.000000e+00> : vector<5xf32>
    %37 = vector.multi_reduction <add>, %36, %cst_9 [1] : vector<5x5xf32> to vector<5xf32>
    %38 = vector.shape_cast %37 : vector<5xf32> to vector<5x1xf32>
    %39 = tpu.reciprocal %38 {approx = true} : vector<5x1xf32> -> vector<5x1xf32>
    %40 = vector.broadcast %39 : vector<5x1xf32> to vector<5x5xf32>
    %41 = arith.mulf %36, %40 : vector<5x5xf32>
    %42 = arith.truncf %41 : vector<5x5xf32> to vector<5x5xbf16>
    %cst_10 = arith.constant dense<0.000000e+00> : vector<5x8xf32>
    %43 = tpu.matmul %42, %28, %cst_10 {dimension_numbers = #tpu.dot_dimension_numbers<[1], [0], [0], [1], [0, 0, 1, 1], [], []>} : vector<5x5xbf16>, vector<5x8xbf16>, vector<5x8xf32> -> vector<5x8xf32>
    %44 = vector.extract_strided_slice %1 {offsets = [0, 16], sizes = [5, 8], strides = [1, 1]} : vector<5x96xf32> to vector<5x8xf32>
    %45 = arith.truncf %44 : vector<5x8xf32> to vector<5x8xbf16>
    %46 = vector.extract_strided_slice %1 {offsets = [0, 48], sizes = [5, 8], strides = [1, 1]} : vector<5x96xf32> to vector<5x8xf32>
    %47 = arith.truncf %46 : vector<5x8xf32> to vector<5x8xbf16>
    %48 = vector.extract_strided_slice %1 {offsets = [0, 80], sizes = [5, 8], strides = [1, 1]} : vector<5x96xf32> to vector<5x8xf32>
    %49 = arith.truncf %48 : vector<5x8xf32> to vector<5x8xbf16>
    %cst_11 = arith.constant dense<0.000000e+00> : vector<5x5xf32>
    %50 = tpu.matmul %45, %47, %cst_11 {dimension_numbers = #tpu.dot_dimension_numbers<[1], [1], [0], [0], [0, 0, 1, 0], [], []>} : vector<5x8xbf16>, vector<5x8xbf16>, vector<5x5xf32> -> vector<5x5xf32>
    %cst_12 = arith.constant 0.353553385 : f32
    %51 = vector.broadcast %cst_12 : f32 to vector<5x5xf32>
    %52 = arith.mulf %50, %51 : vector<5x5xf32>
    %cst_13 = arith.constant dense<0xFF800000> : vector<5xf32>
    %53 = vector.multi_reduction <maximumf>, %52, %cst_13 [1] : vector<5x5xf32> to vector<5xf32>
    %54 = vector.shape_cast %53 : vector<5xf32> to vector<5x1xf32>
    %55 = vector.broadcast %54 : vector<5x1xf32> to vector<5x5xf32>
    %56 = arith.subf %52, %55 : vector<5x5xf32>
    %57 = math.exp %56 : vector<5x5xf32>
    %cst_14 = arith.constant dense<0.000000e+00> : vector<5xf32>
    %58 = vector.multi_reduction <add>, %57, %cst_14 [1] : vector<5x5xf32> to vector<5xf32>
    %59 = vector.shape_cast %58 : vector<5xf32> to vector<5x1xf32>
    %60 = tpu.reciprocal %59 {approx = true} : vector<5x1xf32> -> vector<5x1xf32>
    %61 = vector.broadcast %60 : vector<5x1xf32> to vector<5x5xf32>
    %62 = arith.mulf %57, %61 : vector<5x5xf32>
    %63 = arith.truncf %62 : vector<5x5xf32> to vector<5x5xbf16>
    %cst_15 = arith.constant dense<0.000000e+00> : vector<5x8xf32>
    %64 = tpu.matmul %63, %49, %cst_15 {dimension_numbers = #tpu.dot_dimension_numbers<[1], [0], [0], [1], [0, 0, 1, 1], [], []>} : vector<5x5xbf16>, vector<5x8xbf16>, vector<5x8xf32> -> vector<5x8xf32>
    %65 = vector.extract_strided_slice %1 {offsets = [0, 24], sizes = [5, 8], strides = [1, 1]} : vector<5x96xf32> to vector<5x8xf32>
    %66 = arith.truncf %65 : vector<5x8xf32> to vector<5x8xbf16>
    %67 = vector.extract_strided_slice %1 {offsets = [0, 56], sizes = [5, 8], strides = [1, 1]} : vector<5x96xf32> to vector<5x8xf32>
    %68 = arith.truncf %67 : vector<5x8xf32> to vector<5x8xbf16>
    %69 = vector.extract_strided_slice %1 {offsets = [0, 88], sizes = [5, 8], strides = [1, 1]} : vector<5x96xf32> to vector<5x8xf32>
    %70 = arith.truncf %69 : vector<5x8xf32> to vector<5x8xbf16>
    %cst_16 = arith.constant dense<0.000000e+00> : vector<5x5xf32>
    %71 = tpu.matmul %66, %68, %cst_16 {dimension_numbers = #tpu.dot_dimension_numbers<[1], [1], [0], [0], [0, 0, 1, 0], [], []>} : vector<5x8xbf16>, vector<5x8xbf16>, vector<5x5xf32> -> vector<5x5xf32>
    %cst_17 = arith.constant 0.353553385 : f32
    %72 = vector.broadcast %cst_17 : f32 to vector<5x5xf32>
    %73 = arith.mulf %71, %72 : vector<5x5xf32>
    %cst_18 = arith.constant dense<0xFF800000> : vector<5xf32>
    %74 = vector.multi_reduction <maximumf>, %73, %cst_18 [1] : vector<5x5xf32> to vector<5xf32>
    %75 = vector.shape_cast %74 : vector<5xf32> to vector<5x1xf32>
    %76 = vector.broadcast %75 : vector<5x1xf32> to vector<5x5xf32>
    %77 = arith.subf %73, %76 : vector<5x5xf32>
    %78 = math.exp %77 : vector<5x5xf32>
    %cst_19 = arith.constant dense<0.000000e+00> : vector<5xf32>
    %79 = vector.multi_reduction <add>, %78, %cst_19 [1] : vector<5x5xf32> to vector<5xf32>
    %80 = vector.shape_cast %79 : vector<5xf32> to vector<5x1xf32>
    %81 = tpu.reciprocal %80 {approx = true} : vector<5x1xf32> -> vector<5x1xf32>
    %82 = vector.broadcast %81 : vector<5x1xf32> to vector<5x5xf32>
    %83 = arith.mulf %78, %82 : vector<5x5xf32>
    %84 = arith.truncf %83 : vector<5x5xf32> to vector<5x5xbf16>
    %cst_20 = arith.constant dense<0.000000e+00> : vector<5x8xf32>
    %85 = tpu.matmul %84, %70, %cst_20 {dimension_numbers = #tpu.dot_dimension_numbers<[1], [0], [0], [1], [0, 0, 1, 1], [], []>} : vector<5x5xbf16>, vector<5x8xbf16>, vector<5x8xf32> -> vector<5x8xf32>
    %86 = tpu.concatenate %22, %43, %64, %85 in 1 : vector<5x8xf32>, vector<5x8xf32>, vector<5x8xf32>, vector<5x8xf32> -> vector<5x32xf32>
    %c0_21 = arith.constant 0 : index
    %c0_22 = arith.constant 0 : index
    %c0_23 = arith.constant 0 : index
    %87 = vector.load %arg2[%c0_21, %c0_22, %c0_23] : memref<1x5x32xf32, #tpu.memory_space<vmem>>, vector<1x5x32xf32>
    %88 = vector.shape_cast %87 : vector<1x5x32xf32> to vector<5x32xf32>
    %89 = vector.shape_cast %86 : vector<5x32xf32> to vector<1x5x32xf32>
    tpu.vector_store %arg2[%c0_21, %c0_22, %c0_23], %89 {strides = array<i32>} : memref<1x5x32xf32, #tpu.memory_space<vmem>>, vector<1x5x32xf32>,
    return
  }
  func.func @transform_0(%arg0: i32) -> (i32, i32, i32) {
    %c0_i32 = arith.constant 0 : i32
    %c0_i32_0 = arith.constant 0 : i32
    %c0_i32_1 = arith.constant 0 : i32
    return %arg0, %c0_i32, %c0_i32_0 : i32, i32, i32
  }
  func.func @transform_1(%arg0: i32) -> (i32, i32, i32) {
    %c0_i32 = arith.constant 0 : i32
    %c0_i32_0 = arith.constant 0 : i32
    %c0_i32_1 = arith.constant 0 : i32
    return %arg0, %c0_i32, %c0_i32_0 : i32, i32, i32
  }
}

module attributes {stable_mosaic.version = 11 : i64} {
  func.func @_ln_linear_kernel(%arg0: i32, %arg1: i32, %arg2: memref<10x32xf32, #tpu.memory_space<vmem>>, %arg3: memref<1x32xf32, #tpu.memory_space<vmem>>, %arg4: memref<1x32xf32, #tpu.memory_space<vmem>>, %arg5: memref<32x96xbf16, #tpu.memory_space<vmem>>, %arg6: memref<1x96xf32, #tpu.memory_space<vmem>>, %arg7: memref<10x96xf32, #tpu.memory_space<vmem>>) attributes {dimension_semantics = [#tpu.dimension_semantics<parallel>, #tpu.dimension_semantics<parallel>], iteration_bounds = array<i64: 1, 1>, scalar_prefetch = 0 : i64, scratch_operands = 0 : i64, tpu.core_type = #tpu.core_type<tc>, window_params = [{transform_indices = @transform_0, window_bounds = array<i64: 10, 32>}, {pipeline_mode = #tpu.pipeline_mode<synchronous>, transform_indices = @transform_1, window_bounds = array<i64: 1, 32>}, {pipeline_mode = #tpu.pipeline_mode<synchronous>, transform_indices = @transform_2, window_bounds = array<i64: 1, 32>}, {transform_indices = @transform_3, window_bounds = array<i64: 32, 96>}, {transform_indices = @transform_4, window_bounds = array<i64: 1, 96>}, {transform_indices = @transform_5, window_bounds = array<i64: 10, 96>}]} {
    %c0 = arith.constant 0 : index
    %c0_0 = arith.constant 0 : index
    %0 = vector.load %arg2[%c0, %c0_0] : memref<10x32xf32, #tpu.memory_space<vmem>>, vector<10x32xf32>
    %cst = arith.constant dense<0.000000e+00> : vector<10xf32>
    %1 = vector.multi_reduction <add>, %0, %cst [1] : vector<10x32xf32> to vector<10xf32>
    %2 = vector.shape_cast %1 : vector<10xf32> to vector<10x1xf32>
    %cst_1 = arith.constant 3.200000e+01 : f32
    %3 = vector.broadcast %cst_1 : f32 to vector<10x1xf32>
    %4 = arith.divf %2, %3 : vector<10x1xf32>
    %5 = vector.broadcast %4 : vector<10x1xf32> to vector<10x32xf32>
    %6 = arith.subf %0, %5 : vector<10x32xf32>
    %7 = arith.mulf %6, %6 : vector<10x32xf32>
    %cst_2 = arith.constant dense<0.000000e+00> : vector<10xf32>
    %8 = vector.multi_reduction <add>, %7, %cst_2 [1] : vector<10x32xf32> to vector<10xf32>
    %9 = vector.shape_cast %8 : vector<10xf32> to vector<10x1xf32>
    %cst_3 = arith.constant 3.200000e+01 : f32
    %10 = vector.broadcast %cst_3 : f32 to vector<10x1xf32>
    %11 = arith.divf %9, %10 : vector<10x1xf32>
    %cst_4 = arith.constant 9.99999997E-7 : f32
    %12 = vector.broadcast %cst_4 : f32 to vector<10x1xf32>
    %13 = arith.addf %11, %12 : vector<10x1xf32>
    %14 = math.rsqrt %13 : vector<10x1xf32>
    %15 = vector.broadcast %14 : vector<10x1xf32> to vector<10x32xf32>
    %16 = arith.mulf %6, %15 : vector<10x32xf32>
    %c0_5 = arith.constant 0 : index
    %c0_6 = arith.constant 0 : index
    %17 = vector.load %arg3[%c0_5, %c0_6] : memref<1x32xf32, #tpu.memory_space<vmem>>, vector<1x32xf32>
    %18 = vector.broadcast %17 : vector<1x32xf32> to vector<10x32xf32>
    %19 = arith.mulf %16, %18 : vector<10x32xf32>
    %c0_7 = arith.constant 0 : index
    %c0_8 = arith.constant 0 : index
    %20 = vector.load %arg4[%c0_7, %c0_8] : memref<1x32xf32, #tpu.memory_space<vmem>>, vector<1x32xf32>
    %21 = vector.broadcast %20 : vector<1x32xf32> to vector<10x32xf32>
    %22 = arith.addf %19, %21 : vector<10x32xf32>
    %23 = arith.truncf %22 : vector<10x32xf32> to vector<10x32xbf16>
    %c0_9 = arith.constant 0 : index
    %c0_10 = arith.constant 0 : index
    %24 = vector.load %arg5[%c0_9, %c0_10] : memref<32x96xbf16, #tpu.memory_space<vmem>>, vector<32x96xbf16>
    %cst_11 = arith.constant dense<0.000000e+00> : vector<10x96xf32>
    %25 = tpu.matmul %23, %24, %cst_11 {dimension_numbers = #tpu.dot_dimension_numbers<[1], [0], [0], [1], [0, 0, 1, 1], [], []>} : vector<10x32xbf16>, vector<32x96xbf16>, vector<10x96xf32> -> vector<10x96xf32>
    %c0_12 = arith.constant 0 : index
    %c0_13 = arith.constant 0 : index
    %26 = vector.load %arg6[%c0_12, %c0_13] : memref<1x96xf32, #tpu.memory_space<vmem>>, vector<1x96xf32>
    %27 = vector.broadcast %26 : vector<1x96xf32> to vector<10x96xf32>
    %28 = arith.addf %25, %27 : vector<10x96xf32>
    %c0_14 = arith.constant 0 : index
    %c0_15 = arith.constant 0 : index
    %29 = vector.load %arg7[%c0_14, %c0_15] : memref<10x96xf32, #tpu.memory_space<vmem>>, vector<10x96xf32>
    tpu.vector_store %arg7[%c0_14, %c0_15], %28 {strides = array<i32>} : memref<10x96xf32, #tpu.memory_space<vmem>>, vector<10x96xf32>,
    return
  }
  func.func @transform_0(%arg0: i32, %arg1: i32) -> (i32, i32) {
    %c0_i32 = arith.constant 0 : i32
    %c0_i32_0 = arith.constant 0 : i32
    return %arg0, %c0_i32 : i32, i32
  }
  func.func @transform_1(%arg0: i32, %arg1: i32) -> (i32, i32) {
    %c0_i32 = arith.constant 0 : i32
    %c0_i32_0 = arith.constant 0 : i32
    %c0_i32_1 = arith.constant 0 : i32
    return %c0_i32, %c0_i32_0 : i32, i32
  }
  func.func @transform_2(%arg0: i32, %arg1: i32) -> (i32, i32) {
    %c0_i32 = arith.constant 0 : i32
    %c0_i32_0 = arith.constant 0 : i32
    %c0_i32_1 = arith.constant 0 : i32
    return %c0_i32, %c0_i32_0 : i32, i32
  }
  func.func @transform_3(%arg0: i32, %arg1: i32) -> (i32, i32) {
    %c0_i32 = arith.constant 0 : i32
    %c0_i32_0 = arith.constant 0 : i32
    return %c0_i32, %arg1 : i32, i32
  }
  func.func @transform_4(%arg0: i32, %arg1: i32) -> (i32, i32) {
    %c0_i32 = arith.constant 0 : i32
    %c0_i32_0 = arith.constant 0 : i32
    return %c0_i32, %arg1 : i32, i32
  }
  func.func @transform_5(%arg0: i32, %arg1: i32) -> (i32, i32) {
    %c0_i32 = arith.constant 0 : i32
    return %arg0, %arg1 : i32, i32
  }
}

module attributes {stable_mosaic.version = 11 : i64} {
  func.func @_ln_linear_kernel(%arg0: i32, %arg1: i32, %arg2: memref<10x32xf32, #tpu.memory_space<vmem>>, %arg3: memref<1x32xf32, #tpu.memory_space<vmem>>, %arg4: memref<1x32xf32, #tpu.memory_space<vmem>>, %arg5: memref<32x128xbf16, #tpu.memory_space<vmem>>, %arg6: memref<1x128xf32, #tpu.memory_space<vmem>>, %arg7: memref<10x128xf32, #tpu.memory_space<vmem>>) attributes {dimension_semantics = [#tpu.dimension_semantics<parallel>, #tpu.dimension_semantics<parallel>], iteration_bounds = array<i64: 1, 1>, scalar_prefetch = 0 : i64, scratch_operands = 0 : i64, tpu.core_type = #tpu.core_type<tc>, window_params = [{transform_indices = @transform_0, window_bounds = array<i64: 10, 32>}, {pipeline_mode = #tpu.pipeline_mode<synchronous>, transform_indices = @transform_1, window_bounds = array<i64: 1, 32>}, {pipeline_mode = #tpu.pipeline_mode<synchronous>, transform_indices = @transform_2, window_bounds = array<i64: 1, 32>}, {transform_indices = @transform_3, window_bounds = array<i64: 32, 128>}, {transform_indices = @transform_4, window_bounds = array<i64: 1, 128>}, {transform_indices = @transform_5, window_bounds = array<i64: 10, 128>}]} {
    %c0 = arith.constant 0 : index
    %c0_0 = arith.constant 0 : index
    %0 = vector.load %arg2[%c0, %c0_0] : memref<10x32xf32, #tpu.memory_space<vmem>>, vector<10x32xf32>
    %cst = arith.constant dense<0.000000e+00> : vector<10xf32>
    %1 = vector.multi_reduction <add>, %0, %cst [1] : vector<10x32xf32> to vector<10xf32>
    %2 = vector.shape_cast %1 : vector<10xf32> to vector<10x1xf32>
    %cst_1 = arith.constant 3.200000e+01 : f32
    %3 = vector.broadcast %cst_1 : f32 to vector<10x1xf32>
    %4 = arith.divf %2, %3 : vector<10x1xf32>
    %5 = vector.broadcast %4 : vector<10x1xf32> to vector<10x32xf32>
    %6 = arith.subf %0, %5 : vector<10x32xf32>
    %7 = arith.mulf %6, %6 : vector<10x32xf32>
    %cst_2 = arith.constant dense<0.000000e+00> : vector<10xf32>
    %8 = vector.multi_reduction <add>, %7, %cst_2 [1] : vector<10x32xf32> to vector<10xf32>
    %9 = vector.shape_cast %8 : vector<10xf32> to vector<10x1xf32>
    %cst_3 = arith.constant 3.200000e+01 : f32
    %10 = vector.broadcast %cst_3 : f32 to vector<10x1xf32>
    %11 = arith.divf %9, %10 : vector<10x1xf32>
    %cst_4 = arith.constant 9.99999997E-7 : f32
    %12 = vector.broadcast %cst_4 : f32 to vector<10x1xf32>
    %13 = arith.addf %11, %12 : vector<10x1xf32>
    %14 = math.rsqrt %13 : vector<10x1xf32>
    %15 = vector.broadcast %14 : vector<10x1xf32> to vector<10x32xf32>
    %16 = arith.mulf %6, %15 : vector<10x32xf32>
    %c0_5 = arith.constant 0 : index
    %c0_6 = arith.constant 0 : index
    %17 = vector.load %arg3[%c0_5, %c0_6] : memref<1x32xf32, #tpu.memory_space<vmem>>, vector<1x32xf32>
    %18 = vector.broadcast %17 : vector<1x32xf32> to vector<10x32xf32>
    %19 = arith.mulf %16, %18 : vector<10x32xf32>
    %c0_7 = arith.constant 0 : index
    %c0_8 = arith.constant 0 : index
    %20 = vector.load %arg4[%c0_7, %c0_8] : memref<1x32xf32, #tpu.memory_space<vmem>>, vector<1x32xf32>
    %21 = vector.broadcast %20 : vector<1x32xf32> to vector<10x32xf32>
    %22 = arith.addf %19, %21 : vector<10x32xf32>
    %23 = arith.truncf %22 : vector<10x32xf32> to vector<10x32xbf16>
    %c0_9 = arith.constant 0 : index
    %c0_10 = arith.constant 0 : index
    %24 = vector.load %arg5[%c0_9, %c0_10] : memref<32x128xbf16, #tpu.memory_space<vmem>>, vector<32x128xbf16>
    %cst_11 = arith.constant dense<0.000000e+00> : vector<10x128xf32>
    %25 = tpu.matmul %23, %24, %cst_11 {dimension_numbers = #tpu.dot_dimension_numbers<[1], [0], [0], [1], [0, 0, 1, 1], [], []>} : vector<10x32xbf16>, vector<32x128xbf16>, vector<10x128xf32> -> vector<10x128xf32>
    %c0_12 = arith.constant 0 : index
    %c0_13 = arith.constant 0 : index
    %26 = vector.load %arg6[%c0_12, %c0_13] : memref<1x128xf32, #tpu.memory_space<vmem>>, vector<1x128xf32>
    %27 = vector.broadcast %26 : vector<1x128xf32> to vector<10x128xf32>
    %28 = arith.addf %25, %27 : vector<10x128xf32>
    %cst_14 = arith.constant 5.000000e-01 : f32
    %29 = vector.broadcast %cst_14 : f32 to vector<10x128xf32>
    %30 = arith.mulf %29, %28 : vector<10x128xf32>
    %cst_15 = arith.constant 4.471500e-02 : f32
    %31 = vector.broadcast %cst_15 : f32 to vector<10x128xf32>
    %32 = arith.mulf %31, %28 : vector<10x128xf32>
    %33 = arith.mulf %32, %28 : vector<10x128xf32>
    %34 = arith.mulf %33, %28 : vector<10x128xf32>
    %35 = arith.addf %28, %34 : vector<10x128xf32>
    %cst_16 = arith.constant 0.797884583 : f32
    %36 = vector.broadcast %cst_16 : f32 to vector<10x128xf32>
    %37 = arith.mulf %36, %35 : vector<10x128xf32>
    %38 = math.tanh %37 : vector<10x128xf32>
    %cst_17 = arith.constant 1.000000e+00 : f32
    %39 = vector.broadcast %cst_17 : f32 to vector<10x128xf32>
    %40 = arith.addf %39, %38 : vector<10x128xf32>
    %41 = arith.mulf %30, %40 : vector<10x128xf32>
    %c0_18 = arith.constant 0 : index
    %c0_19 = arith.constant 0 : index
    %42 = vector.load %arg7[%c0_18, %c0_19] : memref<10x128xf32, #tpu.memory_space<vmem>>, vector<10x128xf32>
    tpu.vector_store %arg7[%c0_18, %c0_19], %41 {strides = array<i32>} : memref<10x128xf32, #tpu.memory_space<vmem>>, vector<10x128xf32>,
    return
  }
  func.func @transform_0(%arg0: i32, %arg1: i32) -> (i32, i32) {
    %c0_i32 = arith.constant 0 : i32
    %c0_i32_0 = arith.constant 0 : i32
    return %arg0, %c0_i32 : i32, i32
  }
  func.func @transform_1(%arg0: i32, %arg1: i32) -> (i32, i32) {
    %c0_i32 = arith.constant 0 : i32
    %c0_i32_0 = arith.constant 0 : i32
    %c0_i32_1 = arith.constant 0 : i32
    return %c0_i32, %c0_i32_0 : i32, i32
  }
  func.func @transform_2(%arg0: i32, %arg1: i32) -> (i32, i32) {
    %c0_i32 = arith.constant 0 : i32
    %c0_i32_0 = arith.constant 0 : i32
    %c0_i32_1 = arith.constant 0 : i32
    return %c0_i32, %c0_i32_0 : i32, i32
  }
  func.func @transform_3(%arg0: i32, %arg1: i32) -> (i32, i32) {
    %c0_i32 = arith.constant 0 : i32
    %c0_i32_0 = arith.constant 0 : i32
    return %c0_i32, %arg1 : i32, i32
  }
  func.func @transform_4(%arg0: i32, %arg1: i32) -> (i32, i32) {
    %c0_i32 = arith.constant 0 : i32
    %c0_i32_0 = arith.constant 0 : i32
    return %c0_i32, %arg1 : i32, i32
  }
  func.func @transform_5(%arg0: i32, %arg1: i32) -> (i32, i32) {
    %c0_i32 = arith.constant 0 : i32
    return %arg0, %arg1 : i32, i32
  }
}

module attributes {stable_mosaic.version = 11 : i64} {
  func.func @_ln_kernel(%arg0: i32, %arg1: memref<10x32xf32, #tpu.memory_space<vmem>>, %arg2: memref<1x32xf32, #tpu.memory_space<vmem>>, %arg3: memref<1x32xf32, #tpu.memory_space<vmem>>, %arg4: memref<10x32xf32, #tpu.memory_space<vmem>>) attributes {dimension_semantics = [#tpu.dimension_semantics<parallel>], iteration_bounds = array<i64: 1>, scalar_prefetch = 0 : i64, scratch_operands = 0 : i64, tpu.core_type = #tpu.core_type<tc>, window_params = [{transform_indices = @transform_0, window_bounds = array<i64: 10, 32>}, {pipeline_mode = #tpu.pipeline_mode<synchronous>, transform_indices = @transform_1, window_bounds = array<i64: 1, 32>}, {pipeline_mode = #tpu.pipeline_mode<synchronous>, transform_indices = @transform_2, window_bounds = array<i64: 1, 32>}, {transform_indices = @transform_3, window_bounds = array<i64: 10, 32>}]} {
    %c0 = arith.constant 0 : index
    %c0_0 = arith.constant 0 : index
    %0 = vector.load %arg1[%c0, %c0_0] : memref<10x32xf32, #tpu.memory_space<vmem>>, vector<10x32xf32>
    %cst = arith.constant dense<0.000000e+00> : vector<10xf32>
    %1 = vector.multi_reduction <add>, %0, %cst [1] : vector<10x32xf32> to vector<10xf32>
    %2 = vector.shape_cast %1 : vector<10xf32> to vector<10x1xf32>
    %cst_1 = arith.constant 3.200000e+01 : f32
    %3 = vector.broadcast %cst_1 : f32 to vector<10x1xf32>
    %4 = arith.divf %2, %3 : vector<10x1xf32>
    %5 = vector.broadcast %4 : vector<10x1xf32> to vector<10x32xf32>
    %6 = arith.subf %0, %5 : vector<10x32xf32>
    %7 = arith.mulf %6, %6 : vector<10x32xf32>
    %cst_2 = arith.constant dense<0.000000e+00> : vector<10xf32>
    %8 = vector.multi_reduction <add>, %7, %cst_2 [1] : vector<10x32xf32> to vector<10xf32>
    %9 = vector.shape_cast %8 : vector<10xf32> to vector<10x1xf32>
    %cst_3 = arith.constant 3.200000e+01 : f32
    %10 = vector.broadcast %cst_3 : f32 to vector<10x1xf32>
    %11 = arith.divf %9, %10 : vector<10x1xf32>
    %cst_4 = arith.constant 9.99999997E-7 : f32
    %12 = vector.broadcast %cst_4 : f32 to vector<10x1xf32>
    %13 = arith.addf %11, %12 : vector<10x1xf32>
    %14 = math.rsqrt %13 : vector<10x1xf32>
    %15 = vector.broadcast %14 : vector<10x1xf32> to vector<10x32xf32>
    %16 = arith.mulf %6, %15 : vector<10x32xf32>
    %c0_5 = arith.constant 0 : index
    %c0_6 = arith.constant 0 : index
    %17 = vector.load %arg2[%c0_5, %c0_6] : memref<1x32xf32, #tpu.memory_space<vmem>>, vector<1x32xf32>
    %18 = vector.broadcast %17 : vector<1x32xf32> to vector<10x32xf32>
    %19 = arith.mulf %16, %18 : vector<10x32xf32>
    %c0_7 = arith.constant 0 : index
    %c0_8 = arith.constant 0 : index
    %20 = vector.load %arg3[%c0_7, %c0_8] : memref<1x32xf32, #tpu.memory_space<vmem>>, vector<1x32xf32>
    %21 = vector.broadcast %20 : vector<1x32xf32> to vector<10x32xf32>
    %22 = arith.addf %19, %21 : vector<10x32xf32>
    %c0_9 = arith.constant 0 : index
    %c0_10 = arith.constant 0 : index
    %23 = vector.load %arg4[%c0_9, %c0_10] : memref<10x32xf32, #tpu.memory_space<vmem>>, vector<10x32xf32>
    tpu.vector_store %arg4[%c0_9, %c0_10], %22 {strides = array<i32>} : memref<10x32xf32, #tpu.memory_space<vmem>>, vector<10x32xf32>,
    return
  }
  func.func @transform_0(%arg0: i32) -> (i32, i32) {
    %c0_i32 = arith.constant 0 : i32
    %c0_i32_0 = arith.constant 0 : i32
    return %arg0, %c0_i32 : i32, i32
  }
  func.func @transform_1(%arg0: i32) -> (i32, i32) {
    %c0_i32 = arith.constant 0 : i32
    %c0_i32_0 = arith.constant 0 : i32
    %c0_i32_1 = arith.constant 0 : i32
    return %c0_i32, %c0_i32_0 : i32, i32
  }
  func.func @transform_2(%arg0: i32) -> (i32, i32) {
    %c0_i32 = arith.constant 0 : i32
    %c0_i32_0 = arith.constant 0 : i32
    %c0_i32_1 = arith.constant 0 : i32
    return %c0_i32, %c0_i32_0 : i32, i32
  }
  func.func @transform_3(%arg0: i32) -> (i32, i32) {
    %c0_i32 = arith.constant 0 : i32
    %c0_i32_0 = arith.constant 0 : i32
    return %arg0, %c0_i32 : i32, i32
  }
}

module attributes {stable_mosaic.version = 11 : i64} {
  func.func @_linear_kernel(%arg0: i32, %arg1: i32, %arg2: i32, %arg3: memref<10x128xf32, #tpu.memory_space<vmem>>, %arg4: memref<128x32xbf16, #tpu.memory_space<vmem>>, %arg5: memref<1x32xf32, #tpu.memory_space<vmem>>, %arg6: memref<10x32xf32, #tpu.memory_space<vmem>>, %arg7: memref<10x32xf32, #tpu.memory_space<vmem>>, %arg8: memref<10x32xf32, #tpu.memory_space<vmem>>) attributes {dimension_semantics = [#tpu.dimension_semantics<parallel>, #tpu.dimension_semantics<parallel>, #tpu.dimension_semantics<arbitrary>], iteration_bounds = array<i64: 1, 1, 1>, scalar_prefetch = 0 : i64, scratch_operands = 1 : i64, tpu.core_type = #tpu.core_type<tc>, window_params = [{transform_indices = @transform_0, window_bounds = array<i64: 10, 128>}, {transform_indices = @transform_1, window_bounds = array<i64: 128, 32>}, {transform_indices = @transform_2, window_bounds = array<i64: 1, 32>}, {transform_indices = @transform_3, window_bounds = array<i64: 10, 32>}, {transform_indices = @transform_4, window_bounds = array<i64: 10, 32>}]} {
    %c0_i32 = arith.constant 0 : i32
    %0 = arith.cmpi eq, %arg2, %c0_i32 : i32
    %1 = arith.extui %0 : i1 to i32
    %c0_i32_0 = arith.constant 0 : i32
    %2 = arith.cmpi ne, %1, %c0_i32_0 : i32
    scf.if %2 {
      %cst_10 = arith.constant 0.000000e+00 : f32
      %13 = vector.broadcast %cst_10 : f32 to vector<10x32xf32>
      %c0_11 = arith.constant 0 : index
      %c0_12 = arith.constant 0 : index
      %14 = vector.load %arg8[%c0_11, %c0_12] : memref<10x32xf32, #tpu.memory_space<vmem>>, vector<10x32xf32>
      tpu.vector_store %arg8[%c0_11, %c0_12], %13 {strides = array<i32>} : memref<10x32xf32, #tpu.memory_space<vmem>>, vector<10x32xf32>,
    } else {
    }
    %c0 = arith.constant 0 : index
    %c0_1 = arith.constant 0 : index
    %3 = vector.load %arg8[%c0, %c0_1] : memref<10x32xf32, #tpu.memory_space<vmem>>, vector<10x32xf32>
    %c0_2 = arith.constant 0 : index
    %c0_3 = arith.constant 0 : index
    %4 = vector.load %arg3[%c0_2, %c0_3] : memref<10x128xf32, #tpu.memory_space<vmem>>, vector<10x128xf32>
    %5 = arith.truncf %4 : vector<10x128xf32> to vector<10x128xbf16>
    %c0_4 = arith.constant 0 : index
    %c0_5 = arith.constant 0 : index
    %6 = vector.load %arg4[%c0_4, %c0_5] : memref<128x32xbf16, #tpu.memory_space<vmem>>, vector<128x32xbf16>
    %cst = arith.constant dense<0.000000e+00> : vector<10x32xf32>
    %7 = tpu.matmul %5, %6, %cst {dimension_numbers = #tpu.dot_dimension_numbers<[1], [0], [0], [1], [0, 0, 1, 1], [], []>} : vector<10x128xbf16>, vector<128x32xbf16>, vector<10x32xf32> -> vector<10x32xf32>
    %8 = arith.addf %3, %7 : vector<10x32xf32>
    %c0_6 = arith.constant 0 : index
    %c0_7 = arith.constant 0 : index
    %9 = vector.load %arg8[%c0_6, %c0_7] : memref<10x32xf32, #tpu.memory_space<vmem>>, vector<10x32xf32>
    tpu.vector_store %arg8[%c0_6, %c0_7], %8 {strides = array<i32>} : memref<10x32xf32, #tpu.memory_space<vmem>>, vector<10x32xf32>,
    %c0_i32_8 = arith.constant 0 : i32
    %10 = arith.cmpi eq, %arg2, %c0_i32_8 : i32
    %11 = arith.extui %10 : i1 to i32
    %c0_i32_9 = arith.constant 0 : i32
    %12 = arith.cmpi ne, %11, %c0_i32_9 : i32
    scf.if %12 {
      %c0_10 = arith.constant 0 : index
      %c0_11 = arith.constant 0 : index
      %13 = vector.load %arg8[%c0_10, %c0_11] : memref<10x32xf32, #tpu.memory_space<vmem>>, vector<10x32xf32>
      %c0_12 = arith.constant 0 : index
      %c0_13 = arith.constant 0 : index
      %14 = vector.load %arg5[%c0_12, %c0_13] : memref<1x32xf32, #tpu.memory_space<vmem>>, vector<1x32xf32>
      %15 = vector.broadcast %14 : vector<1x32xf32> to vector<10x32xf32>
      %16 = arith.addf %13, %15 : vector<10x32xf32>
      %c0_14 = arith.constant 0 : index
      %c0_15 = arith.constant 0 : index
      %17 = vector.load %arg6[%c0_14, %c0_15] : memref<10x32xf32, #tpu.memory_space<vmem>>, vector<10x32xf32>
      %18 = arith.addf %16, %17 : vector<10x32xf32>
      %c0_16 = arith.constant 0 : index
      %c0_17 = arith.constant 0 : index
      %19 = vector.load %arg7[%c0_16, %c0_17] : memref<10x32xf32, #tpu.memory_space<vmem>>, vector<10x32xf32>
      tpu.vector_store %arg7[%c0_16, %c0_17], %18 {strides = array<i32>} : memref<10x32xf32, #tpu.memory_space<vmem>>, vector<10x32xf32>,
    } else {
    }
    return
  }
  func.func @transform_0(%arg0: i32, %arg1: i32, %arg2: i32) -> (i32, i32) {
    %c0_i32 = arith.constant 0 : i32
    return %arg0, %arg2 : i32, i32
  }
  func.func @transform_1(%arg0: i32, %arg1: i32, %arg2: i32) -> (i32, i32) {
    %c0_i32 = arith.constant 0 : i32
    return %arg2, %arg1 : i32, i32
  }
  func.func @transform_2(%arg0: i32, %arg1: i32, %arg2: i32) -> (i32, i32) {
    %c0_i32 = arith.constant 0 : i32
    %c0_i32_0 = arith.constant 0 : i32
    return %c0_i32, %arg1 : i32, i32
  }
  func.func @transform_3(%arg0: i32, %arg1: i32, %arg2: i32) -> (i32, i32) {
    %c0_i32 = arith.constant 0 : i32
    return %arg0, %arg1 : i32, i32
  }
  func.func @transform_4(%arg0: i32, %arg1: i32, %arg2: i32) -> (i32, i32) {
    %c0_i32 = arith.constant 0 : i32
    return %arg0, %arg1 : i32, i32
  }
}

module attributes {stable_mosaic.version = 11 : i64} {
  func.func @_attn_cross_kernel(%arg0: i32, %arg1: memref<1x3x96xf32, #tpu.memory_space<vmem>>, %arg2: memref<1x5x96xf32, #tpu.memory_space<vmem>>, %arg3: memref<1x3x32xf32, #tpu.memory_space<vmem>>) attributes {dimension_semantics = [#tpu.dimension_semantics<parallel>], iteration_bounds = array<i64: 2>, scalar_prefetch = 0 : i64, scratch_operands = 0 : i64, tpu.core_type = #tpu.core_type<tc>, window_params = [{transform_indices = @transform_0, window_bounds = array<i64: 1, 3, 96>}, {transform_indices = @transform_1, window_bounds = array<i64: 1, 5, 96>}, {transform_indices = @transform_2, window_bounds = array<i64: 1, 3, 32>}]} {
    %c0 = arith.constant 0 : index
    %c0_0 = arith.constant 0 : index
    %c0_1 = arith.constant 0 : index
    %0 = vector.load %arg1[%c0, %c0_0, %c0_1] : memref<1x3x96xf32, #tpu.memory_space<vmem>>, vector<1x3x96xf32>
    %1 = vector.shape_cast %0 : vector<1x3x96xf32> to vector<3x96xf32>
    %c0_2 = arith.constant 0 : index
    %c0_3 = arith.constant 0 : index
    %c0_4 = arith.constant 0 : index
    %2 = vector.load %arg2[%c0_2, %c0_3, %c0_4] : memref<1x5x96xf32, #tpu.memory_space<vmem>>, vector<1x5x96xf32>
    %3 = vector.shape_cast %2 : vector<1x5x96xf32> to vector<5x96xf32>
    %4 = vector.extract_strided_slice %1 {offsets = [0, 0], sizes = [3, 8], strides = [1, 1]} : vector<3x96xf32> to vector<3x8xf32>
    %5 = arith.truncf %4 : vector<3x8xf32> to vector<3x8xbf16>
    %6 = vector.extract_strided_slice %1 {offsets = [0, 32], sizes = [3, 8], strides = [1, 1]} : vector<3x96xf32> to vector<3x8xf32>
    %7 = vector.extract_strided_slice %3 {offsets = [0, 32], sizes = [5, 8], strides = [1, 1]} : vector<5x96xf32> to vector<5x8xf32>
    %8 = tpu.concatenate %6, %7 in 0 : vector<3x8xf32>, vector<5x8xf32> -> vector<8x8xf32>
    %9 = arith.truncf %8 : vector<8x8xf32> to vector<8x8xbf16>
    %10 = vector.extract_strided_slice %1 {offsets = [0, 64], sizes = [3, 8], strides = [1, 1]} : vector<3x96xf32> to vector<3x8xf32>
    %11 = vector.extract_strided_slice %3 {offsets = [0, 64], sizes = [5, 8], strides = [1, 1]} : vector<5x96xf32> to vector<5x8xf32>
    %12 = tpu.concatenate %10, %11 in 0 : vector<3x8xf32>, vector<5x8xf32> -> vector<8x8xf32>
    %13 = arith.truncf %12 : vector<8x8xf32> to vector<8x8xbf16>
    %cst = arith.constant dense<0.000000e+00> : vector<3x8xf32>
    %14 = tpu.matmul %5, %9, %cst {dimension_numbers = #tpu.dot_dimension_numbers<[1], [1], [0], [0], [0, 0, 1, 0], [], []>} : vector<3x8xbf16>, vector<8x8xbf16>, vector<3x8xf32> -> vector<3x8xf32>
    %cst_5 = arith.constant 0.353553385 : f32
    %15 = vector.broadcast %cst_5 : f32 to vector<3x8xf32>
    %16 = arith.mulf %14, %15 : vector<3x8xf32>
    %cst_6 = arith.constant dense<0xFF800000> : vector<3xf32>
    %17 = vector.multi_reduction <maximumf>, %16, %cst_6 [1] : vector<3x8xf32> to vector<3xf32>
    %18 = vector.shape_cast %17 : vector<3xf32> to vector<3x1xf32>
    %19 = vector.broadcast %18 : vector<3x1xf32> to vector<3x8xf32>
    %20 = arith.subf %16, %19 : vector<3x8xf32>
    %21 = math.exp %20 : vector<3x8xf32>
    %cst_7 = arith.constant dense<0.000000e+00> : vector<3xf32>
    %22 = vector.multi_reduction <add>, %21, %cst_7 [1] : vector<3x8xf32> to vector<3xf32>
    %23 = vector.shape_cast %22 : vector<3xf32> to vector<3x1xf32>
    %24 = tpu.reciprocal %23 {approx = true} : vector<3x1xf32> -> vector<3x1xf32>
    %25 = vector.broadcast %24 : vector<3x1xf32> to vector<3x8xf32>
    %26 = arith.mulf %21, %25 : vector<3x8xf32>
    %27 = arith.truncf %26 : vector<3x8xf32> to vector<3x8xbf16>
    %cst_8 = arith.constant dense<0.000000e+00> : vector<3x8xf32>
    %28 = tpu.matmul %27, %13, %cst_8 {dimension_numbers = #tpu.dot_dimension_numbers<[1], [0], [0], [1], [0, 0, 1, 1], [], []>} : vector<3x8xbf16>, vector<8x8xbf16>, vector<3x8xf32> -> vector<3x8xf32>
    %29 = vector.extract_strided_slice %1 {offsets = [0, 8], sizes = [3, 8], strides = [1, 1]} : vector<3x96xf32> to vector<3x8xf32>
    %30 = arith.truncf %29 : vector<3x8xf32> to vector<3x8xbf16>
    %31 = vector.extract_strided_slice %1 {offsets = [0, 40], sizes = [3, 8], strides = [1, 1]} : vector<3x96xf32> to vector<3x8xf32>
    %32 = vector.extract_strided_slice %3 {offsets = [0, 40], sizes = [5, 8], strides = [1, 1]} : vector<5x96xf32> to vector<5x8xf32>
    %33 = tpu.concatenate %31, %32 in 0 : vector<3x8xf32>, vector<5x8xf32> -> vector<8x8xf32>
    %34 = arith.truncf %33 : vector<8x8xf32> to vector<8x8xbf16>
    %35 = vector.extract_strided_slice %1 {offsets = [0, 72], sizes = [3, 8], strides = [1, 1]} : vector<3x96xf32> to vector<3x8xf32>
    %36 = vector.extract_strided_slice %3 {offsets = [0, 72], sizes = [5, 8], strides = [1, 1]} : vector<5x96xf32> to vector<5x8xf32>
    %37 = tpu.concatenate %35, %36 in 0 : vector<3x8xf32>, vector<5x8xf32> -> vector<8x8xf32>
    %38 = arith.truncf %37 : vector<8x8xf32> to vector<8x8xbf16>
    %cst_9 = arith.constant dense<0.000000e+00> : vector<3x8xf32>
    %39 = tpu.matmul %30, %34, %cst_9 {dimension_numbers = #tpu.dot_dimension_numbers<[1], [1], [0], [0], [0, 0, 1, 0], [], []>} : vector<3x8xbf16>, vector<8x8xbf16>, vector<3x8xf32> -> vector<3x8xf32>
    %cst_10 = arith.constant 0.353553385 : f32
    %40 = vector.broadcast %cst_10 : f32 to vector<3x8xf32>
    %41 = arith.mulf %39, %40 : vector<3x8xf32>
    %cst_11 = arith.constant dense<0xFF800000> : vector<3xf32>
    %42 = vector.multi_reduction <maximumf>, %41, %cst_11 [1] : vector<3x8xf32> to vector<3xf32>
    %43 = vector.shape_cast %42 : vector<3xf32> to vector<3x1xf32>
    %44 = vector.broadcast %43 : vector<3x1xf32> to vector<3x8xf32>
    %45 = arith.subf %41, %44 : vector<3x8xf32>
    %46 = math.exp %45 : vector<3x8xf32>
    %cst_12 = arith.constant dense<0.000000e+00> : vector<3xf32>
    %47 = vector.multi_reduction <add>, %46, %cst_12 [1] : vector<3x8xf32> to vector<3xf32>
    %48 = vector.shape_cast %47 : vector<3xf32> to vector<3x1xf32>
    %49 = tpu.reciprocal %48 {approx = true} : vector<3x1xf32> -> vector<3x1xf32>
    %50 = vector.broadcast %49 : vector<3x1xf32> to vector<3x8xf32>
    %51 = arith.mulf %46, %50 : vector<3x8xf32>
    %52 = arith.truncf %51 : vector<3x8xf32> to vector<3x8xbf16>
    %cst_13 = arith.constant dense<0.000000e+00> : vector<3x8xf32>
    %53 = tpu.matmul %52, %38, %cst_13 {dimension_numbers = #tpu.dot_dimension_numbers<[1], [0], [0], [1], [0, 0, 1, 1], [], []>} : vector<3x8xbf16>, vector<8x8xbf16>, vector<3x8xf32> -> vector<3x8xf32>
    %54 = vector.extract_strided_slice %1 {offsets = [0, 16], sizes = [3, 8], strides = [1, 1]} : vector<3x96xf32> to vector<3x8xf32>
    %55 = arith.truncf %54 : vector<3x8xf32> to vector<3x8xbf16>
    %56 = vector.extract_strided_slice %1 {offsets = [0, 48], sizes = [3, 8], strides = [1, 1]} : vector<3x96xf32> to vector<3x8xf32>
    %57 = vector.extract_strided_slice %3 {offsets = [0, 48], sizes = [5, 8], strides = [1, 1]} : vector<5x96xf32> to vector<5x8xf32>
    %58 = tpu.concatenate %56, %57 in 0 : vector<3x8xf32>, vector<5x8xf32> -> vector<8x8xf32>
    %59 = arith.truncf %58 : vector<8x8xf32> to vector<8x8xbf16>
    %60 = vector.extract_strided_slice %1 {offsets = [0, 80], sizes = [3, 8], strides = [1, 1]} : vector<3x96xf32> to vector<3x8xf32>
    %61 = vector.extract_strided_slice %3 {offsets = [0, 80], sizes = [5, 8], strides = [1, 1]} : vector<5x96xf32> to vector<5x8xf32>
    %62 = tpu.concatenate %60, %61 in 0 : vector<3x8xf32>, vector<5x8xf32> -> vector<8x8xf32>
    %63 = arith.truncf %62 : vector<8x8xf32> to vector<8x8xbf16>
    %cst_14 = arith.constant dense<0.000000e+00> : vector<3x8xf32>
    %64 = tpu.matmul %55, %59, %cst_14 {dimension_numbers = #tpu.dot_dimension_numbers<[1], [1], [0], [0], [0, 0, 1, 0], [], []>} : vector<3x8xbf16>, vector<8x8xbf16>, vector<3x8xf32> -> vector<3x8xf32>
    %cst_15 = arith.constant 0.353553385 : f32
    %65 = vector.broadcast %cst_15 : f32 to vector<3x8xf32>
    %66 = arith.mulf %64, %65 : vector<3x8xf32>
    %cst_16 = arith.constant dense<0xFF800000> : vector<3xf32>
    %67 = vector.multi_reduction <maximumf>, %66, %cst_16 [1] : vector<3x8xf32> to vector<3xf32>
    %68 = vector.shape_cast %67 : vector<3xf32> to vector<3x1xf32>
    %69 = vector.broadcast %68 : vector<3x1xf32> to vector<3x8xf32>
    %70 = arith.subf %66, %69 : vector<3x8xf32>
    %71 = math.exp %70 : vector<3x8xf32>
    %cst_17 = arith.constant dense<0.000000e+00> : vector<3xf32>
    %72 = vector.multi_reduction <add>, %71, %cst_17 [1] : vector<3x8xf32> to vector<3xf32>
    %73 = vector.shape_cast %72 : vector<3xf32> to vector<3x1xf32>
    %74 = tpu.reciprocal %73 {approx = true} : vector<3x1xf32> -> vector<3x1xf32>
    %75 = vector.broadcast %74 : vector<3x1xf32> to vector<3x8xf32>
    %76 = arith.mulf %71, %75 : vector<3x8xf32>
    %77 = arith.truncf %76 : vector<3x8xf32> to vector<3x8xbf16>
    %cst_18 = arith.constant dense<0.000000e+00> : vector<3x8xf32>
    %78 = tpu.matmul %77, %63, %cst_18 {dimension_numbers = #tpu.dot_dimension_numbers<[1], [0], [0], [1], [0, 0, 1, 1], [], []>} : vector<3x8xbf16>, vector<8x8xbf16>, vector<3x8xf32> -> vector<3x8xf32>
    %79 = vector.extract_strided_slice %1 {offsets = [0, 24], sizes = [3, 8], strides = [1, 1]} : vector<3x96xf32> to vector<3x8xf32>
    %80 = arith.truncf %79 : vector<3x8xf32> to vector<3x8xbf16>
    %81 = vector.extract_strided_slice %1 {offsets = [0, 56], sizes = [3, 8], strides = [1, 1]} : vector<3x96xf32> to vector<3x8xf32>
    %82 = vector.extract_strided_slice %3 {offsets = [0, 56], sizes = [5, 8], strides = [1, 1]} : vector<5x96xf32> to vector<5x8xf32>
    %83 = tpu.concatenate %81, %82 in 0 : vector<3x8xf32>, vector<5x8xf32> -> vector<8x8xf32>
    %84 = arith.truncf %83 : vector<8x8xf32> to vector<8x8xbf16>
    %85 = vector.extract_strided_slice %1 {offsets = [0, 88], sizes = [3, 8], strides = [1, 1]} : vector<3x96xf32> to vector<3x8xf32>
    %86 = vector.extract_strided_slice %3 {offsets = [0, 88], sizes = [5, 8], strides = [1, 1]} : vector<5x96xf32> to vector<5x8xf32>
    %87 = tpu.concatenate %85, %86 in 0 : vector<3x8xf32>, vector<5x8xf32> -> vector<8x8xf32>
    %88 = arith.truncf %87 : vector<8x8xf32> to vector<8x8xbf16>
    %cst_19 = arith.constant dense<0.000000e+00> : vector<3x8xf32>
    %89 = tpu.matmul %80, %84, %cst_19 {dimension_numbers = #tpu.dot_dimension_numbers<[1], [1], [0], [0], [0, 0, 1, 0], [], []>} : vector<3x8xbf16>, vector<8x8xbf16>, vector<3x8xf32> -> vector<3x8xf32>
    %cst_20 = arith.constant 0.353553385 : f32
    %90 = vector.broadcast %cst_20 : f32 to vector<3x8xf32>
    %91 = arith.mulf %89, %90 : vector<3x8xf32>
    %cst_21 = arith.constant dense<0xFF800000> : vector<3xf32>
    %92 = vector.multi_reduction <maximumf>, %91, %cst_21 [1] : vector<3x8xf32> to vector<3xf32>
    %93 = vector.shape_cast %92 : vector<3xf32> to vector<3x1xf32>
    %94 = vector.broadcast %93 : vector<3x1xf32> to vector<3x8xf32>
    %95 = arith.subf %91, %94 : vector<3x8xf32>
    %96 = math.exp %95 : vector<3x8xf32>
    %cst_22 = arith.constant dense<0.000000e+00> : vector<3xf32>
    %97 = vector.multi_reduction <add>, %96, %cst_22 [1] : vector<3x8xf32> to vector<3xf32>
    %98 = vector.shape_cast %97 : vector<3xf32> to vector<3x1xf32>
    %99 = tpu.reciprocal %98 {approx = true} : vector<3x1xf32> -> vector<3x1xf32>
    %100 = vector.broadcast %99 : vector<3x1xf32> to vector<3x8xf32>
    %101 = arith.mulf %96, %100 : vector<3x8xf32>
    %102 = arith.truncf %101 : vector<3x8xf32> to vector<3x8xbf16>
    %cst_23 = arith.constant dense<0.000000e+00> : vector<3x8xf32>
    %103 = tpu.matmul %102, %88, %cst_23 {dimension_numbers = #tpu.dot_dimension_numbers<[1], [0], [0], [1], [0, 0, 1, 1], [], []>} : vector<3x8xbf16>, vector<8x8xbf16>, vector<3x8xf32> -> vector<3x8xf32>
    %104 = tpu.concatenate %28, %53, %78, %103 in 1 : vector<3x8xf32>, vector<3x8xf32>, vector<3x8xf32>, vector<3x8xf32> -> vector<3x32xf32>
    %c0_24 = arith.constant 0 : index
    %c0_25 = arith.constant 0 : index
    %c0_26 = arith.constant 0 : index
    %105 = vector.load %arg3[%c0_24, %c0_25, %c0_26] : memref<1x3x32xf32, #tpu.memory_space<vmem>>, vector<1x3x32xf32>
    %106 = vector.shape_cast %105 : vector<1x3x32xf32> to vector<3x32xf32>
    %107 = vector.shape_cast %104 : vector<3x32xf32> to vector<1x3x32xf32>
    tpu.vector_store %arg3[%c0_24, %c0_25, %c0_26], %107 {strides = array<i32>} : memref<1x3x32xf32, #tpu.memory_space<vmem>>, vector<1x3x32xf32>,
    return
  }
  func.func @transform_0(%arg0: i32) -> (i32, i32, i32) {
    %c0_i32 = arith.constant 0 : i32
    %c0_i32_0 = arith.constant 0 : i32
    %c0_i32_1 = arith.constant 0 : i32
    return %arg0, %c0_i32, %c0_i32_0 : i32, i32, i32
  }
  func.func @transform_1(%arg0: i32) -> (i32, i32, i32) {
    %c0_i32 = arith.constant 0 : i32
    %c0_i32_0 = arith.constant 0 : i32
    %c0_i32_1 = arith.constant 0 : i32
    return %arg0, %c0_i32, %c0_i32_0 : i32, i32, i32
  }
  func.func @transform_2(%arg0: i32) -> (i32, i32, i32) {
    %c0_i32 = arith.constant 0 : i32
    %c0_i32_0 = arith.constant 0 : i32
    %c0_i32_1 = arith.constant 0 : i32
    return %arg0, %c0_i32, %c0_i32_0 : i32, i32, i32
  }
}

module attributes {stable_mosaic.version = 11 : i64} {
  func.func @_linear_kernel(%arg0: i32, %arg1: i32, %arg2: i32, %arg3: memref<6x32xf32, #tpu.memory_space<vmem>>, %arg4: memref<32x32xbf16, #tpu.memory_space<vmem>>, %arg5: memref<1x32xf32, #tpu.memory_space<vmem>>, %arg6: memref<6x32xf32, #tpu.memory_space<vmem>>, %arg7: memref<6x32xf32, #tpu.memory_space<vmem>>, %arg8: memref<6x32xf32, #tpu.memory_space<vmem>>) attributes {dimension_semantics = [#tpu.dimension_semantics<parallel>, #tpu.dimension_semantics<parallel>, #tpu.dimension_semantics<arbitrary>], iteration_bounds = array<i64: 1, 1, 1>, scalar_prefetch = 0 : i64, scratch_operands = 1 : i64, tpu.core_type = #tpu.core_type<tc>, window_params = [{transform_indices = @transform_0, window_bounds = array<i64: 6, 32>}, {transform_indices = @transform_1, window_bounds = array<i64: 32, 32>}, {transform_indices = @transform_2, window_bounds = array<i64: 1, 32>}, {transform_indices = @transform_3, window_bounds = array<i64: 6, 32>}, {transform_indices = @transform_4, window_bounds = array<i64: 6, 32>}]} {
    %c0_i32 = arith.constant 0 : i32
    %0 = arith.cmpi eq, %arg2, %c0_i32 : i32
    %1 = arith.extui %0 : i1 to i32
    %c0_i32_0 = arith.constant 0 : i32
    %2 = arith.cmpi ne, %1, %c0_i32_0 : i32
    scf.if %2 {
      %cst_10 = arith.constant 0.000000e+00 : f32
      %13 = vector.broadcast %cst_10 : f32 to vector<6x32xf32>
      %c0_11 = arith.constant 0 : index
      %c0_12 = arith.constant 0 : index
      %14 = vector.load %arg8[%c0_11, %c0_12] : memref<6x32xf32, #tpu.memory_space<vmem>>, vector<6x32xf32>
      tpu.vector_store %arg8[%c0_11, %c0_12], %13 {strides = array<i32>} : memref<6x32xf32, #tpu.memory_space<vmem>>, vector<6x32xf32>,
    } else {
    }
    %c0 = arith.constant 0 : index
    %c0_1 = arith.constant 0 : index
    %3 = vector.load %arg8[%c0, %c0_1] : memref<6x32xf32, #tpu.memory_space<vmem>>, vector<6x32xf32>
    %c0_2 = arith.constant 0 : index
    %c0_3 = arith.constant 0 : index
    %4 = vector.load %arg3[%c0_2, %c0_3] : memref<6x32xf32, #tpu.memory_space<vmem>>, vector<6x32xf32>
    %5 = arith.truncf %4 : vector<6x32xf32> to vector<6x32xbf16>
    %c0_4 = arith.constant 0 : index
    %c0_5 = arith.constant 0 : index
    %6 = vector.load %arg4[%c0_4, %c0_5] : memref<32x32xbf16, #tpu.memory_space<vmem>>, vector<32x32xbf16>
    %cst = arith.constant dense<0.000000e+00> : vector<6x32xf32>
    %7 = tpu.matmul %5, %6, %cst {dimension_numbers = #tpu.dot_dimension_numbers<[1], [0], [0], [1], [0, 0, 1, 1], [], []>} : vector<6x32xbf16>, vector<32x32xbf16>, vector<6x32xf32> -> vector<6x32xf32>
    %8 = arith.addf %3, %7 : vector<6x32xf32>
    %c0_6 = arith.constant 0 : index
    %c0_7 = arith.constant 0 : index
    %9 = vector.load %arg8[%c0_6, %c0_7] : memref<6x32xf32, #tpu.memory_space<vmem>>, vector<6x32xf32>
    tpu.vector_store %arg8[%c0_6, %c0_7], %8 {strides = array<i32>} : memref<6x32xf32, #tpu.memory_space<vmem>>, vector<6x32xf32>,
    %c0_i32_8 = arith.constant 0 : i32
    %10 = arith.cmpi eq, %arg2, %c0_i32_8 : i32
    %11 = arith.extui %10 : i1 to i32
    %c0_i32_9 = arith.constant 0 : i32
    %12 = arith.cmpi ne, %11, %c0_i32_9 : i32
    scf.if %12 {
      %c0_10 = arith.constant 0 : index
      %c0_11 = arith.constant 0 : index
      %13 = vector.load %arg8[%c0_10, %c0_11] : memref<6x32xf32, #tpu.memory_space<vmem>>, vector<6x32xf32>
      %c0_12 = arith.constant 0 : index
      %c0_13 = arith.constant 0 : index
      %14 = vector.load %arg5[%c0_12, %c0_13] : memref<1x32xf32, #tpu.memory_space<vmem>>, vector<1x32xf32>
      %15 = vector.broadcast %14 : vector<1x32xf32> to vector<6x32xf32>
      %16 = arith.addf %13, %15 : vector<6x32xf32>
      %c0_14 = arith.constant 0 : index
      %c0_15 = arith.constant 0 : index
      %17 = vector.load %arg6[%c0_14, %c0_15] : memref<6x32xf32, #tpu.memory_space<vmem>>, vector<6x32xf32>
      %18 = arith.addf %16, %17 : vector<6x32xf32>
      %c0_16 = arith.constant 0 : index
      %c0_17 = arith.constant 0 : index
      %19 = vector.load %arg7[%c0_16, %c0_17] : memref<6x32xf32, #tpu.memory_space<vmem>>, vector<6x32xf32>
      tpu.vector_store %arg7[%c0_16, %c0_17], %18 {strides = array<i32>} : memref<6x32xf32, #tpu.memory_space<vmem>>, vector<6x32xf32>,
    } else {
    }
    return
  }
  func.func @transform_0(%arg0: i32, %arg1: i32, %arg2: i32) -> (i32, i32) {
    %c0_i32 = arith.constant 0 : i32
    return %arg0, %arg2 : i32, i32
  }
  func.func @transform_1(%arg0: i32, %arg1: i32, %arg2: i32) -> (i32, i32) {
    %c0_i32 = arith.constant 0 : i32
    return %arg2, %arg1 : i32, i32
  }
  func.func @transform_2(%arg0: i32, %arg1: i32, %arg2: i32) -> (i32, i32) {
    %c0_i32 = arith.constant 0 : i32
    %c0_i32_0 = arith.constant 0 : i32
    return %c0_i32, %arg1 : i32, i32
  }
  func.func @transform_3(%arg0: i32, %arg1: i32, %arg2: i32) -> (i32, i32) {
    %c0_i32 = arith.constant 0 : i32
    return %arg0, %arg1 : i32, i32
  }
  func.func @transform_4(%arg0: i32, %arg1: i32, %arg2: i32) -> (i32, i32) {
    %c0_i32 = arith.constant 0 : i32
    return %arg0, %arg1 : i32, i32
  }
}

module attributes {stable_mosaic.version = 11 : i64} {
  func.func @_ln_linear_kernel(%arg0: i32, %arg1: i32, %arg2: memref<6x32xf32, #tpu.memory_space<vmem>>, %arg3: memref<1x32xf32, #tpu.memory_space<vmem>>, %arg4: memref<1x32xf32, #tpu.memory_space<vmem>>, %arg5: memref<32x128xbf16, #tpu.memory_space<vmem>>, %arg6: memref<1x128xf32, #tpu.memory_space<vmem>>, %arg7: memref<6x128xf32, #tpu.memory_space<vmem>>) attributes {dimension_semantics = [#tpu.dimension_semantics<parallel>, #tpu.dimension_semantics<parallel>], iteration_bounds = array<i64: 1, 1>, scalar_prefetch = 0 : i64, scratch_operands = 0 : i64, tpu.core_type = #tpu.core_type<tc>, window_params = [{transform_indices = @transform_0, window_bounds = array<i64: 6, 32>}, {pipeline_mode = #tpu.pipeline_mode<synchronous>, transform_indices = @transform_1, window_bounds = array<i64: 1, 32>}, {pipeline_mode = #tpu.pipeline_mode<synchronous>, transform_indices = @transform_2, window_bounds = array<i64: 1, 32>}, {transform_indices = @transform_3, window_bounds = array<i64: 32, 128>}, {transform_indices = @transform_4, window_bounds = array<i64: 1, 128>}, {transform_indices = @transform_5, window_bounds = array<i64: 6, 128>}]} {
    %c0 = arith.constant 0 : index
    %c0_0 = arith.constant 0 : index
    %0 = vector.load %arg2[%c0, %c0_0] : memref<6x32xf32, #tpu.memory_space<vmem>>, vector<6x32xf32>
    %cst = arith.constant dense<0.000000e+00> : vector<6xf32>
    %1 = vector.multi_reduction <add>, %0, %cst [1] : vector<6x32xf32> to vector<6xf32>
    %2 = vector.shape_cast %1 : vector<6xf32> to vector<6x1xf32>
    %cst_1 = arith.constant 3.200000e+01 : f32
    %3 = vector.broadcast %cst_1 : f32 to vector<6x1xf32>
    %4 = arith.divf %2, %3 : vector<6x1xf32>
    %5 = vector.broadcast %4 : vector<6x1xf32> to vector<6x32xf32>
    %6 = arith.subf %0, %5 : vector<6x32xf32>
    %7 = arith.mulf %6, %6 : vector<6x32xf32>
    %cst_2 = arith.constant dense<0.000000e+00> : vector<6xf32>
    %8 = vector.multi_reduction <add>, %7, %cst_2 [1] : vector<6x32xf32> to vector<6xf32>
    %9 = vector.shape_cast %8 : vector<6xf32> to vector<6x1xf32>
    %cst_3 = arith.constant 3.200000e+01 : f32
    %10 = vector.broadcast %cst_3 : f32 to vector<6x1xf32>
    %11 = arith.divf %9, %10 : vector<6x1xf32>
    %cst_4 = arith.constant 9.99999997E-7 : f32
    %12 = vector.broadcast %cst_4 : f32 to vector<6x1xf32>
    %13 = arith.addf %11, %12 : vector<6x1xf32>
    %14 = math.rsqrt %13 : vector<6x1xf32>
    %15 = vector.broadcast %14 : vector<6x1xf32> to vector<6x32xf32>
    %16 = arith.mulf %6, %15 : vector<6x32xf32>
    %c0_5 = arith.constant 0 : index
    %c0_6 = arith.constant 0 : index
    %17 = vector.load %arg3[%c0_5, %c0_6] : memref<1x32xf32, #tpu.memory_space<vmem>>, vector<1x32xf32>
    %18 = vector.broadcast %17 : vector<1x32xf32> to vector<6x32xf32>
    %19 = arith.mulf %16, %18 : vector<6x32xf32>
    %c0_7 = arith.constant 0 : index
    %c0_8 = arith.constant 0 : index
    %20 = vector.load %arg4[%c0_7, %c0_8] : memref<1x32xf32, #tpu.memory_space<vmem>>, vector<1x32xf32>
    %21 = vector.broadcast %20 : vector<1x32xf32> to vector<6x32xf32>
    %22 = arith.addf %19, %21 : vector<6x32xf32>
    %23 = arith.truncf %22 : vector<6x32xf32> to vector<6x32xbf16>
    %c0_9 = arith.constant 0 : index
    %c0_10 = arith.constant 0 : index
    %24 = vector.load %arg5[%c0_9, %c0_10] : memref<32x128xbf16, #tpu.memory_space<vmem>>, vector<32x128xbf16>
    %cst_11 = arith.constant dense<0.000000e+00> : vector<6x128xf32>
    %25 = tpu.matmul %23, %24, %cst_11 {dimension_numbers = #tpu.dot_dimension_numbers<[1], [0], [0], [1], [0, 0, 1, 1], [], []>} : vector<6x32xbf16>, vector<32x128xbf16>, vector<6x128xf32> -> vector<6x128xf32>
    %c0_12 = arith.constant 0 : index
    %c0_13 = arith.constant 0 : index
    %26 = vector.load %arg6[%c0_12, %c0_13] : memref<1x128xf32, #tpu.memory_space<vmem>>, vector<1x128xf32>
    %27 = vector.broadcast %26 : vector<1x128xf32> to vector<6x128xf32>
    %28 = arith.addf %25, %27 : vector<6x128xf32>
    %cst_14 = arith.constant 5.000000e-01 : f32
    %29 = vector.broadcast %cst_14 : f32 to vector<6x128xf32>
    %30 = arith.mulf %29, %28 : vector<6x128xf32>
    %cst_15 = arith.constant 4.471500e-02 : f32
    %31 = vector.broadcast %cst_15 : f32 to vector<6x128xf32>
    %32 = arith.mulf %31, %28 : vector<6x128xf32>
    %33 = arith.mulf %32, %28 : vector<6x128xf32>
    %34 = arith.mulf %33, %28 : vector<6x128xf32>
    %35 = arith.addf %28, %34 : vector<6x128xf32>
    %cst_16 = arith.constant 0.797884583 : f32
    %36 = vector.broadcast %cst_16 : f32 to vector<6x128xf32>
    %37 = arith.mulf %36, %35 : vector<6x128xf32>
    %38 = math.tanh %37 : vector<6x128xf32>
    %cst_17 = arith.constant 1.000000e+00 : f32
    %39 = vector.broadcast %cst_17 : f32 to vector<6x128xf32>
    %40 = arith.addf %39, %38 : vector<6x128xf32>
    %41 = arith.mulf %30, %40 : vector<6x128xf32>
    %c0_18 = arith.constant 0 : index
    %c0_19 = arith.constant 0 : index
    %42 = vector.load %arg7[%c0_18, %c0_19] : memref<6x128xf32, #tpu.memory_space<vmem>>, vector<6x128xf32>
    tpu.vector_store %arg7[%c0_18, %c0_19], %41 {strides = array<i32>} : memref<6x128xf32, #tpu.memory_space<vmem>>, vector<6x128xf32>,
    return
  }
  func.func @transform_0(%arg0: i32, %arg1: i32) -> (i32, i32) {
    %c0_i32 = arith.constant 0 : i32
    %c0_i32_0 = arith.constant 0 : i32
    return %arg0, %c0_i32 : i32, i32
  }
  func.func @transform_1(%arg0: i32, %arg1: i32) -> (i32, i32) {
    %c0_i32 = arith.constant 0 : i32
    %c0_i32_0 = arith.constant 0 : i32
    %c0_i32_1 = arith.constant 0 : i32
    return %c0_i32, %c0_i32_0 : i32, i32
  }
  func.func @transform_2(%arg0: i32, %arg1: i32) -> (i32, i32) {
    %c0_i32 = arith.constant 0 : i32
    %c0_i32_0 = arith.constant 0 : i32
    %c0_i32_1 = arith.constant 0 : i32
    return %c0_i32, %c0_i32_0 : i32, i32
  }
  func.func @transform_3(%arg0: i32, %arg1: i32) -> (i32, i32) {
    %c0_i32 = arith.constant 0 : i32
    %c0_i32_0 = arith.constant 0 : i32
    return %c0_i32, %arg1 : i32, i32
  }
  func.func @transform_4(%arg0: i32, %arg1: i32) -> (i32, i32) {
    %c0_i32 = arith.constant 0 : i32
    %c0_i32_0 = arith.constant 0 : i32
    return %c0_i32, %arg1 : i32, i32
  }
  func.func @transform_5(%arg0: i32, %arg1: i32) -> (i32, i32) {
    %c0_i32 = arith.constant 0 : i32
    return %arg0, %arg1 : i32, i32
  }
}

module attributes {stable_mosaic.version = 11 : i64} {
  func.func @_ln_linear_kernel(%arg0: i32, %arg1: i32, %arg2: memref<6x32xf32, #tpu.memory_space<vmem>>, %arg3: memref<1x32xf32, #tpu.memory_space<vmem>>, %arg4: memref<1x32xf32, #tpu.memory_space<vmem>>, %arg5: memref<32x96xbf16, #tpu.memory_space<vmem>>, %arg6: memref<1x96xf32, #tpu.memory_space<vmem>>, %arg7: memref<6x96xf32, #tpu.memory_space<vmem>>) attributes {dimension_semantics = [#tpu.dimension_semantics<parallel>, #tpu.dimension_semantics<parallel>], iteration_bounds = array<i64: 1, 1>, scalar_prefetch = 0 : i64, scratch_operands = 0 : i64, tpu.core_type = #tpu.core_type<tc>, window_params = [{transform_indices = @transform_0, window_bounds = array<i64: 6, 32>}, {pipeline_mode = #tpu.pipeline_mode<synchronous>, transform_indices = @transform_1, window_bounds = array<i64: 1, 32>}, {pipeline_mode = #tpu.pipeline_mode<synchronous>, transform_indices = @transform_2, window_bounds = array<i64: 1, 32>}, {transform_indices = @transform_3, window_bounds = array<i64: 32, 96>}, {transform_indices = @transform_4, window_bounds = array<i64: 1, 96>}, {transform_indices = @transform_5, window_bounds = array<i64: 6, 96>}]} {
    %c0 = arith.constant 0 : index
    %c0_0 = arith.constant 0 : index
    %0 = vector.load %arg2[%c0, %c0_0] : memref<6x32xf32, #tpu.memory_space<vmem>>, vector<6x32xf32>
    %cst = arith.constant dense<0.000000e+00> : vector<6xf32>
    %1 = vector.multi_reduction <add>, %0, %cst [1] : vector<6x32xf32> to vector<6xf32>
    %2 = vector.shape_cast %1 : vector<6xf32> to vector<6x1xf32>
    %cst_1 = arith.constant 3.200000e+01 : f32
    %3 = vector.broadcast %cst_1 : f32 to vector<6x1xf32>
    %4 = arith.divf %2, %3 : vector<6x1xf32>
    %5 = vector.broadcast %4 : vector<6x1xf32> to vector<6x32xf32>
    %6 = arith.subf %0, %5 : vector<6x32xf32>
    %7 = arith.mulf %6, %6 : vector<6x32xf32>
    %cst_2 = arith.constant dense<0.000000e+00> : vector<6xf32>
    %8 = vector.multi_reduction <add>, %7, %cst_2 [1] : vector<6x32xf32> to vector<6xf32>
    %9 = vector.shape_cast %8 : vector<6xf32> to vector<6x1xf32>
    %cst_3 = arith.constant 3.200000e+01 : f32
    %10 = vector.broadcast %cst_3 : f32 to vector<6x1xf32>
    %11 = arith.divf %9, %10 : vector<6x1xf32>
    %cst_4 = arith.constant 9.99999997E-7 : f32
    %12 = vector.broadcast %cst_4 : f32 to vector<6x1xf32>
    %13 = arith.addf %11, %12 : vector<6x1xf32>
    %14 = math.rsqrt %13 : vector<6x1xf32>
    %15 = vector.broadcast %14 : vector<6x1xf32> to vector<6x32xf32>
    %16 = arith.mulf %6, %15 : vector<6x32xf32>
    %c0_5 = arith.constant 0 : index
    %c0_6 = arith.constant 0 : index
    %17 = vector.load %arg3[%c0_5, %c0_6] : memref<1x32xf32, #tpu.memory_space<vmem>>, vector<1x32xf32>
    %18 = vector.broadcast %17 : vector<1x32xf32> to vector<6x32xf32>
    %19 = arith.mulf %16, %18 : vector<6x32xf32>
    %c0_7 = arith.constant 0 : index
    %c0_8 = arith.constant 0 : index
    %20 = vector.load %arg4[%c0_7, %c0_8] : memref<1x32xf32, #tpu.memory_space<vmem>>, vector<1x32xf32>
    %21 = vector.broadcast %20 : vector<1x32xf32> to vector<6x32xf32>
    %22 = arith.addf %19, %21 : vector<6x32xf32>
    %23 = arith.truncf %22 : vector<6x32xf32> to vector<6x32xbf16>
    %c0_9 = arith.constant 0 : index
    %c0_10 = arith.constant 0 : index
    %24 = vector.load %arg5[%c0_9, %c0_10] : memref<32x96xbf16, #tpu.memory_space<vmem>>, vector<32x96xbf16>
    %cst_11 = arith.constant dense<0.000000e+00> : vector<6x96xf32>
    %25 = tpu.matmul %23, %24, %cst_11 {dimension_numbers = #tpu.dot_dimension_numbers<[1], [0], [0], [1], [0, 0, 1, 1], [], []>} : vector<6x32xbf16>, vector<32x96xbf16>, vector<6x96xf32> -> vector<6x96xf32>
    %c0_12 = arith.constant 0 : index
    %c0_13 = arith.constant 0 : index
    %26 = vector.load %arg6[%c0_12, %c0_13] : memref<1x96xf32, #tpu.memory_space<vmem>>, vector<1x96xf32>
    %27 = vector.broadcast %26 : vector<1x96xf32> to vector<6x96xf32>
    %28 = arith.addf %25, %27 : vector<6x96xf32>
    %c0_14 = arith.constant 0 : index
    %c0_15 = arith.constant 0 : index
    %29 = vector.load %arg7[%c0_14, %c0_15] : memref<6x96xf32, #tpu.memory_space<vmem>>, vector<6x96xf32>
    tpu.vector_store %arg7[%c0_14, %c0_15], %28 {strides = array<i32>} : memref<6x96xf32, #tpu.memory_space<vmem>>, vector<6x96xf32>,
    return
  }
  func.func @transform_0(%arg0: i32, %arg1: i32) -> (i32, i32) {
    %c0_i32 = arith.constant 0 : i32
    %c0_i32_0 = arith.constant 0 : i32
    return %arg0, %c0_i32 : i32, i32
  }
  func.func @transform_1(%arg0: i32, %arg1: i32) -> (i32, i32) {
    %c0_i32 = arith.constant 0 : i32
    %c0_i32_0 = arith.constant 0 : i32
    %c0_i32_1 = arith.constant 0 : i32
    return %c0_i32, %c0_i32_0 : i32, i32
  }
  func.func @transform_2(%arg0: i32, %arg1: i32) -> (i32, i32) {
    %c0_i32 = arith.constant 0 : i32
    %c0_i32_0 = arith.constant 0 : i32
    %c0_i32_1 = arith.constant 0 : i32
    return %c0_i32, %c0_i32_0 : i32, i32
  }
  func.func @transform_3(%arg0: i32, %arg1: i32) -> (i32, i32) {
    %c0_i32 = arith.constant 0 : i32
    %c0_i32_0 = arith.constant 0 : i32
    return %c0_i32, %arg1 : i32, i32
  }
  func.func @transform_4(%arg0: i32, %arg1: i32) -> (i32, i32) {
    %c0_i32 = arith.constant 0 : i32
    %c0_i32_0 = arith.constant 0 : i32
    return %c0_i32, %arg1 : i32, i32
  }
  func.func @transform_5(%arg0: i32, %arg1: i32) -> (i32, i32) {
    %c0_i32 = arith.constant 0 : i32
    return %arg0, %arg1 : i32, i32
  }
}

module attributes {stable_mosaic.version = 11 : i64} {
  func.func @_linear_kernel(%arg0: i32, %arg1: i32, %arg2: i32, %arg3: memref<6x128xf32, #tpu.memory_space<vmem>>, %arg4: memref<128x32xbf16, #tpu.memory_space<vmem>>, %arg5: memref<1x32xf32, #tpu.memory_space<vmem>>, %arg6: memref<6x32xf32, #tpu.memory_space<vmem>>, %arg7: memref<6x32xf32, #tpu.memory_space<vmem>>, %arg8: memref<6x32xf32, #tpu.memory_space<vmem>>) attributes {dimension_semantics = [#tpu.dimension_semantics<parallel>, #tpu.dimension_semantics<parallel>, #tpu.dimension_semantics<arbitrary>], iteration_bounds = array<i64: 1, 1, 1>, scalar_prefetch = 0 : i64, scratch_operands = 1 : i64, tpu.core_type = #tpu.core_type<tc>, window_params = [{transform_indices = @transform_0, window_bounds = array<i64: 6, 128>}, {transform_indices = @transform_1, window_bounds = array<i64: 128, 32>}, {transform_indices = @transform_2, window_bounds = array<i64: 1, 32>}, {transform_indices = @transform_3, window_bounds = array<i64: 6, 32>}, {transform_indices = @transform_4, window_bounds = array<i64: 6, 32>}]} {
    %c0_i32 = arith.constant 0 : i32
    %0 = arith.cmpi eq, %arg2, %c0_i32 : i32
    %1 = arith.extui %0 : i1 to i32
    %c0_i32_0 = arith.constant 0 : i32
    %2 = arith.cmpi ne, %1, %c0_i32_0 : i32
    scf.if %2 {
      %cst_10 = arith.constant 0.000000e+00 : f32
      %13 = vector.broadcast %cst_10 : f32 to vector<6x32xf32>
      %c0_11 = arith.constant 0 : index
      %c0_12 = arith.constant 0 : index
      %14 = vector.load %arg8[%c0_11, %c0_12] : memref<6x32xf32, #tpu.memory_space<vmem>>, vector<6x32xf32>
      tpu.vector_store %arg8[%c0_11, %c0_12], %13 {strides = array<i32>} : memref<6x32xf32, #tpu.memory_space<vmem>>, vector<6x32xf32>,
    } else {
    }
    %c0 = arith.constant 0 : index
    %c0_1 = arith.constant 0 : index
    %3 = vector.load %arg8[%c0, %c0_1] : memref<6x32xf32, #tpu.memory_space<vmem>>, vector<6x32xf32>
    %c0_2 = arith.constant 0 : index
    %c0_3 = arith.constant 0 : index
    %4 = vector.load %arg3[%c0_2, %c0_3] : memref<6x128xf32, #tpu.memory_space<vmem>>, vector<6x128xf32>
    %5 = arith.truncf %4 : vector<6x128xf32> to vector<6x128xbf16>
    %c0_4 = arith.constant 0 : index
    %c0_5 = arith.constant 0 : index
    %6 = vector.load %arg4[%c0_4, %c0_5] : memref<128x32xbf16, #tpu.memory_space<vmem>>, vector<128x32xbf16>
    %cst = arith.constant dense<0.000000e+00> : vector<6x32xf32>
    %7 = tpu.matmul %5, %6, %cst {dimension_numbers = #tpu.dot_dimension_numbers<[1], [0], [0], [1], [0, 0, 1, 1], [], []>} : vector<6x128xbf16>, vector<128x32xbf16>, vector<6x32xf32> -> vector<6x32xf32>
    %8 = arith.addf %3, %7 : vector<6x32xf32>
    %c0_6 = arith.constant 0 : index
    %c0_7 = arith.constant 0 : index
    %9 = vector.load %arg8[%c0_6, %c0_7] : memref<6x32xf32, #tpu.memory_space<vmem>>, vector<6x32xf32>
    tpu.vector_store %arg8[%c0_6, %c0_7], %8 {strides = array<i32>} : memref<6x32xf32, #tpu.memory_space<vmem>>, vector<6x32xf32>,
    %c0_i32_8 = arith.constant 0 : i32
    %10 = arith.cmpi eq, %arg2, %c0_i32_8 : i32
    %11 = arith.extui %10 : i1 to i32
    %c0_i32_9 = arith.constant 0 : i32
    %12 = arith.cmpi ne, %11, %c0_i32_9 : i32
    scf.if %12 {
      %c0_10 = arith.constant 0 : index
      %c0_11 = arith.constant 0 : index
      %13 = vector.load %arg8[%c0_10, %c0_11] : memref<6x32xf32, #tpu.memory_space<vmem>>, vector<6x32xf32>
      %c0_12 = arith.constant 0 : index
      %c0_13 = arith.constant 0 : index
      %14 = vector.load %arg5[%c0_12, %c0_13] : memref<1x32xf32, #tpu.memory_space<vmem>>, vector<1x32xf32>
      %15 = vector.broadcast %14 : vector<1x32xf32> to vector<6x32xf32>
      %16 = arith.addf %13, %15 : vector<6x32xf32>
      %c0_14 = arith.constant 0 : index
      %c0_15 = arith.constant 0 : index
      %17 = vector.load %arg6[%c0_14, %c0_15] : memref<6x32xf32, #tpu.memory_space<vmem>>, vector<6x32xf32>
      %18 = arith.addf %16, %17 : vector<6x32xf32>
      %c0_16 = arith.constant 0 : index
      %c0_17 = arith.constant 0 : index
      %19 = vector.load %arg7[%c0_16, %c0_17] : memref<6x32xf32, #tpu.memory_space<vmem>>, vector<6x32xf32>
      tpu.vector_store %arg7[%c0_16, %c0_17], %18 {strides = array<i32>} : memref<6x32xf32, #tpu.memory_space<vmem>>, vector<6x32xf32>,
    } else {
    }
    return
  }
  func.func @transform_0(%arg0: i32, %arg1: i32, %arg2: i32) -> (i32, i32) {
    %c0_i32 = arith.constant 0 : i32
    return %arg0, %arg2 : i32, i32
  }
  func.func @transform_1(%arg0: i32, %arg1: i32, %arg2: i32) -> (i32, i32) {
    %c0_i32 = arith.constant 0 : i32
    return %arg2, %arg1 : i32, i32
  }
  func.func @transform_2(%arg0: i32, %arg1: i32, %arg2: i32) -> (i32, i32) {
    %c0_i32 = arith.constant 0 : i32
    %c0_i32_0 = arith.constant 0 : i32
    return %c0_i32, %arg1 : i32, i32
  }
  func.func @transform_3(%arg0: i32, %arg1: i32, %arg2: i32) -> (i32, i32) {
    %c0_i32 = arith.constant 0 : i32
    return %arg0, %arg1 : i32, i32
  }
  func.func @transform_4(%arg0: i32, %arg1: i32, %arg2: i32) -> (i32, i32) {
    %c0_i32 = arith.constant 0 : i32
    return %arg0, %arg1 : i32, i32
  }
}

module attributes {stable_mosaic.version = 11 : i64} {
  func.func @_ln_kernel(%arg0: i32, %arg1: memref<6x32xf32, #tpu.memory_space<vmem>>, %arg2: memref<1x32xf32, #tpu.memory_space<vmem>>, %arg3: memref<1x32xf32, #tpu.memory_space<vmem>>, %arg4: memref<6x32xf32, #tpu.memory_space<vmem>>) attributes {dimension_semantics = [#tpu.dimension_semantics<parallel>], iteration_bounds = array<i64: 1>, scalar_prefetch = 0 : i64, scratch_operands = 0 : i64, tpu.core_type = #tpu.core_type<tc>, window_params = [{transform_indices = @transform_0, window_bounds = array<i64: 6, 32>}, {pipeline_mode = #tpu.pipeline_mode<synchronous>, transform_indices = @transform_1, window_bounds = array<i64: 1, 32>}, {pipeline_mode = #tpu.pipeline_mode<synchronous>, transform_indices = @transform_2, window_bounds = array<i64: 1, 32>}, {transform_indices = @transform_3, window_bounds = array<i64: 6, 32>}]} {
    %c0 = arith.constant 0 : index
    %c0_0 = arith.constant 0 : index
    %0 = vector.load %arg1[%c0, %c0_0] : memref<6x32xf32, #tpu.memory_space<vmem>>, vector<6x32xf32>
    %cst = arith.constant dense<0.000000e+00> : vector<6xf32>
    %1 = vector.multi_reduction <add>, %0, %cst [1] : vector<6x32xf32> to vector<6xf32>
    %2 = vector.shape_cast %1 : vector<6xf32> to vector<6x1xf32>
    %cst_1 = arith.constant 3.200000e+01 : f32
    %3 = vector.broadcast %cst_1 : f32 to vector<6x1xf32>
    %4 = arith.divf %2, %3 : vector<6x1xf32>
    %5 = vector.broadcast %4 : vector<6x1xf32> to vector<6x32xf32>
    %6 = arith.subf %0, %5 : vector<6x32xf32>
    %7 = arith.mulf %6, %6 : vector<6x32xf32>
    %cst_2 = arith.constant dense<0.000000e+00> : vector<6xf32>
    %8 = vector.multi_reduction <add>, %7, %cst_2 [1] : vector<6x32xf32> to vector<6xf32>
    %9 = vector.shape_cast %8 : vector<6xf32> to vector<6x1xf32>
    %cst_3 = arith.constant 3.200000e+01 : f32
    %10 = vector.broadcast %cst_3 : f32 to vector<6x1xf32>
    %11 = arith.divf %9, %10 : vector<6x1xf32>
    %cst_4 = arith.constant 9.99999997E-7 : f32
    %12 = vector.broadcast %cst_4 : f32 to vector<6x1xf32>
    %13 = arith.addf %11, %12 : vector<6x1xf32>
    %14 = math.rsqrt %13 : vector<6x1xf32>
    %15 = vector.broadcast %14 : vector<6x1xf32> to vector<6x32xf32>
    %16 = arith.mulf %6, %15 : vector<6x32xf32>
    %c0_5 = arith.constant 0 : index
    %c0_6 = arith.constant 0 : index
    %17 = vector.load %arg2[%c0_5, %c0_6] : memref<1x32xf32, #tpu.memory_space<vmem>>, vector<1x32xf32>
    %18 = vector.broadcast %17 : vector<1x32xf32> to vector<6x32xf32>
    %19 = arith.mulf %16, %18 : vector<6x32xf32>
    %c0_7 = arith.constant 0 : index
    %c0_8 = arith.constant 0 : index
    %20 = vector.load %arg3[%c0_7, %c0_8] : memref<1x32xf32, #tpu.memory_space<vmem>>, vector<1x32xf32>
    %21 = vector.broadcast %20 : vector<1x32xf32> to vector<6x32xf32>
    %22 = arith.addf %19, %21 : vector<6x32xf32>
    %c0_9 = arith.constant 0 : index
    %c0_10 = arith.constant 0 : index
    %23 = vector.load %arg4[%c0_9, %c0_10] : memref<6x32xf32, #tpu.memory_space<vmem>>, vector<6x32xf32>
    tpu.vector_store %arg4[%c0_9, %c0_10], %22 {strides = array<i32>} : memref<6x32xf32, #tpu.memory_space<vmem>>, vector<6x32xf32>,
    return
  }
  func.func @transform_0(%arg0: i32) -> (i32, i32) {
    %c0_i32 = arith.constant 0 : i32
    %c0_i32_0 = arith.constant 0 : i32
    return %arg0, %c0_i32 : i32, i32
  }
  func.func @transform_1(%arg0: i32) -> (i32, i32) {
    %c0_i32 = arith.constant 0 : i32
    %c0_i32_0 = arith.constant 0 : i32
    %c0_i32_1 = arith.constant 0 : i32
    return %c0_i32, %c0_i32_0 : i32, i32
  }
  func.func @transform_2(%arg0: i32) -> (i32, i32) {
    %c0_i32 = arith.constant 0 : i32
    %c0_i32_0 = arith.constant 0 : i32
    %c0_i32_1 = arith.constant 0 : i32
    return %c0_i32, %c0_i32_0 : i32, i32
  }
  func.func @transform_3(%arg0: i32) -> (i32, i32) {
    %c0_i32 = arith.constant 0 : i32
    %c0_i32_0 = arith.constant 0 : i32
    return %arg0, %c0_i32 : i32, i32
  }
}

module attributes {stable_mosaic.version = 11 : i64} {
  func.func @_linear_kernel(%arg0: i32, %arg1: i32, %arg2: i32, %arg3: memref<2x32xf32, #tpu.memory_space<vmem>>, %arg4: memref<32x128xbf16, #tpu.memory_space<vmem>>, %arg5: memref<1x128xf32, #tpu.memory_space<vmem>>, %arg6: memref<2x128xf32, #tpu.memory_space<vmem>>, %arg7: memref<2x128xf32, #tpu.memory_space<vmem>>) attributes {dimension_semantics = [#tpu.dimension_semantics<parallel>, #tpu.dimension_semantics<parallel>, #tpu.dimension_semantics<arbitrary>], iteration_bounds = array<i64: 1, 1, 1>, scalar_prefetch = 0 : i64, scratch_operands = 1 : i64, tpu.core_type = #tpu.core_type<tc>, window_params = [{transform_indices = @transform_0, window_bounds = array<i64: 2, 32>}, {transform_indices = @transform_1, window_bounds = array<i64: 32, 128>}, {transform_indices = @transform_2, window_bounds = array<i64: 1, 128>}, {transform_indices = @transform_3, window_bounds = array<i64: 2, 128>}]} {
    %c0_i32 = arith.constant 0 : i32
    %0 = arith.cmpi eq, %arg2, %c0_i32 : i32
    %1 = arith.extui %0 : i1 to i32
    %c0_i32_0 = arith.constant 0 : i32
    %2 = arith.cmpi ne, %1, %c0_i32_0 : i32
    scf.if %2 {
      %cst_10 = arith.constant 0.000000e+00 : f32
      %13 = vector.broadcast %cst_10 : f32 to vector<2x128xf32>
      %c0_11 = arith.constant 0 : index
      %c0_12 = arith.constant 0 : index
      %14 = vector.load %arg7[%c0_11, %c0_12] : memref<2x128xf32, #tpu.memory_space<vmem>>, vector<2x128xf32>
      tpu.vector_store %arg7[%c0_11, %c0_12], %13 {strides = array<i32>} : memref<2x128xf32, #tpu.memory_space<vmem>>, vector<2x128xf32>,
    } else {
    }
    %c0 = arith.constant 0 : index
    %c0_1 = arith.constant 0 : index
    %3 = vector.load %arg7[%c0, %c0_1] : memref<2x128xf32, #tpu.memory_space<vmem>>, vector<2x128xf32>
    %c0_2 = arith.constant 0 : index
    %c0_3 = arith.constant 0 : index
    %4 = vector.load %arg3[%c0_2, %c0_3] : memref<2x32xf32, #tpu.memory_space<vmem>>, vector<2x32xf32>
    %5 = arith.truncf %4 : vector<2x32xf32> to vector<2x32xbf16>
    %c0_4 = arith.constant 0 : index
    %c0_5 = arith.constant 0 : index
    %6 = vector.load %arg4[%c0_4, %c0_5] : memref<32x128xbf16, #tpu.memory_space<vmem>>, vector<32x128xbf16>
    %cst = arith.constant dense<0.000000e+00> : vector<2x128xf32>
    %7 = tpu.matmul %5, %6, %cst {dimension_numbers = #tpu.dot_dimension_numbers<[1], [0], [0], [1], [0, 0, 1, 1], [], []>} : vector<2x32xbf16>, vector<32x128xbf16>, vector<2x128xf32> -> vector<2x128xf32>
    %8 = arith.addf %3, %7 : vector<2x128xf32>
    %c0_6 = arith.constant 0 : index
    %c0_7 = arith.constant 0 : index
    %9 = vector.load %arg7[%c0_6, %c0_7] : memref<2x128xf32, #tpu.memory_space<vmem>>, vector<2x128xf32>
    tpu.vector_store %arg7[%c0_6, %c0_7], %8 {strides = array<i32>} : memref<2x128xf32, #tpu.memory_space<vmem>>, vector<2x128xf32>,
    %c0_i32_8 = arith.constant 0 : i32
    %10 = arith.cmpi eq, %arg2, %c0_i32_8 : i32
    %11 = arith.extui %10 : i1 to i32
    %c0_i32_9 = arith.constant 0 : i32
    %12 = arith.cmpi ne, %11, %c0_i32_9 : i32
    scf.if %12 {
      %c0_10 = arith.constant 0 : index
      %c0_11 = arith.constant 0 : index
      %13 = vector.load %arg7[%c0_10, %c0_11] : memref<2x128xf32, #tpu.memory_space<vmem>>, vector<2x128xf32>
      %c0_12 = arith.constant 0 : index
      %c0_13 = arith.constant 0 : index
      %14 = vector.load %arg5[%c0_12, %c0_13] : memref<1x128xf32, #tpu.memory_space<vmem>>, vector<1x128xf32>
      %15 = vector.broadcast %14 : vector<1x128xf32> to vector<2x128xf32>
      %16 = arith.addf %13, %15 : vector<2x128xf32>
      %c0_14 = arith.constant 0 : index
      %c0_15 = arith.constant 0 : index
      %17 = vector.load %arg6[%c0_14, %c0_15] : memref<2x128xf32, #tpu.memory_space<vmem>>, vector<2x128xf32>
      tpu.vector_store %arg6[%c0_14, %c0_15], %16 {strides = array<i32>} : memref<2x128xf32, #tpu.memory_space<vmem>>, vector<2x128xf32>,
    } else {
    }
    return
  }
  func.func @transform_0(%arg0: i32, %arg1: i32, %arg2: i32) -> (i32, i32) {
    %c0_i32 = arith.constant 0 : i32
    return %arg0, %arg2 : i32, i32
  }
  func.func @transform_1(%arg0: i32, %arg1: i32, %arg2: i32) -> (i32, i32) {
    %c0_i32 = arith.constant 0 : i32
    return %arg2, %arg1 : i32, i32
  }
  func.func @transform_2(%arg0: i32, %arg1: i32, %arg2: i32) -> (i32, i32) {
    %c0_i32 = arith.constant 0 : i32
    %c0_i32_0 = arith.constant 0 : i32
    return %c0_i32, %arg1 : i32, i32
  }
  func.func @transform_3(%arg0: i32, %arg1: i32, %arg2: i32) -> (i32, i32) {
    %c0_i32 = arith.constant 0 : i32
    return %arg0, %arg1 : i32, i32
  }
}

</mosaic_0001>

<bundles_post_ra>
// kernel: _lambda_.24
= control target key start
LH: loop header
LB: loop body
LE: loop exit
PB: predicated region body
PF: predicated region fallthrough
CT: control target
= control target key end

     0   :  { %vm19_vm0 = vcmask 261120   ;;  %v214_v0 = vmov 0   ;;  %v215_v2 = vmov 0.0   ;;  %vm122_vm1 = vcmask 523264   ;;  %s287_s1 = inlined_call_operand.vmem [shape: bf16[192,32], index: 1, kind: input, shape index: {}]   ;;  %s288_s0 = inlined_call_operand.vmem [shape: f32[8,192], index: 0, kind: input, shape index: {}]   ;;  %s289_s2 = inlined_call_operand.vmem [shape: f32[1,32], index: 2, kind: input, shape index: {}]   ;;  %s290_s3 = inlined_call_operand.vmem [shape: f32[8,32], index: 3, kind: output, shape index: {}]  }
   0x1   :  { %126 = vmatprep.subr.bf16.mxu0 %v214_v0  ;;  %v202_v1 = vld [vmem:[%s287_s1] sm:$0xff]   ;;  %20 = vst.msk [vmem:[#allocation2] sm:$0xff] %vm19_vm0, %v215_v2  ;;  %v203_v3 = vld [vmem:[%s287_s1 + $0x8] sm:$0xff]   ;;  %v204_v4 = vld [vmem:[%s287_s1 + $0x10] sm:$0xff]  }
   0x2   :  { %127 = vmatpush1.bf16.msra.mxu0 %v202_v1  ;;  %v205_v5 = vld [vmem:[%s287_s1 + $0x18] sm:$0xff]   ;;  %v23_v6 = vld [vmem:[%s288_s0 + $0x8] sm:$0xff]  ;;  %v206_v8 = vld [vmem:[%s287_s1 + $0x20] sm:$0xff]  }
   0x3   :  { %128 = vmatprep.subr.bf16.mxu0 %v214_v0  ;;  %v25_v7 = vpack.c.bf16 %v23_v6, %v23_v6  ;;  %v207_v9 = vld [vmem:[%s287_s1 + $0x28] sm:$0xff]   ;;  %v208_v10 = vld [vmem:[%s287_s1 + $0x30] sm:$0xff]   ;;  %v209_v11 = vld [vmem:[%s287_s1 + $0x38] sm:$0xff]  }
   0x4   :  { %v210_v12 = vld [vmem:[%s287_s1 + $0x40] sm:$0xff]   ;;  %v211_v13 = vld [vmem:[%s287_s1 + $0x48] sm:$0xff]   ;;  %v212_v14 = vld [vmem:[%s287_s1 + $0x50] sm:$0xff]  }
   0x5   :  { %198 = vmatprep.mubr.msk.bf16.mxu0 %vm122_vm1, %v25_v7  ;;  %v213_v15 = vld [vmem:[%s287_s1 + $0x58] sm:$0xff]   ;;  %v22_v16 = vld [vmem:[%s288_s0] sm:$0xff] }
   0x6   :  { %129 = vmatpush1.bf16.msra.mxu0 %v203_v3  ;;  %v24_v17 = vpack.c.bf16 %v22_v16, %v22_v16  ;;  %v199_v24 = vld [vmem:[%s289_s2] ss:$0 sm:$0xff] }
   0x7   :  { %130 = vmatprep.subr.bf16.mxu0 %v214_v0 }
   0x8   :  { %v21_v18 = vld [vmem:[#allocation2] sm:$0xff] }
   0xa   :  { %131 = vmatpush1.bf16.msra.mxu0 %v204_v4 }
   0xb   :  { %132 = vmatprep.subr.bf16.mxu0 %v214_v0 }
   0xe   :  { %133 = vmatpush1.bf16.msra.mxu0 %v205_v5 }
   0xf   :  { %134 = vmatprep.subr.bf16.mxu0 %v214_v0 }
  0x12   :  { %135 = vmatpush1.bf16.msra.mxu0 %v206_v8 }
  0x13   :  { %136 = vmatprep.subr.bf16.mxu0 %v214_v0 }
  0x16   :  { %137 = vmatpush1.bf16.msra.mxu0 %v207_v9 }
  0x17   :  { %138 = vmatprep.subr.bf16.mxu0 %v214_v0 }
  0x1a   :  { %139 = vmatpush1.bf16.msra.mxu0 %v208_v10 }
  0x1b   :  { %140 = vmatprep.subr.bf16.mxu0 %v214_v0 }
  0x1e   :  { %141 = vmatpush1.bf16.msra.mxu0 %v209_v11 }
  0x1f   :  { %142 = vmatprep.subr.bf16.mxu0 %v214_v0 }
  0x22   :  { %143 = vmatpush1.bf16.msra.mxu0 %v210_v12 }
  0x23   :  { %144 = vmatprep.subr.bf16.mxu0 %v214_v0 }
  0x26   :  { %145 = vmatpush1.bf16.msra.mxu0 %v211_v13 }
  0x27   :  { %146 = vmatprep.subr.bf16.mxu0 %v214_v0 }
  0x2a   :  { %147 = vmatpush1.bf16.msra.mxu0 %v212_v14 }
  0x2b   :  { %148 = vmatprep.subr.bf16.mxu0 %v214_v0 }
  0x2e   :  { %149 = vmatpush1.bf16.msra.mxu0 %v213_v15 }
  0x31   :  { %159 = vmatmul.mubr.bf16.vlgmr.msra.gmra.mrb[0].mxu0 %v24_v17 }
 0x104   :  { %v160_v19 = vpop.f32.mrb[0].mxu0 }
 0x105   :  { %v166_v20 = vadd.f32 %v160_v19, %v21_v18  ;;  %v162_v21 = vpop.f32.mrb[1].mxu0 }
 0x106   :  { %v163_v22 = vpop.f32.mrb[2].mxu0 }
 0x107   :  { %168 = vst.msk [vmem:[#allocation2] sm:$0xff] %vm19_vm0, %v166_v20  ;;  %v164_v23 = vpop.f32.mrb[3].mxu0 }
 0x10e   :  { %v172_v25 = vld [vmem:[#allocation2] sm:$0xff] }
 0x10f   :  { %v180_v26 = vadd.f32 %v199_v24, %v172_v25 }
 0x111   :  { %181 = vst.msk [vmem:[%s290_s3] sm:$0xff] %vm19_vm0, %v180_v26 }

// kernel: _lambda_.27
= control target key start
LH: loop header
LB: loop body
LE: loop exit
PB: predicated region body
PF: predicated region fallthrough
CT: control target
= control target key end

     0   :  { %vm22_vm0 = vcmask 261120   ;;  %v140_v0 = vmov 0.0   ;;  %vm141_vm1 = vmmov 0   ;;  %vm24_vm2 = vcmask 254976   ;;  %s201_s1 = inlined_call_operand.vmem [shape: bf16[32,32], index: 1, kind: input, shape index: {}]   ;;  %s202_s0 = inlined_call_operand.vmem [shape: f32[10,32], index: 0, kind: input, shape index: {}]   ;;  %s203_s2 = inlined_call_operand.vmem [shape: f32[1,32], index: 2, kind: input, shape index: {}]   ;;  %s204_s3 = inlined_call_operand.vmem [shape: f32[10,32], index: 3, kind: input, shape index: {}]   ;;  %s205_s4 = inlined_call_operand.vmem [shape: f32[10,32], index: 4, kind: output, shape index: {}]  }
   0x1   :  { %128 = vmatprep.subr.bf16.mxu0 %v140_v0  ;;  %v138_v1 = vld [vmem:[%s201_s1] sm:$0xff]   ;;  %132 = vmatprep.mubr.msk.bf16.mxu0 %vm141_vm1, %v140_v0  ;;  %23 = vst.msk [vmem:[#allocation2] sm:$0xff] %vm22_vm0, %v140_v0  ;;  %v139_v2 = vld [vmem:[%s201_s1 + $0x8] sm:$0xff]  }
   0x2   :  { %129 = vmatpush3.bf16.msra.mxu0 %v138_v1  ;;  %v28_v3 = vld [vmem:[%s202_s0] sm:$0xff]  ;;  %v29_v4 = vld [vmem:[%s202_s0 + $0x8] sm:$0x3]  ;;  %25 = vst.msk [vmem:[#allocation2 + $0x8] sm:$0x3] %vm24_vm2, %v140_v0 }
   0x3   :  { %130 = vmatprep.subr.bf16.mxu0 %v140_v0  ;;  %v30_v5 = vpack.c.bf16 %v29_v4, %v28_v3  ;;  %v124_v14 = vld [vmem:[%s203_s2] ss:$0 sm:$0xff]  ;;  %v112_v19 = vld [vmem:[%s204_s3 + $0x8] sm:$0x3] }
   0x4   :  { %v111_v16 = vld [vmem:[%s204_s3] sm:$0xff] }
   0x6   :  { %131 = vmatpush3.bf16.msra.mxu0 %v139_v2 }
   0x8   :  { %v26_v6 = vld [vmem:[#allocation2] sm:$0xff] }
   0x9   :  { %133 = vmatmul.mubr.msk.bf16.vlgmr.msra.gmra.mrb[0].mxu0 %vm22_vm0, %v30_v5  ;;  %v27_v8 = vld [vmem:[#allocation2 + $0x8] sm:$0x3] }
  0xdc   :  { %v85_v7 = vpop.f32.mrb[0].mxu0 }
  0xdd   :  { %v92_v9 = vadd.f32 %v85_v7, %v26_v6  ;;  %v134_v10 = vpop.f32.mrb[1].mxu0 }
  0xde   :  { %v88_v11 = vpop.f32.mrb[2].mxu0 }
  0xdf   :  { %94 = vst.msk [vmem:[#allocation2] sm:$0xff] %vm22_vm0, %v92_v9  ;;  %v93_v12 = vadd.f32 %v88_v11, %v27_v8  ;;  %v135_v13 = vpop.f32.mrb[3].mxu0 }
  0xe1   :  { %96 = vst.msk [vmem:[#allocation2 + $0x8] sm:$0x3] %vm24_vm2, %v93_v12 }
  0xe6   :  { %v100_v15 = vld [vmem:[#allocation2] sm:$0xff] }
  0xe7   :  { %v109_v17 = vadd.f32 %v124_v14, %v100_v15 }
  0xe8   :  { %v101_v18 = vld [vmem:[#allocation2 + $0x8] sm:$0x3] }
  0xe9   :  { %v110_v20 = vadd.f32 %v124_v14, %v101_v18  ;;  %v113_v21 = vadd.f32 %v111_v16, %v109_v17 }
  0xeb   :  { %v114_v22 = vadd.f32 %v112_v19, %v110_v20  ;;  %115 = vst.msk [vmem:[%s205_s4] sm:$0xff] %vm22_vm0, %v113_v21 }
  0xed   :  { %116 = vst.msk [vmem:[%s205_s4 + $0x8] sm:$0x3] %vm24_vm2, %v114_v22 }

// kernel: _lambda_.25
= control target key start
LH: loop header
LB: loop body
LE: loop exit
PB: predicated region body
PF: predicated region fallthrough
CT: control target
= control target key end

     0   :  { %vm23_vm0 = vcmask 261120   ;;  %vm27_vm1 = vcmask 254976   ;;  %v171_v15 = vmov 0.0   ;;  %vm172_vm2 = vmmov 0   ;;  %s233_s0 = inlined_call_operand.vmem [shape: f32[10,32], index: 0, kind: input, shape index: {}]   ;;  %s234_s3 = inlined_call_operand.vmem [shape: bf16[32,96], index: 3, kind: input, shape index: {}]   ;;  %s235_s1 = inlined_call_operand.vmem [shape: f32[1,32], index: 1, kind: input, shape index: {}]   ;;  %s236_s2 = inlined_call_operand.vmem [shape: f32[1,32], index: 2, kind: input, shape index: {}]   ;;  %s237_s4 = inlined_call_operand.vmem [shape: f32[1,96], index: 4, kind: input, shape index: {}]   ;;  %s238_s5 = inlined_call_operand.vmem [shape: f32[10,96], index: 5, kind: output, shape index: {}]  }
   0x1   :  { %v21_v0 = vld [vmem:[%s233_s0] sm:$0xff]  ;;  %v22_v1 = vld [vmem:[%s233_s0 + $0x8] sm:$0x3]  ;;  %155 = vmatprep.subr.bf16.mxu0 %v171_v15  ;;  %159 = vmatprep.mubr.msk.bf16.mxu0 %vm172_vm2, %v171_v15  ;;  %vm138_vm3 = vcmask 785408   ;;  %vm140_vm4 = vcmask 779264  }
   0x2   :  { %v24_v2 = vsel %vm23_vm0, %v21_v0, 0.0  ;;  %v28_v3 = vsel %vm27_vm1, %v22_v1, 0.0  ;;  %v165_v14 = vld [vmem:[%s234_s3] sm:$0xff]   ;;  %v166_v16 = vld [vmem:[%s234_s3 + $0x8] sm:$0xff]  }
   0x3   :  { %25 = vadd.xlane.f32.xlu0 %v24_v2  ;;  %156 = vmatpush3.bf16.msra.mxu0 %v165_v14  ;;  %v146_v25 = vld [vmem:[%s235_s1] ss:$0 sm:$0xff] }
   0x4   :  { %157 = vmatprep.subr.bf16.mxu0 %v171_v15  ;;  %v147_v29 = vld [vmem:[%s236_s2] ss:$0 sm:$0xff] }
   0x5   :  { %v148_v34 = vld [vmem:[%s237_s4] ss:$0 sm:$0xff] }
   0x7   :  { %29 = vadd.xlane.f32.xlu0 %v28_v3  ;;  %158 = vmatpush3.bf16.msra.mxu0 %v166_v16 }
  0x90   :  { %v26_v4 = vpop.xlane.xlu0 %25 }
  0x91   :  { %v32_v5 = vmul.f32 0.03125, %v26_v4 }
  0x93   :  { %v34_v6 = vsub.f32 %v21_v0, %v32_v5 }
  0x94   :  { %v30_v7 = vpop.xlane.xlu0 %29 }
  0x95   :  { %v33_v8 = vmul.f32 0.03125, %v30_v7  ;;  %v36_v9 = vmul.f32 %v34_v6, %v34_v6 }
  0x97   :  { %v35_v10 = vsub.f32 %v22_v1, %v33_v8  ;;  %v38_v11 = vsel %vm23_vm0, %v36_v9, 0.0 }
  0x98   :  { %39 = vadd.xlane.f32.xlu1 %v38_v11 }
  0x99   :  { %v37_v12 = vmul.f32 %v35_v10, %v35_v10 }
  0x9b   :  { %v41_v13 = vsel %vm27_vm1, %v37_v12, 0.0 }
  0x9c   :  { %42 = vadd.xlane.f32.xlu1 %v41_v13 }
 0x125   :  { %v40_v17 = vpop.xlane.xlu1 %39 }
 0x126   :  { %v44_v18 = vmul.f32 0.03125, %v40_v17 }
 0x128   :  { %v46_v19 = vadd.f32 1e-06, %v44_v18 }
 0x129   :  { %v43_v20 = vpop.xlane.xlu1 %42 }
 0x12a   :  { %167 = vrsqrt.f32 %v46_v19  ;;  %v45_v21 = vmul.f32 0.03125, %v43_v20 }
 0x12c   :  { %v47_v22 = vadd.f32 1e-06, %v45_v21 }
 0x12e   :  { %169 = vrsqrt.f32 %v47_v22 }
 0x134   :  { %v168_v23 = vpop.eup %167 }
 0x135   :  { %v50_v24 = vmul.f32 %v168_v23, %v34_v6 }
 0x137   :  { %v59_v28 = vmul.f32 %v146_v25, %v50_v24 }
 0x138   :  { %v170_v26 = vpop.eup %169 }
 0x139   :  { %v51_v27 = vmul.f32 %v170_v26, %v35_v10  ;;  %v68_v31 = vadd.f32 %v147_v29, %v59_v28 }
 0x13b   :  { %v60_v30 = vmul.f32 %v146_v25, %v51_v27 }
 0x13d   :  { %v69_v32 = vadd.f32 %v147_v29, %v60_v30 }
 0x13f   :  { %v70_v33 = vpack.c.bf16 %v69_v32, %v68_v31 }
 0x141   :  { %160 = vmatmul.mubr.msk.bf16.vlgmr.msra.gmra.mrb[0].mxu0 %vm23_vm0, %v70_v33 }
 0x214   :  { %v131_v35 = vpop.f32.mrb[0].mxu0 }
 0x215   :  { %v132_v36 = vadd.f32 %v148_v34, %v131_v35  ;;  %v161_v37 = vpop.f32.mrb[1].mxu0 }
 0x216   :  { %v134_v38 = vpop.f32.mrb[2].mxu0 }
 0x217   :  { %139 = vst.msk [vmem:[%s238_s5] sm:$0xff] %vm138_vm3, %v132_v36  ;;  %v135_v39 = vadd.f32 %v148_v34, %v134_v38  ;;  %v162_v40 = vpop.f32.mrb[3].mxu0 }
 0x219   :  { %141 = vst.msk [vmem:[%s238_s5 + $0x8] sm:$0x3] %vm140_vm4, %v135_v39 }

// kernel: _lambda_.26
= control target key start
LH: loop header
LB: loop body
LE: loop exit
PB: predicated region body
PF: predicated region fallthrough
CT: control target
= control target key end

     0   :  { %s794_s6 = smov 0   ;;  %s886_s0 = inlined_call_operand.vmem [shape: f32[2,5,96], index: 0, kind: input, shape index: {}]   ;;  %s887_s1 = inlined_call_operand.vmem [shape: f32[2,5,32], index: 1, kind: output, shape index: {}]  }
   0x1 LB: > { %s637_s7 = sadd.s32 4294967295, %s765_s6   ;;  %p641_p0 = scmp.ge.s32.totalorder %s765_s6, 1  ;;  %s765_s6 = sphi %s794_s6, %s11_s6  }
   0x2   : > { %p86_p1 = scmp.lt.s32.totalorder %s765_s6, 3 }
   0x4   : > { %p87_p2 = pnand %p641_p0, %p86_p1 }
   0x5   : > { %p104_p3 = scmp.lt.s32.totalorder (!%p87_p2), %s637_s7, 1  ;;  %v767_v0 = vmov (!%p87_p2), 0.0   ;;  %vm768_vm0 = vmmov (!%p87_p2), 0   ;;  %s769_s12 = smov (!%p87_p2), 96   ;;  %vm118_vm1 = vcmask (!%p87_p2), 64512   ;;  %vm166_vm2 = vcmask (!%p87_p2), 36864  }
   0x6   : > { %90 = sbr.rel (%p87_p2) target bundleno = 1557 (0x615), region = 24  ;;  %670 = vmatprep.subr.bf16.mxu0 (!%p87_p2), %v767_v0  ;;  %672 = vmatprep.mubr.msk.bf16.mxu0 (!%p87_p2), %vm768_vm0, %v767_v0  ;;  %s770_s13 = smov (!%p87_p2), 64   ;;  %vm185_vm3 = vcmask (!%p87_p2), 1041408   ;;  %vm186_vm4 = vcmask (!%p87_p2), 1042432   ;;  %v773_v12 = vmov (!%p87_p2), 65535   ;;  %vm181_vm5 = vcmask (!%p87_p2), 39936  }
   0x7   : > { %676 = vmatprep.subr.bf16.mxu1 (!%p87_p2), %v767_v0  ;;  %678 = vmatprep.mubr.msk.bf16.mxu1 (!%p87_p2), %vm768_vm0, %v767_v0  ;;  %s771_s14 = smov (!%p87_p2), 88   ;;  %s772_s15 = smov (!%p87_p2), 72   ;;  %v187_v13 = vsel (!%p87_p2), %vm185_vm3, 4294967295, %v773_v12  ;;  %vm578_vm6 = vcmask (!%p87_p2), 130048   ;;  %vm580_vm7 = vcmask (!%p87_p2), 195584   ;;  %vm582_vm8 = vcmask (!%p87_p2), 258048  }
   0x8   : > { %v829_v14 = vsel (!%p87_p2), %vm186_vm4, %v187_v13, 0  ;;  %s774_s16 = smov (!%p87_p2), 120   ;;  %s775_s17 = smov (!%p87_p2), 80  }
   0x9   : > { %s776_s18 = smov (!%p87_p2), 112   ;;  %s777_s19 = smov (!%p87_p2), 104  }
   0xa   : > { %s778_s20 = smov (!%p87_p2), 56   ;;  %s779_s21 = smov (!%p87_p2), 40  }
   0xb   : > { %s780_s22 = smov (!%p87_p2), 48   ;;  %s781_s23 = smov (!%p87_p2), 8  }
   0xc   : > { %s782_s24 = smov (!%p87_p2), 16   ;;  %s783_s25 = smov (!%p87_p2), 24  }
   0xd   : > { %s889_s7 = smov (!%p104_p3, %s637_s7), 1 }
   0xe   : > { %s642_s8 = sshll.u32 %s889_s7, 3 }
   0xf   : > { %s107_s11 = scalar_lea.vmem %s886_s0, %s642_s8  ;;  %s111_s28 = scalar_lea.vmem %s887_s1, %s642_s8 }
  0x10   : > { %v113_v1 = vld [vmem:[%s107_s11] sm:$0x1f] }
  0x11   : > { %v816_v2 = vpack.c.bf16 %v113_v1, %v113_v1 }
  0x13   : > { %116 = vrot.lane.b32.xlu0 %v816_v2, %s769_s12  ;;  %179 = vrot.lane.b32.xlu1 %v816_v2, %s770_s13 }
  0x17   : > { %234 = vrot.lane.b32.xlu1 %v816_v2, %s771_s14 }
  0x85   : > { %v117_v3 = vpop.permute.xlu0 %116  ;;  %v180_v11 = vpop.permute.xlu1 %179 }
  0x86   : > { %v123_v4 = vsel %vm118_vm1, %v117_v3, 0  ;;  %v190_v15 = vand.u32 %v829_v14, %v180_v11 }
  0x87   : > { %671 = vmatpush3.bf16.xpose.msra.mxu0 %v123_v4 }
  0x88   : > { %688 = vmatprep.subr.bf16.mxu0 %v767_v0  ;;  %677 = vmatpush3.bf16.msra.mxu1 %v190_v15 }
  0x89   : > { %682 = vmatprep.subr.bf16.mxu1 %v767_v0  ;;  %v235_v21 = vpop.permute.xlu1 %234 }
  0x8a   : > { %v240_v27 = vsel %vm118_vm1, %v235_v21, 0 }
  0x8e   : > { %673 = vmatmul.mubr.msk.bf16.vlgmr.msra.gmra.mrb[0].mxu0 %vm118_vm1, %v816_v2 }
  0x8f   : > { %690 = vmatprep.mubr.msk.bf16.mxu0 %vm768_vm0, %v767_v0 }
 0x161   : > { %v159_v5 = vpop.f32.mrb[0].mxu0 }
 0x162   : > { %v165_v6 = vmul.f32 0.35355338, %v159_v5  ;;  %v674_v7 = vpop.f32.mrb[1].mxu0 }
 0x163   : > { %v162_v8 = vpop.f32.mrb[2].mxu0 }
 0x164   : > { %v675_v9 = vpop.f32.mrb[3].mxu0  ;;  %v167_v10 = vsel %vm166_vm2, %v165_v6, -inf }
 0x165   : > { %168 = vmax.xlane.f32.xlu0 %v167_v10 }
 0x17b   : > { %456 = vrot.lane.b32.xlu0 %v816_v2, %s772_s15 }
 0x1f2   : > { %v169_v16 = vpop.xlane.xlu0 %168 }
 0x1f3   : > { %v170_v17 = vsub.f32 %v165_v6, %v169_v16 }
 0x1f5   : > { %v171_v18 = vmul.f32 1.442695, %v170_v17 }
 0x1f6   : > { %v457_v30 = vpop.permute.xlu0 %456 }
 0x1f7   : > { %743 = vpow2.f32 %v171_v18  ;;  %v462_v32 = vsel %vm118_vm1, %v457_v30, 0 }
 0x201   : > { %v744_v19 = vpop.eup %743 }
 0x202   : > { %v173_v20 = vsel %vm166_vm2, %v744_v19, 0.0 }
 0x203   : > { %174 = vadd.xlane.f32.xlu1 %v173_v20 }
 0x214   : > { %232 = vrot.lane.b32.xlu1 %v816_v2, %s774_s16 }
 0x218   : > { %345 = vrot.lane.b32.xlu1 %v816_v2, %s775_s17 }
 0x21c   : > { %343 = vrot.lane.b32.xlu1 %v816_v2, %s776_s18 }
 0x220   : > { %454 = vrot.lane.b32.xlu1 %v816_v2, %s777_s19 }
 0x290   : > { %v175_v22 = vpop.xlane.xlu1 %174 }
 0x291   : > { %745 = vrcp.f32 %v175_v22 }
 0x294   : > { %v233_v25 = vpop.permute.xlu1 %232 }
 0x298   : > { %v346_v28 = vpop.permute.xlu1 %345 }
 0x299   : > { %v351_v29 = vsel %vm118_vm1, %v346_v28, 0 }
 0x29b   : > { %v746_v23 = vpop.eup %745 }
 0x29c   : > { %v177_v24 = vmul.f32 %v746_v23, %v744_v19  ;;  %v344_v31 = vpop.permute.xlu1 %343 }
 0x29e   : > { %v178_v26 = vpack.c.bf16 %v177_v24, %v177_v24 }
 0x2a0   : > { %679 = vmatmul.mubr.msk.bf16.vlgmr.msra.gmra.mrb[0].mxu1 %vm181_vm5, %v178_v26  ;;  %v455_v33 = vpop.permute.xlu1 %454 }
 0x2a1   : > { %683 = vmatpush3.bf16.xpose.msra.mxu1 %v240_v27  ;;  %684 = vmatprep.mubr.msk.bf16.mxu1 %vm768_vm0, %v767_v0 }
 0x2a2   : > { %694 = vmatprep.subr.bf16.mxu1 %v767_v0 }
 0x2a8   : > { %685 = vmatmul.mubr.msk.bf16.vlgmr.msra.gmra.mrb[4].mxu1 %vm118_vm1, %v233_v25 }
 0x2a9   : > { %695 = vmatpush3.bf16.xpose.msra.mxu1 %v351_v29  ;;  %696 = vmatprep.mubr.msk.bf16.mxu1 %vm768_vm0, %v767_v0 }
 0x2aa   : > { %706 = vmatprep.subr.bf16.mxu1 %v767_v0 }
 0x2b0   : > { %697 = vmatmul.mubr.msk.bf16.vlgmr.msra.gmra.mrb[8].mxu1 %vm118_vm1, %v344_v31 }
 0x2b1   : > { %707 = vmatpush3.bf16.xpose.msra.mxu1 %v462_v32  ;;  %708 = vmatprep.mubr.msk.bf16.mxu1 %vm768_vm0, %v767_v0 }
 0x2b8   : > { %709 = vmatmul.mubr.msk.bf16.vlgmr.msra.gmra.mrb[12].mxu1 %vm118_vm1, %v455_v33 }
 0x373   : > { %v853_v34 = vpop.f32.mrb[0].mxu1 }
 0x374   : > { %v680_v35 = vpop.f32.mrb[1].mxu1 }
 0x375   : > { %v229_v36 = vpop.f32.mrb[2].mxu1 }
 0x376   : > { %v681_v37 = vpop.f32.mrb[3].mxu1 }
 0x37b   : > { %v276_v38 = vpop.f32.mrb[4].mxu1 }
 0x37c   : > { %v282_v39 = vmul.f32 0.35355338, %v276_v38  ;;  %v686_v40 = vpop.f32.mrb[5].mxu1 }
 0x37d   : > { %v279_v41 = vpop.f32.mrb[6].mxu1 }
 0x37e   : > { %v687_v42 = vpop.f32.mrb[7].mxu1  ;;  %v283_v43 = vsel %vm166_vm2, %v282_v39, -inf }
 0x37f   : > { %284 = vmax.xlane.f32.xlu1 %v283_v43 }
 0x383   : > { %v387_v44 = vpop.f32.mrb[8].mxu1 }
 0x384   : > { %v393_v45 = vmul.f32 0.35355338, %v387_v44  ;;  %v698_v46 = vpop.f32.mrb[9].mxu1 }
 0x385   : > { %v390_v47 = vpop.f32.mrb[10].mxu1 }
 0x386   : > { %v699_v48 = vpop.f32.mrb[11].mxu1  ;;  %v394_v49 = vsel %vm166_vm2, %v393_v45, -inf }
 0x387   : > { %395 = vmax.xlane.f32.xlu0 %v394_v49 }
 0x38b   : > { %v498_v50 = vpop.f32.mrb[12].mxu1 }
 0x38c   : > { %v504_v51 = vmul.f32 0.35355338, %v498_v50  ;;  %v710_v52 = vpop.f32.mrb[13].mxu1 }
 0x38d   : > { %v501_v53 = vpop.f32.mrb[14].mxu1 }
 0x38e   : > { %v711_v54 = vpop.f32.mrb[15].mxu1  ;;  %v505_v55 = vsel %vm166_vm2, %v504_v51, -inf }
 0x38f   : > { %506 = vmax.xlane.f32.xlu1 %v505_v55 }
 0x3a0   : > { %295 = vrot.lane.b32.xlu1 %v816_v2, %s778_s20 }
 0x40c   : > { %v285_v56 = vpop.xlane.xlu1 %284 }
 0x40d   : > { %v286_v57 = vsub.f32 %v282_v39, %v285_v56 }
 0x40f   : > { %v287_v58 = vmul.f32 1.442695, %v286_v57 }
 0x411   : > { %747 = vpow2.f32 %v287_v58 }
 0x414   : > { %v396_v59 = vpop.xlane.xlu0 %395 }
 0x415   : > { %v397_v60 = vsub.f32 %v393_v45, %v396_v59 }
 0x417   : > { %v398_v61 = vmul.f32 1.442695, %v397_v60 }
 0x419   : > { %749 = vpow2.f32 %v398_v61 }
 0x41b   : > { %v748_v62 = vpop.eup %747 }
 0x41c   : > { %v507_v63 = vpop.xlane.xlu1 %506  ;;  %v289_v1 = vsel %vm166_vm2, %v748_v62, 0.0 }
 0x41d   : > { %v508_v3 = vsub.f32 %v504_v51, %v507_v63  ;;  %290 = vadd.xlane.f32.xlu1 %v289_v1 }
 0x41f   : > { %v509_v4 = vmul.f32 1.442695, %v508_v3 }
 0x420   : > { %v296_v5 = vpop.permute.xlu1 %295 }
 0x421   : > { %751 = vpow2.f32 %v509_v4  ;;  %v301_v6 = vand.u32 %v296_v5, %v829_v14 }
 0x423   : > { %v750_v7 = vpop.eup %749  ;;  %689 = vmatpush3.bf16.msra.mxu0 %v301_v6 }
 0x424   : > { %v400_v8 = vsel %vm166_vm2, %v750_v7, 0.0  ;;  %700 = vmatprep.subr.bf16.mxu0 %v767_v0 }
 0x425   : > { %401 = vadd.xlane.f32.xlu1 %v400_v8 }
 0x42b   : > { %v752_v9 = vpop.eup %751 }
 0x42c   : > { %v511_v10 = vsel %vm166_vm2, %v752_v9, 0.0 }
 0x42d   : > { %512 = vadd.xlane.f32.xlu0 %v511_v10 }
 0x436   : > { %517 = vrot.lane.b32.xlu1 %v816_v2, %s779_s21 }
 0x443   : > { %406 = vrot.lane.b32.xlu0 %v816_v2, %s780_s22 }
 0x4aa   : > { %v291_v11 = vpop.xlane.xlu1 %290 }
 0x4ab   : > { %753 = vrcp.f32 %v291_v11 }
 0x4b2   : > { %v402_v12 = vpop.xlane.xlu1 %401 }
 0x4b3   : > { %755 = vrcp.f32 %v402_v12 }
 0x4b5   : > { %v754_v13 = vpop.eup %753 }
 0x4b6   : > { %v293_v15 = vmul.f32 %v754_v13, %v748_v62  ;;  %v518_v21 = vpop.permute.xlu1 %517 }
 0x4b7   : > { %v523_v22 = vand.u32 %v518_v21, %v829_v14 }
 0x4b8   : > { %v294_v16 = vpack.c.bf16 %v293_v15, %v293_v15 }
 0x4ba   : > { %691 = vmatmul.mubr.msk.bf16.vlgmr.msra.gmra.mrb[4].mxu0 %vm181_vm5, %v294_v16  ;;  %v513_v17 = vpop.xlane.xlu0 %512 }
 0x4bb   : > { %757 = vrcp.f32 %v513_v17  ;;  %702 = vmatprep.mubr.msk.bf16.mxu0 %vm768_vm0, %v767_v0 }
 0x4bd   : > { %v756_v18 = vpop.eup %755 }
 0x4be   : > { %v404_v19 = vmul.f32 %v756_v18, %v750_v7  ;;  %v407_v20 = vpop.permute.xlu0 %406 }
 0x4bf   : > { %v412_v2 = vand.u32 %v407_v20, %v829_v14 }
 0x4c0   : > { %v405_v23 = vpack.c.bf16 %v404_v19, %v404_v19 }
 0x4c1   : > { %701 = vmatpush3.bf16.msra.mxu0 %v412_v2 }
 0x4c2   : > { %712 = vmatprep.subr.bf16.mxu0 %v767_v0 }
 0x4c4   : > { %703 = vmatmul.mubr.msk.bf16.vlgmr.msra.gmra.mrb[8].mxu0 %vm181_vm5, %v405_v23 }
 0x4c5   : > { %v758_v24 = vpop.eup %757  ;;  %713 = vmatpush3.bf16.msra.mxu0 %v523_v22  ;;  %714 = vmatprep.mubr.msk.bf16.mxu0 %vm768_vm0, %v767_v0 }
 0x4c6   : > { %v515_v25 = vmul.f32 %v758_v24, %v752_v9 }
 0x4c8   : > { %v516_v26 = vpack.c.bf16 %v515_v25, %v515_v25 }
 0x4cc   : > { %715 = vmatmul.mubr.msk.bf16.vlgmr.msra.gmra.mrb[12].mxu0 %vm181_vm5, %v516_v26 }
 0x58d   : > { %v337_v27 = vpop.f32.mrb[4].mxu0 }
 0x58e   : > { %566 = vrot.lane.b32.xlu1 %v337_v27, %s781_s23  ;;  %v692_v28 = vpop.f32.mrb[5].mxu0 }
 0x58f   : > { %v340_v29 = vpop.f32.mrb[6].mxu0 }
 0x590   : > { %v693_v14 = vpop.f32.mrb[7].mxu0 }
 0x597   : > { %v448_v30 = vpop.f32.mrb[8].mxu0 }
 0x598   : > { %570 = vrot.lane.b32.xlu0 %v448_v30, %s782_s24  ;;  %v704_v31 = vpop.f32.mrb[9].mxu0 }
 0x599   : > { %v451_v32 = vpop.f32.mrb[10].mxu0 }
 0x59a   : > { %v705_v33 = vpop.f32.mrb[11].mxu0 }
 0x59f   : > { %v559_v35 = vpop.f32.mrb[12].mxu0 }
 0x5a0   : > { %574 = vrot.lane.b32.xlu1 %v559_v35, %s783_s25  ;;  %v716_v0 = vpop.f32.mrb[13].mxu0 }
 0x5a1   : > { %v562_v36 = vpop.f32.mrb[14].mxu0 }
 0x5a2   : > { %v717_v37 = vpop.f32.mrb[15].mxu0 }
 0x600   : > { %v567_v38 = vpop.permute.xlu1 %566 }
 0x601   : > { %v577_v40 = vsel %vm118_vm1, %v853_v34, %v567_v38 }
 0x60a   : > { %v571_v39 = vpop.permute.xlu0 %570 }
 0x60b   : > { %v579_v41 = vsel %vm578_vm6, %v577_v40, %v571_v39 }
 0x612   : > { %v575_v42 = vpop.permute.xlu1 %574 }
 0x613   : > { %v581_v43 = vsel %vm580_vm7, %v579_v41, %v575_v42 }
 0x614   : > { %583 = vst.msk [vmem:[%s111_s28] sm:$0x1f] %vm582_vm8, %v581_v43 }
 0x615 PF: > { %s11_s6 = sadd.s32 1, %s765_s6  }
 0x616   : > { %p8_p4 = scmp.ge.s32.totalorder %s11_s6, 4  }
 0x618   :  { %10 = sbr.rel (!%p8_p4) target bundleno = 1 (0x1), region = 54 }

// kernel: _lambda_.28
= control target key start
LH: loop header
LB: loop body
LE: loop exit
PB: predicated region body
PF: predicated region fallthrough
CT: control target
= control target key end

     0   :  { %vm23_vm0 = vcmask 261120   ;;  %vm27_vm1 = vcmask 254976   ;;  %v191_v15 = vmov 0.0   ;;  %vm192_vm2 = vmmov 0   ;;  %s253_s0 = inlined_call_operand.vmem [shape: f32[10,32], index: 0, kind: input, shape index: {}]   ;;  %s254_s3 = inlined_call_operand.vmem [shape: bf16[32,128], index: 3, kind: input, shape index: {}]   ;;  %s255_s1 = inlined_call_operand.vmem [shape: f32[1,32], index: 1, kind: input, shape index: {}]   ;;  %s256_s2 = inlined_call_operand.vmem [shape: f32[1,32], index: 2, kind: input, shape index: {}]   ;;  %s257_s4 = inlined_call_operand.vmem [shape: f32[1,128], index: 4, kind: input, shape index: {}]   ;;  %s258_s5 = inlined_call_operand.vmem [shape: f32[10,128], index: 5, kind: output, shape index: {}]  }
   0x1   :  { %v21_v0 = vld [vmem:[%s253_s0] sm:$0xff]  ;;  %v22_v1 = vld [vmem:[%s253_s0 + $0x8] sm:$0x3]  ;;  %171 = vmatprep.subr.bf16.mxu0 %v191_v15  ;;  %175 = vmatprep.mubr.msk.bf16.mxu0 %vm192_vm2, %v191_v15 }
   0x2   :  { %v24_v2 = vsel %vm23_vm0, %v21_v0, 0.0  ;;  %v28_v3 = vsel %vm27_vm1, %v22_v1, 0.0  ;;  %v181_v14 = vld [vmem:[%s254_s3] sm:$0xff]   ;;  %v182_v16 = vld [vmem:[%s254_s3 + $0x8] sm:$0xff]  }
   0x3   :  { %25 = vadd.xlane.f32.xlu0 %v24_v2  ;;  %172 = vmatpush3.bf16.msra.mxu0 %v181_v14  ;;  %v162_v25 = vld [vmem:[%s255_s1] ss:$0 sm:$0xff] }
   0x4   :  { %173 = vmatprep.subr.bf16.mxu0 %v191_v15  ;;  %v163_v29 = vld [vmem:[%s256_s2] ss:$0 sm:$0xff] }
   0x5   :  { %v164_v34 = vld [vmem:[%s257_s4] ss:$0 sm:$0xff] }
   0x7   :  { %29 = vadd.xlane.f32.xlu0 %v28_v3  ;;  %174 = vmatpush3.bf16.msra.mxu0 %v182_v16 }
  0x90   :  { %v26_v4 = vpop.xlane.xlu0 %25 }
  0x91   :  { %v32_v5 = vmul.f32 0.03125, %v26_v4 }
  0x93   :  { %v34_v6 = vsub.f32 %v21_v0, %v32_v5 }
  0x94   :  { %v30_v7 = vpop.xlane.xlu0 %29 }
  0x95   :  { %v33_v8 = vmul.f32 0.03125, %v30_v7  ;;  %v36_v9 = vmul.f32 %v34_v6, %v34_v6 }
  0x97   :  { %v35_v10 = vsub.f32 %v22_v1, %v33_v8  ;;  %v38_v11 = vsel %vm23_vm0, %v36_v9, 0.0 }
  0x98   :  { %39 = vadd.xlane.f32.xlu1 %v38_v11 }
  0x99   :  { %v37_v12 = vmul.f32 %v35_v10, %v35_v10 }
  0x9b   :  { %v41_v13 = vsel %vm27_vm1, %v37_v12, 0.0 }
  0x9c   :  { %42 = vadd.xlane.f32.xlu1 %v41_v13 }
 0x125   :  { %v40_v17 = vpop.xlane.xlu1 %39 }
 0x126   :  { %v44_v18 = vmul.f32 0.03125, %v40_v17 }
 0x128   :  { %v46_v19 = vadd.f32 1e-06, %v44_v18 }
 0x129   :  { %v43_v20 = vpop.xlane.xlu1 %42 }
 0x12a   :  { %183 = vrsqrt.f32 %v46_v19  ;;  %v45_v21 = vmul.f32 0.03125, %v43_v20 }
 0x12c   :  { %v47_v22 = vadd.f32 1e-06, %v45_v21 }
 0x12e   :  { %185 = vrsqrt.f32 %v47_v22 }
 0x134   :  { %v184_v23 = vpop.eup %183 }
 0x135   :  { %v50_v24 = vmul.f32 %v184_v23, %v34_v6 }
 0x137   :  { %v59_v28 = vmul.f32 %v162_v25, %v50_v24 }
 0x138   :  { %v186_v26 = vpop.eup %185 }
 0x139   :  { %v51_v27 = vmul.f32 %v186_v26, %v35_v10  ;;  %v68_v31 = vadd.f32 %v163_v29, %v59_v28 }
 0x13b   :  { %v60_v30 = vmul.f32 %v162_v25, %v51_v27 }
 0x13d   :  { %v69_v32 = vadd.f32 %v163_v29, %v60_v30 }
 0x13f   :  { %v70_v33 = vpack.c.bf16 %v69_v32, %v68_v31 }
 0x141   :  { %176 = vmatmul.mubr.msk.bf16.vlgmr.msra.gmra.mrb[0].mxu0 %vm23_vm0, %v70_v33 }
 0x214   :  { %v131_v35 = vpop.f32.mrb[0].mxu0 }
 0x215   :  { %v132_v36 = vadd.f32 %v164_v34, %v131_v35  ;;  %v177_v37 = vpop.f32.mrb[1].mxu0 }
 0x216   :  { %v134_v38 = vpop.f32.mrb[2].mxu0 }
 0x217   :  { %v140_v39 = vmul.f32 0.044715, %v132_v36  ;;  %v135_v40 = vadd.f32 %v164_v34, %v134_v38  ;;  %v178_v41 = vpop.f32.mrb[3].mxu0  ;;  %v138_v52 = vmul.f32 0.5, %v132_v36 }
 0x219   :  { %v142_v42 = vmul.f32 %v140_v39, %v132_v36  ;;  %v141_v43 = vmul.f32 0.044715, %v135_v40  ;;  %v139_v56 = vmul.f32 0.5, %v135_v40 }
 0x21b   :  { %v144_v44 = vmul.f32 %v142_v42, %v132_v36  ;;  %v143_v45 = vmul.f32 %v141_v43, %v135_v40 }
 0x21d   :  { %v146_v46 = vadd.f32 %v144_v44, %v132_v36  ;;  %v145_v47 = vmul.f32 %v143_v45, %v135_v40 }
 0x21f   :  { %v148_v48 = vmul.f32 0.7978846, %v146_v46  ;;  %v147_v49 = vadd.f32 %v145_v47, %v135_v40 }
 0x221   :  { %187 = vtanh.f32 %v148_v48  ;;  %v149_v50 = vmul.f32 0.7978846, %v147_v49 }
 0x223   :  { %189 = vtanh.f32 %v149_v50 }
 0x22b   :  { %v188_v51 = vpop.eup %187 }
 0x22c   :  { %v152_v53 = vadd.f32 1.0, %v188_v51 }
 0x22d   :  { %v190_v54 = vpop.eup %189 }
 0x22e   :  { %v154_v55 = vmul.f32 %v152_v53, %v138_v52  ;;  %v153_v57 = vadd.f32 1.0, %v190_v54 }
 0x230   :  { %156 = vst [vmem:[%s258_s5] sm:$0xff] %v154_v55  ;;  %v155_v58 = vmul.f32 %v153_v57, %v139_v56 }
 0x232   :  { %157 = vst [vmem:[%s258_s5 + $0x8] sm:$0x3] %v155_v58 }

// kernel: _lambda_.45
= control target key start
LH: loop header
LB: loop body
LE: loop exit
PB: predicated region body
PF: predicated region fallthrough
CT: control target
= control target key end

     0   :  { %vm16_vm0 = vcmask 261120   ;;  %vm20_vm1 = vcmask 254976   ;;  %s119_s0 = inlined_call_operand.vmem [shape: f32[10,32], index: 0, kind: input, shape index: {}]   ;;  %s120_s1 = inlined_call_operand.vmem [shape: f32[1,32], index: 1, kind: input, shape index: {}]   ;;  %s121_s2 = inlined_call_operand.vmem [shape: f32[1,32], index: 2, kind: input, shape index: {}]   ;;  %s122_s3 = inlined_call_operand.vmem [shape: f32[10,32], index: 3, kind: output, shape index: {}]  }
   0x1   :  { %v14_v0 = vld [vmem:[%s119_s0] sm:$0xff]  ;;  %v15_v1 = vld [vmem:[%s119_s0 + $0x8] sm:$0x3] }
   0x2   :  { %v17_v2 = vsel %vm16_vm0, %v14_v0, 0.0  ;;  %v21_v3 = vsel %vm20_vm1, %v15_v1, 0.0  ;;  %v69_v21 = vld [vmem:[%s120_s1] ss:$0 sm:$0xff] }
   0x3   :  { %18 = vadd.xlane.f32.xlu0 %v17_v2  ;;  %v70_v23 = vld [vmem:[%s121_s2] ss:$0 sm:$0xff] }
   0x7   :  { %22 = vadd.xlane.f32.xlu0 %v21_v3 }
  0x90   :  { %v19_v4 = vpop.xlane.xlu0 %18 }
  0x91   :  { %v25_v5 = vmul.f32 0.03125, %v19_v4 }
  0x93   :  { %v27_v6 = vsub.f32 %v14_v0, %v25_v5 }
  0x94   :  { %v23_v7 = vpop.xlane.xlu0 %22 }
  0x95   :  { %v26_v8 = vmul.f32 0.03125, %v23_v7  ;;  %v29_v9 = vmul.f32 %v27_v6, %v27_v6 }
  0x97   :  { %v28_v10 = vsub.f32 %v15_v1, %v26_v8  ;;  %v31_v11 = vsel %vm16_vm0, %v29_v9, 0.0 }
  0x98   :  { %32 = vadd.xlane.f32.xlu1 %v31_v11 }
  0x99   :  { %v30_v12 = vmul.f32 %v28_v10, %v28_v10 }
  0x9b   :  { %v34_v13 = vsel %vm20_vm1, %v30_v12, 0.0 }
  0x9c   :  { %35 = vadd.xlane.f32.xlu1 %v34_v13 }
 0x125   :  { %v33_v14 = vpop.xlane.xlu1 %32 }
 0x126   :  { %v37_v15 = vmul.f32 0.03125, %v33_v14 }
 0x128   :  { %v39_v16 = vadd.f32 1e-06, %v37_v15 }
 0x129   :  { %v36_v17 = vpop.xlane.xlu1 %35 }
 0x12a   :  { %71 = vrsqrt.f32 %v39_v16  ;;  %v38_v18 = vmul.f32 0.03125, %v36_v17 }
 0x12c   :  { %v40_v19 = vadd.f32 1e-06, %v38_v18 }
 0x12e   :  { %73 = vrsqrt.f32 %v40_v19 }
 0x134   :  { %v72_v20 = vpop.eup %71 }
 0x135   :  { %v43_v22 = vmul.f32 %v72_v20, %v27_v6 }
 0x137   :  { %v52_v24 = vmul.f32 %v69_v21, %v43_v22 }
 0x138   :  { %v74_v25 = vpop.eup %73 }
 0x139   :  { %v61_v26 = vadd.f32 %v70_v23, %v52_v24  ;;  %v44_v27 = vmul.f32 %v74_v25, %v28_v10 }
 0x13b   :  { %63 = vst.msk [vmem:[%s122_s3] sm:$0xff] %vm16_vm0, %v61_v26  ;;  %v53_v28 = vmul.f32 %v69_v21, %v44_v27 }
 0x13d   :  { %v62_v29 = vadd.f32 %v70_v23, %v53_v28 }
 0x13f   :  { %64 = vst.msk [vmem:[%s122_s3 + $0x8] sm:$0x3] %vm20_vm1, %v62_v29 }

// kernel: _lambda_.29
= control target key start
LH: loop header
LB: loop body
LE: loop exit
PB: predicated region body
PF: predicated region fallthrough
CT: control target
= control target key end

     0   :  { %vm22_vm0 = vcmask 261120   ;;  %v214_v0 = vmov 0.0   ;;  %vm215_vm1 = vmmov 0   ;;  %vm24_vm2 = vcmask 254976   ;;  %s292_s1 = inlined_call_operand.vmem [shape: bf16[128,32], index: 1, kind: input, shape index: {}]   ;;  %s293_s0 = inlined_call_operand.vmem [shape: f32[10,128], index: 0, kind: input, shape index: {}]   ;;  %s294_s2 = inlined_call_operand.vmem [shape: f32[1,32], index: 2, kind: input, shape index: {}]   ;;  %s295_s3 = inlined_call_operand.vmem [shape: f32[10,32], index: 3, kind: input, shape index: {}]   ;;  %s296_s4 = inlined_call_operand.vmem [shape: f32[10,32], index: 4, kind: output, shape index: {}]  }
   0x1   :  { %184 = vmatprep.subr.bf16.mxu0 %v214_v0  ;;  %v206_v1 = vld [vmem:[%s292_s1] sm:$0xff]   ;;  %200 = vmatprep.mubr.msk.bf16.mxu0 %vm215_vm1, %v214_v0  ;;  %23 = vst.msk [vmem:[#allocation2] sm:$0xff] %vm22_vm0, %v214_v0  ;;  %v207_v2 = vld [vmem:[%s292_s1 + $0x8] sm:$0xff]   ;;  %v208_v3 = vld [vmem:[%s292_s1 + $0x10] sm:$0xff]  }
   0x2   :  { %185 = vmatpush3.bf16.msra.mxu0 %v206_v1  ;;  %v209_v4 = vld [vmem:[%s292_s1 + $0x18] sm:$0xff]   ;;  %v210_v5 = vld [vmem:[%s292_s1 + $0x20] sm:$0xff]   ;;  %v211_v6 = vld [vmem:[%s292_s1 + $0x28] sm:$0xff]   ;;  %25 = vst.msk [vmem:[#allocation2 + $0x8] sm:$0x3] %vm24_vm2, %v214_v0 }
   0x3   :  { %186 = vmatprep.subr.bf16.mxu0 %v214_v0  ;;  %v212_v7 = vld [vmem:[%s292_s1 + $0x30] sm:$0xff]   ;;  %v213_v8 = vld [vmem:[%s292_s1 + $0x38] sm:$0xff]   ;;  %v28_v9 = vld [vmem:[%s293_s0] sm:$0xff] }
   0x4   :  { %v29_v10 = vld [vmem:[%s293_s0 + $0x8] sm:$0x3]  ;;  %v174_v20 = vld [vmem:[%s294_s2] ss:$0 sm:$0xff] }
   0x5   :  { %v30_v11 = vpack.c.bf16 %v29_v10, %v28_v9  ;;  %v156_v22 = vld [vmem:[%s295_s3] sm:$0xff]  ;;  %v157_v25 = vld [vmem:[%s295_s3 + $0x8] sm:$0x3] }
   0x6   :  { %187 = vmatpush3.bf16.msra.mxu0 %v207_v2 }
   0x7   :  { %188 = vmatprep.subr.bf16.mxu0 %v214_v0 }
   0x8   :  { %v26_v12 = vld [vmem:[#allocation2] sm:$0xff] }
   0x9   :  { %v27_v14 = vld [vmem:[#allocation2 + $0x8] sm:$0x3] }
   0xa   :  { %189 = vmatpush3.bf16.msra.mxu0 %v208_v3 }
   0xb   :  { %190 = vmatprep.subr.bf16.mxu0 %v214_v0 }
   0xe   :  { %191 = vmatpush3.bf16.msra.mxu0 %v209_v4 }
   0xf   :  { %192 = vmatprep.subr.bf16.mxu0 %v214_v0 }
  0x12   :  { %193 = vmatpush3.bf16.msra.mxu0 %v210_v5 }
  0x13   :  { %194 = vmatprep.subr.bf16.mxu0 %v214_v0 }
  0x16   :  { %195 = vmatpush3.bf16.msra.mxu0 %v211_v6 }
  0x17   :  { %196 = vmatprep.subr.bf16.mxu0 %v214_v0 }
  0x1a   :  { %197 = vmatpush3.bf16.msra.mxu0 %v212_v7 }
  0x1b   :  { %198 = vmatprep.subr.bf16.mxu0 %v214_v0 }
  0x1e   :  { %199 = vmatpush3.bf16.msra.mxu0 %v213_v8 }
  0x21   :  { %201 = vmatmul.mubr.bf16.vlgmr.msra.gmra.mrb[0].mxu0 %v30_v11 }
  0xf4   :  { %v129_v13 = vpop.f32.mrb[0].mxu0 }
  0xf5   :  { %v136_v15 = vadd.f32 %v129_v13, %v26_v12  ;;  %v202_v16 = vpop.f32.mrb[1].mxu0 }
  0xf6   :  { %v132_v17 = vpop.f32.mrb[2].mxu0 }
  0xf7   :  { %139 = vst.msk [vmem:[#allocation2] sm:$0xff] %vm22_vm0, %v136_v15  ;;  %v137_v18 = vadd.f32 %v132_v17, %v27_v14  ;;  %v203_v19 = vpop.f32.mrb[3].mxu0 }
  0xf9   :  { %141 = vst.msk [vmem:[#allocation2 + $0x8] sm:$0x3] %vm24_vm2, %v137_v18 }
  0xfe   :  { %v145_v21 = vld [vmem:[#allocation2] sm:$0xff] }
  0xff   :  { %v154_v23 = vadd.f32 %v174_v20, %v145_v21 }
 0x100   :  { %v146_v24 = vld [vmem:[#allocation2 + $0x8] sm:$0x3] }
 0x101   :  { %v158_v26 = vadd.f32 %v156_v22, %v154_v23  ;;  %v155_v27 = vadd.f32 %v174_v20, %v146_v24 }
 0x103   :  { %160 = vst.msk [vmem:[%s296_s4] sm:$0xff] %vm22_vm0, %v158_v26  ;;  %v159_v28 = vadd.f32 %v157_v25, %v155_v27 }
 0x105   :  { %161 = vst.msk [vmem:[%s296_s4 + $0x8] sm:$0x3] %vm24_vm2, %v159_v28 }

// kernel: squeeze.3
= control target key start
LH: loop header
LB: loop body
LE: loop exit
PB: predicated region body
PF: predicated region fallthrough
CT: control target
= control target key end

     0   :  { %vm11_vm0 = vcmask 261120   ;;  %s42_s0 = inlined_call_operand.vmem [shape: f32[1,2,3,32], index: 0, kind: input, shape index: {}]   ;;  %s43_s1 = inlined_call_operand.vmem [shape: f32[6,32], index: 1, kind: output, shape index: {}]  }
   0x1   :  { %v18_v0 = vld [vmem:[%s42_s0 + $0x4] sm:$0xf]  ;;  %v8_v1 = vld [vmem:[%s42_s0] sm:$0xf] }
   0x2   :  { %7 = vst [vmem:[#allocation0 + $0x8] sm:$0xf] %v18_v0  ;;  %9 = vst [vmem:[#allocation0] sm:$0xf] %v8_v1 }
   0x9   :  { %v10_v2 = vld [vmem:[#allocation0] sm:$0x7]   ;;  %v14_v3 = vld [vmem:[#allocation0 + $0x8] sm:$0x7]  }
   0xa   :  { %12 = vst.msk [vmem:[%s43_s1] sm:$0x7] %vm11_vm0, %v10_v2   ;;  %19 = vst.msk [vmem:[%s43_s1 + $0x3] sm:$0x7] %vm11_vm0, %v14_v3  }

// kernel: _lambda_.32
= control target key start
LH: loop header
LB: loop body
LE: loop exit
PB: predicated region body
PF: predicated region fallthrough
CT: control target
= control target key end

     0   :  { %vm22_vm0 = vcmask 259072   ;;  %v128_v0 = vmov 0.0   ;;  %vm129_vm1 = vmmov 0   ;;  %vm43_vm2 = vcmask 261120   ;;  %s176_s1 = inlined_call_operand.vmem [shape: bf16[32,32], index: 1, kind: input, shape index: {}]   ;;  %s177_s0 = inlined_call_operand.vmem [shape: f32[6,32], index: 0, kind: input, shape index: {}]   ;;  %s178_s2 = inlined_call_operand.vmem [shape: f32[1,32], index: 2, kind: input, shape index: {}]   ;;  %s179_s3 = inlined_call_operand.vmem [shape: f32[6,32], index: 3, kind: input, shape index: {}]   ;;  %s180_s4 = inlined_call_operand.vmem [shape: f32[6,32], index: 4, kind: output, shape index: {}]  }
   0x1   :  { %23 = vst.msk [vmem:[#allocation2] sm:$0x3f] %vm22_vm0, %v128_v0  ;;  %116 = vmatprep.subr.bf16.mxu0 %v128_v0  ;;  %v126_v1 = vld [vmem:[%s176_s1] sm:$0xff]   ;;  %120 = vmatprep.mubr.msk.bf16.mxu0 %vm129_vm1, %v128_v0  ;;  %v127_v2 = vld [vmem:[%s176_s1 + $0x8] sm:$0xff]  }
   0x2   :  { %117 = vmatpush3.bf16.msra.mxu0 %v126_v1  ;;  %v25_v3 = vld [vmem:[%s177_s0] sm:$0x3f] }
   0x3   :  { %118 = vmatprep.subr.bf16.mxu0 %v128_v0  ;;  %v26_v4 = vpack.c.bf16 %v25_v3, %v25_v3  ;;  %v112_v11 = vld [vmem:[%s178_s2] ss:$0 sm:$0xff] }
   0x4   :  { %v102_v13 = vld [vmem:[%s179_s3] sm:$0x3f] }
   0x6   :  { %119 = vmatpush3.bf16.msra.mxu0 %v127_v2 }
   0x8   :  { %v24_v5 = vld [vmem:[#allocation2] sm:$0x3f] }
   0x9   :  { %121 = vmatmul.mubr.msk.bf16.vlgmr.msra.gmra.mrb[0].mxu0 %vm43_vm2, %v26_v4 }
  0xdc   :  { %v81_v6 = vpop.f32.mrb[0].mxu0 }
  0xdd   :  { %v87_v7 = vadd.f32 %v81_v6, %v24_v5  ;;  %v122_v8 = vpop.f32.mrb[1].mxu0 }
  0xde   :  { %v84_v9 = vpop.f32.mrb[2].mxu0 }
  0xdf   :  { %89 = vst.msk [vmem:[#allocation2] sm:$0x3f] %vm22_vm0, %v87_v7  ;;  %v123_v10 = vpop.f32.mrb[3].mxu0 }
  0xe6   :  { %v93_v12 = vld [vmem:[#allocation2] sm:$0x3f] }
  0xe7   :  { %v101_v14 = vadd.f32 %v112_v11, %v93_v12 }
  0xe9   :  { %v103_v15 = vadd.f32 %v102_v13, %v101_v14 }
  0xeb   :  { %104 = vst.msk [vmem:[%s180_s4] sm:$0x3f] %vm22_vm0, %v103_v15 }

// kernel: _lambda_.33
= control target key start
LH: loop header
LB: loop body
LE: loop exit
PB: predicated region body
PF: predicated region fallthrough
CT: control target
= control target key end

     0   :  { %vm22_vm0 = vcmask 259072   ;;  %v160_v8 = vmov 0.0   ;;  %vm161_vm1 = vmmov 0   ;;  %vm77_vm2 = vcmask 261120   ;;  %s213_s0 = inlined_call_operand.vmem [shape: f32[6,32], index: 0, kind: input, shape index: {}]   ;;  %s214_s3 = inlined_call_operand.vmem [shape: bf16[32,128], index: 3, kind: input, shape index: {}]   ;;  %s215_s1 = inlined_call_operand.vmem [shape: f32[1,32], index: 1, kind: input, shape index: {}]   ;;  %s216_s2 = inlined_call_operand.vmem [shape: f32[1,32], index: 2, kind: input, shape index: {}]   ;;  %s217_s4 = inlined_call_operand.vmem [shape: f32[1,128], index: 4, kind: input, shape index: {}]   ;;  %s218_s5 = inlined_call_operand.vmem [shape: f32[6,128], index: 5, kind: output, shape index: {}]  }
   0x1   :  { %v21_v0 = vld [vmem:[%s213_s0] sm:$0x3f]  ;;  %144 = vmatprep.subr.bf16.mxu0 %v160_v8  ;;  %v155_v9 = vld [vmem:[%s214_s3 + $0x8] sm:$0xff]   ;;  %148 = vmatprep.mubr.msk.bf16.mxu0 %vm161_vm1, %v160_v8 }
   0x2   :  { %v23_v1 = vsel %vm22_vm0, %v21_v0, 0.0  ;;  %v154_v7 = vld [vmem:[%s214_s3] sm:$0xff]  }
   0x3   :  { %24 = vadd.xlane.f32.xlu0 %v23_v1  ;;  %145 = vmatpush3.bf16.msra.mxu0 %v154_v7  ;;  %v135_v14 = vld [vmem:[%s215_s1] ss:$0 sm:$0xff] }
   0x4   :  { %146 = vmatprep.subr.bf16.mxu0 %v160_v8  ;;  %v136_v16 = vld [vmem:[%s216_s2] ss:$0 sm:$0xff] }
   0x5   :  { %v137_v20 = vld [vmem:[%s217_s4] ss:$0 sm:$0xff] }
   0x7   :  { %147 = vmatpush3.bf16.msra.mxu0 %v155_v9 }
  0x90   :  { %v25_v2 = vpop.xlane.xlu0 %24 }
  0x91   :  { %v27_v3 = vmul.f32 0.03125, %v25_v2 }
  0x93   :  { %v28_v4 = vsub.f32 %v21_v0, %v27_v3 }
  0x95   :  { %v29_v5 = vmul.f32 %v28_v4, %v28_v4 }
  0x97   :  { %v30_v6 = vsel %vm22_vm0, %v29_v5, 0.0 }
  0x98   :  { %31 = vadd.xlane.f32.xlu0 %v30_v6 }
 0x125   :  { %v32_v10 = vpop.xlane.xlu0 %31 }
 0x126   :  { %v33_v11 = vmul.f32 0.03125, %v32_v10 }
 0x128   :  { %v34_v12 = vadd.f32 1e-06, %v33_v11 }
 0x12a   :  { %156 = vrsqrt.f32 %v34_v12 }
 0x134   :  { %v157_v13 = vpop.eup %156 }
 0x135   :  { %v36_v15 = vmul.f32 %v157_v13, %v28_v4 }
 0x137   :  { %v44_v17 = vmul.f32 %v135_v14, %v36_v15 }
 0x139   :  { %v52_v18 = vadd.f32 %v136_v16, %v44_v17 }
 0x13b   :  { %v53_v19 = vpack.c.bf16 %v52_v18, %v52_v18 }
 0x13d   :  { %149 = vmatmul.mubr.msk.bf16.vlgmr.msra.gmra.mrb[0].mxu0 %vm77_vm2, %v53_v19 }
 0x210   :  { %v115_v21 = vpop.f32.mrb[0].mxu0 }
 0x211   :  { %v116_v22 = vadd.f32 %v137_v20, %v115_v21  ;;  %v150_v23 = vpop.f32.mrb[1].mxu0 }
 0x212   :  { %v118_v24 = vpop.f32.mrb[2].mxu0 }
 0x213   :  { %v122_v25 = vmul.f32 0.044715, %v116_v22  ;;  %v151_v26 = vpop.f32.mrb[3].mxu0  ;;  %v121_v32 = vmul.f32 0.5, %v116_v22 }
 0x215   :  { %v123_v27 = vmul.f32 %v122_v25, %v116_v22 }
 0x217   :  { %v124_v28 = vmul.f32 %v123_v27, %v116_v22 }
 0x219   :  { %v125_v29 = vadd.f32 %v124_v28, %v116_v22 }
 0x21b   :  { %v126_v30 = vmul.f32 0.7978846, %v125_v29 }
 0x21d   :  { %158 = vtanh.f32 %v126_v30 }
 0x227   :  { %v159_v31 = vpop.eup %158 }
 0x228   :  { %v128_v33 = vadd.f32 1.0, %v159_v31 }
 0x22a   :  { %v129_v34 = vmul.f32 %v128_v33, %v121_v32 }
 0x22c   :  { %130 = vst [vmem:[%s218_s5] sm:$0x3f] %v129_v34 }

// kernel: _lambda_.30
= control target key start
LH: loop header
LB: loop body
LE: loop exit
PB: predicated region body
PF: predicated region fallthrough
CT: control target
= control target key end

     0   :  { %vm22_vm0 = vcmask 259072   ;;  %v150_v8 = vmov 0.0   ;;  %vm151_vm1 = vmmov 0   ;;  %vm77_vm2 = vcmask 261120   ;;  %s203_s0 = inlined_call_operand.vmem [shape: f32[6,32], index: 0, kind: input, shape index: {}]   ;;  %s204_s3 = inlined_call_operand.vmem [shape: bf16[32,96], index: 3, kind: input, shape index: {}]   ;;  %s205_s1 = inlined_call_operand.vmem [shape: f32[1,32], index: 1, kind: input, shape index: {}]   ;;  %s206_s2 = inlined_call_operand.vmem [shape: f32[1,32], index: 2, kind: input, shape index: {}]   ;;  %s207_s4 = inlined_call_operand.vmem [shape: f32[1,96], index: 4, kind: input, shape index: {}]   ;;  %s208_s5 = inlined_call_operand.vmem [shape: f32[6,96], index: 5, kind: output, shape index: {}]  }
   0x1   :  { %v21_v0 = vld [vmem:[%s203_s0] sm:$0x3f]  ;;  %136 = vmatprep.subr.bf16.mxu0 %v150_v8  ;;  %v147_v9 = vld [vmem:[%s204_s3 + $0x8] sm:$0xff]   ;;  %140 = vmatprep.mubr.msk.bf16.mxu0 %vm151_vm1, %v150_v8  ;;  %vm121_vm3 = vcmask 783360  }
   0x2   :  { %v23_v1 = vsel %vm22_vm0, %v21_v0, 0.0  ;;  %v146_v7 = vld [vmem:[%s204_s3] sm:$0xff]  }
   0x3   :  { %24 = vadd.xlane.f32.xlu0 %v23_v1  ;;  %137 = vmatpush3.bf16.msra.mxu0 %v146_v7  ;;  %v127_v14 = vld [vmem:[%s205_s1] ss:$0 sm:$0xff] }
   0x4   :  { %138 = vmatprep.subr.bf16.mxu0 %v150_v8  ;;  %v128_v16 = vld [vmem:[%s206_s2] ss:$0 sm:$0xff] }
   0x5   :  { %v129_v20 = vld [vmem:[%s207_s4] ss:$0 sm:$0xff] }
   0x7   :  { %139 = vmatpush3.bf16.msra.mxu0 %v147_v9 }
  0x90   :  { %v25_v2 = vpop.xlane.xlu0 %24 }
  0x91   :  { %v27_v3 = vmul.f32 0.03125, %v25_v2 }
  0x93   :  { %v28_v4 = vsub.f32 %v21_v0, %v27_v3 }
  0x95   :  { %v29_v5 = vmul.f32 %v28_v4, %v28_v4 }
  0x97   :  { %v30_v6 = vsel %vm22_vm0, %v29_v5, 0.0 }
  0x98   :  { %31 = vadd.xlane.f32.xlu0 %v30_v6 }
 0x125   :  { %v32_v10 = vpop.xlane.xlu0 %31 }
 0x126   :  { %v33_v11 = vmul.f32 0.03125, %v32_v10 }
 0x128   :  { %v34_v12 = vadd.f32 1e-06, %v33_v11 }
 0x12a   :  { %148 = vrsqrt.f32 %v34_v12 }
 0x134   :  { %v149_v13 = vpop.eup %148 }
 0x135   :  { %v36_v15 = vmul.f32 %v149_v13, %v28_v4 }
 0x137   :  { %v44_v17 = vmul.f32 %v127_v14, %v36_v15 }
 0x139   :  { %v52_v18 = vadd.f32 %v128_v16, %v44_v17 }
 0x13b   :  { %v53_v19 = vpack.c.bf16 %v52_v18, %v52_v18 }
 0x13d   :  { %141 = vmatmul.mubr.msk.bf16.vlgmr.msra.gmra.mrb[0].mxu0 %vm77_vm2, %v53_v19 }
 0x210   :  { %v115_v21 = vpop.f32.mrb[0].mxu0 }
 0x211   :  { %v116_v22 = vadd.f32 %v129_v20, %v115_v21  ;;  %v142_v23 = vpop.f32.mrb[1].mxu0 }
 0x212   :  { %v118_v24 = vpop.f32.mrb[2].mxu0 }
 0x213   :  { %122 = vst.msk [vmem:[%s208_s5] sm:$0x3f] %vm121_vm3, %v116_v22  ;;  %v143_v25 = vpop.f32.mrb[3].mxu0 }

// kernel: _lambda_.31
= control target key start
LH: loop header
LB: loop body
LE: loop exit
PB: predicated region body
PF: predicated region fallthrough
CT: control target
= control target key end

     0   :  { %s858_s9 = smov 0   ;;  %s948_s0 = inlined_call_operand.vmem [shape: f32[2,3,96], index: 0, kind: input, shape index: {}]   ;;  %s949_s1 = inlined_call_operand.vmem [shape: f32[2,5,96], index: 1, kind: input, shape index: {}]   ;;  %s950_s2 = inlined_call_operand.vmem [shape: f32[2,3,32], index: 2, kind: output, shape index: {}]  }
   0x1 LB: > { %s697_s10 = sadd.s32 4294967295, %s825_s9   ;;  %p701_p0 = scmp.ge.s32.totalorder %s825_s9, 1  ;;  %s825_s9 = sphi %s858_s9, %s12_s9  }
   0x2   : > { %p120_p1 = scmp.lt.s32.totalorder %s825_s9, 3 }
   0x4   : > { %p121_p2 = pnand %p701_p0, %p120_p1 }
   0x5   : > { %p144_p3 = scmp.lt.s32.totalorder (!%p121_p2), %s697_s10, 1  ;;  %v827_v0 = vmov (!%p121_p2), 0.0   ;;  %vm828_vm0 = vmmov (!%p121_p2), 0   ;;  %vm163_vm1 = vcmask (!%p121_p2), 1042432   ;;  %s829_s19 = smov (!%p121_p2), 96   ;;  %vm169_vm2 = vcmask (!%p121_p2), 64512  }
   0x6   : > { %124 = sbr.rel (%p121_p2) target bundleno = 1604 (0x644), region = 28  ;;  %731 = vmatprep.subr.bf16.mxu0 (!%p121_p2), %v827_v0  ;;  %733 = vmatprep.mubr.msk.bf16.mxu0 (!%p121_p2), %vm828_vm0, %v827_v0  ;;  %s830_s20 = smov (!%p121_p2), 64   ;;  %vm217_vm3 = vcmask (!%p121_p2), 59392   ;;  %vm235_vm4 = vcmask (!%p121_p2), 1043456   ;;  %vm626_vm5 = vcmask (!%p121_p2), 130048   ;;  %vm628_vm6 = vcmask (!%p121_p2), 195584  }
   0x7   : > { %737 = vmatprep.subr.bf16.mxu1 (!%p121_p2), %v827_v0  ;;  %739 = vmatprep.mubr.msk.bf16.mxu1 (!%p121_p2), %vm828_vm0, %v827_v0  ;;  %s831_s21 = smov (!%p121_p2), 88   ;;  %s832_s22 = smov (!%p121_p2), 72   ;;  %vm630_vm7 = vcmask (!%p121_p2), 256000  }
   0x8   : > { %s833_s23 = smov (!%p121_p2), 120   ;;  %s834_s24 = smov (!%p121_p2), 80  }
   0x9   : > { %s835_s25 = smov (!%p121_p2), 112   ;;  %s836_s26 = smov (!%p121_p2), 104  }
   0xa   : > { %s837_s27 = smov (!%p121_p2), 56   ;;  %s838_s28 = smov (!%p121_p2), 48  }
   0xb   : > { %s839_s29 = smov (!%p121_p2), 40   ;;  %s840_s30 = smov (!%p121_p2), 8  }
   0xc   : > { %s841_s3 = smov (!%p121_p2), 16   ;;  %s842_s4 = smov (!%p121_p2), 24  }
   0xd   : > { %s952_s10 = smov (!%p144_p3, %s697_s10), 1 }
   0xe   : > { %s702_s11 = sshll.u32 %s952_s10, 2  ;;  %s703_s12 = sshll.u32 %s952_s10, 3 }
   0xf   : > { %s147_s15 = scalar_lea.vmem %s948_s0, %s702_s11  ;;  %s151_s18 = scalar_lea.vmem %s949_s1, %s703_s12 }
  0x10   : > { %v157_v1 = vld [vmem:[%s147_s15] sm:$0x7]  ;;  %s155_s7 = scalar_lea.vmem %s950_s2, %s702_s11 }
  0x11   : > { %v158_v2 = vld [vmem:[%s151_s18] sm:$0x1f]  ;;  %v159_v8 = vpack.c.bf16 %v157_v1, %v157_v1 }
  0x12   : > { %v161_v3 = vrot.slane %v158_v2, 5 }
  0x14   : > { %v164_v4 = vsel %vm163_vm1, %v157_v1, %v161_v3 }
  0x15   : > { %v884_v5 = vpack.c.bf16 %v164_v4, %v164_v4 }
  0x17   : > { %167 = vrot.lane.b32.xlu0 %v884_v5, %s829_s19  ;;  %230 = vrot.lane.b32.xlu1 %v884_v5, %s830_s20 }
  0x1b   : > { %282 = vrot.lane.b32.xlu1 %v884_v5, %s831_s21 }
  0x89   : > { %v168_v6 = vpop.permute.xlu0 %167  ;;  %v231_v15 = vpop.permute.xlu1 %230 }
  0x8a   : > { %v174_v7 = vsel %vm169_vm2, %v168_v6, 0  ;;  %v237_v16 = vsel %vm235_vm4, %v231_v15, 0 }
  0x8b   : > { %732 = vmatpush3.bf16.xpose.msra.mxu0 %v174_v7  ;;  %738 = vmatpush3.bf16.msra.mxu1 %v237_v16 }
  0x8c   : > { %749 = vmatprep.subr.bf16.mxu0 %v827_v0  ;;  %743 = vmatprep.subr.bf16.mxu1 %v827_v0 }
  0x8d   : > { %v283_v22 = vpop.permute.xlu1 %282 }
  0x8e   : > { %v288_v28 = vsel %vm169_vm2, %v283_v22, 0 }
  0x92   : > { %734 = vmatmul.mubr.msk.bf16.vlgmr.msra.gmra.mrb[0].mxu0 %vm169_vm2, %v159_v8 }
  0x93   : > { %751 = vmatprep.mubr.msk.bf16.mxu0 %vm828_vm0, %v827_v0 }
 0x165   : > { %v210_v9 = vpop.f32.mrb[0].mxu0 }
 0x166   : > { %v216_v10 = vmul.f32 0.35355338, %v210_v9  ;;  %v735_v11 = vpop.f32.mrb[1].mxu0 }
 0x167   : > { %v213_v12 = vpop.f32.mrb[2].mxu0 }
 0x168   : > { %v736_v13 = vpop.f32.mrb[3].mxu0  ;;  %v218_v14 = vsel %vm217_vm3, %v216_v10, -inf }
 0x169   : > { %219 = vmax.xlane.f32.xlu0 %v218_v14 }
 0x17f   : > { %504 = vrot.lane.b32.xlu0 %v884_v5, %s832_s22 }
 0x1f6   : > { %v220_v17 = vpop.xlane.xlu0 %219 }
 0x1f7   : > { %v221_v18 = vsub.f32 %v216_v10, %v220_v17 }
 0x1f9   : > { %v222_v19 = vmul.f32 1.442695, %v221_v18 }
 0x1fa   : > { %v505_v31 = vpop.permute.xlu0 %504 }
 0x1fb   : > { %803 = vpow2.f32 %v222_v19  ;;  %v510_v33 = vsel %vm169_vm2, %v505_v31, 0 }
 0x205   : > { %v804_v20 = vpop.eup %803 }
 0x206   : > { %v224_v21 = vsel %vm217_vm3, %v804_v20, 0.0 }
 0x207   : > { %225 = vadd.xlane.f32.xlu1 %v224_v21 }
 0x218   : > { %280 = vrot.lane.b32.xlu1 %v159_v8, %s833_s23 }
 0x21c   : > { %393 = vrot.lane.b32.xlu1 %v884_v5, %s834_s24 }
 0x220   : > { %391 = vrot.lane.b32.xlu1 %v159_v8, %s835_s25 }
 0x224   : > { %502 = vrot.lane.b32.xlu1 %v159_v8, %s836_s26 }
 0x294   : > { %v226_v23 = vpop.xlane.xlu1 %225 }
 0x295   : > { %805 = vrcp.f32 %v226_v23 }
 0x298   : > { %v281_v26 = vpop.permute.xlu1 %280 }
 0x29c   : > { %v394_v29 = vpop.permute.xlu1 %393 }
 0x29d   : > { %v399_v30 = vsel %vm169_vm2, %v394_v29, 0 }
 0x29f   : > { %v806_v24 = vpop.eup %805 }
 0x2a0   : > { %v228_v25 = vmul.f32 %v806_v24, %v804_v20  ;;  %v392_v32 = vpop.permute.xlu1 %391 }
 0x2a2   : > { %v229_v27 = vpack.c.bf16 %v228_v25, %v228_v25 }
 0x2a4   : > { %740 = vmatmul.mubr.msk.bf16.vlgmr.msra.gmra.mrb[0].mxu1 %vm169_vm2, %v229_v27  ;;  %v503_v34 = vpop.permute.xlu1 %502 }
 0x2a5   : > { %744 = vmatpush3.bf16.xpose.msra.mxu1 %v288_v28  ;;  %745 = vmatprep.mubr.msk.bf16.mxu1 %vm828_vm0, %v827_v0 }
 0x2a6   : > { %755 = vmatprep.subr.bf16.mxu1 %v827_v0 }
 0x2ac   : > { %746 = vmatmul.mubr.msk.bf16.vlgmr.msra.gmra.mrb[4].mxu1 %vm169_vm2, %v281_v26 }
 0x2ad   : > { %756 = vmatpush3.bf16.xpose.msra.mxu1 %v399_v30  ;;  %757 = vmatprep.mubr.msk.bf16.mxu1 %vm828_vm0, %v827_v0 }
 0x2ae   : > { %767 = vmatprep.subr.bf16.mxu1 %v827_v0 }
 0x2b4   : > { %758 = vmatmul.mubr.msk.bf16.vlgmr.msra.gmra.mrb[8].mxu1 %vm169_vm2, %v392_v32 }
 0x2b5   : > { %768 = vmatpush3.bf16.xpose.msra.mxu1 %v510_v33  ;;  %769 = vmatprep.mubr.msk.bf16.mxu1 %vm828_vm0, %v827_v0 }
 0x2bc   : > { %770 = vmatmul.mubr.msk.bf16.vlgmr.msra.gmra.mrb[12].mxu1 %vm169_vm2, %v503_v34 }
 0x377   : > { %v915_v35 = vpop.f32.mrb[0].mxu1 }
 0x378   : > { %v741_v36 = vpop.f32.mrb[1].mxu1 }
 0x379   : > { %v276_v37 = vpop.f32.mrb[2].mxu1 }
 0x37a   : > { %v742_v38 = vpop.f32.mrb[3].mxu1 }
 0x37f   : > { %v324_v39 = vpop.f32.mrb[4].mxu1 }
 0x380   : > { %v330_v40 = vmul.f32 0.35355338, %v324_v39  ;;  %v747_v41 = vpop.f32.mrb[5].mxu1 }
 0x381   : > { %v327_v42 = vpop.f32.mrb[6].mxu1 }
 0x382   : > { %v748_v43 = vpop.f32.mrb[7].mxu1  ;;  %v331_v44 = vsel %vm217_vm3, %v330_v40, -inf }
 0x383   : > { %332 = vmax.xlane.f32.xlu1 %v331_v44 }
 0x387   : > { %v435_v45 = vpop.f32.mrb[8].mxu1 }
 0x388   : > { %v441_v46 = vmul.f32 0.35355338, %v435_v45  ;;  %v759_v47 = vpop.f32.mrb[9].mxu1 }
 0x389   : > { %v438_v48 = vpop.f32.mrb[10].mxu1 }
 0x38a   : > { %v442_v49 = vsel %vm217_vm3, %v441_v46, -inf  ;;  %v760_v50 = vpop.f32.mrb[11].mxu1 }
 0x38b   : > { %443 = vmax.xlane.f32.xlu0 %v442_v49 }
 0x38f   : > { %v546_v51 = vpop.f32.mrb[12].mxu1 }
 0x390   : > { %v552_v52 = vmul.f32 0.35355338, %v546_v51  ;;  %v771_v53 = vpop.f32.mrb[13].mxu1 }
 0x391   : > { %v549_v54 = vpop.f32.mrb[14].mxu1 }
 0x392   : > { %v553_v55 = vsel %vm217_vm3, %v552_v52, -inf  ;;  %v772_v56 = vpop.f32.mrb[15].mxu1 }
 0x393   : > { %554 = vmax.xlane.f32.xlu1 %v553_v55 }
 0x410   : > { %v333_v57 = vpop.xlane.xlu1 %332 }
 0x411   : > { %v334_v58 = vsub.f32 %v330_v40, %v333_v57 }
 0x413   : > { %v335_v59 = vmul.f32 1.442695, %v334_v58 }
 0x415   : > { %807 = vpow2.f32 %v335_v59 }
 0x418   : > { %v444_v4 = vpop.xlane.xlu0 %443 }
 0x419   : > { %v445_v6 = vsub.f32 %v441_v46, %v444_v4 }
 0x41b   : > { %v446_v7 = vmul.f32 1.442695, %v445_v6 }
 0x41f   : > { %v808_v60 = vpop.eup %807 }
 0x420   : > { %v555_v61 = vpop.xlane.xlu1 %554  ;;  %v337_v62 = vsel %vm217_vm3, %v808_v60, 0.0 }
 0x421   : > { %v556_v63 = vsub.f32 %v552_v52, %v555_v61  ;;  %338 = vadd.xlane.f32.xlu1 %v337_v62 }
 0x423   : > { %v557_v1 = vmul.f32 1.442695, %v556_v63 }
 0x425   : > { %809 = vpow2.f32 %v557_v1 }
 0x426   : > { %811 = vpow2.f32 %v446_v7 }
 0x42f   : > { %v810_v2 = vpop.eup %809 }
 0x430   : > { %v559_v3 = vsel %vm217_vm3, %v810_v2, 0.0  ;;  %v812_v8 = vpop.eup %811 }
 0x431   : > { %560 = vadd.xlane.f32.xlu0 %v559_v3  ;;  %v448_v9 = vsel %vm217_vm3, %v812_v8, 0.0 }
 0x432   : > { %343 = vrot.lane.b32.xlu1 %v884_v5, %s837_s27 }
 0x447   : > { %454 = vrot.lane.b32.xlu0 %v884_v5, %s838_s28 }
 0x456   : > { %449 = vadd.xlane.f32.xlu1 %v448_v9 }
 0x467   : > { %565 = vrot.lane.b32.xlu1 %v884_v5, %s839_s29 }
 0x4ae   : > { %v339_v10 = vpop.xlane.xlu1 %338 }
 0x4af   : > { %813 = vrcp.f32 %v339_v10 }
 0x4b2   : > { %v344_v11 = vpop.permute.xlu1 %343 }
 0x4b3   : > { %v349_v12 = vsel %vm235_vm4, %v344_v11, 0 }
 0x4b4   : > { %750 = vmatpush3.bf16.msra.mxu0 %v349_v12 }
 0x4b5   : > { %761 = vmatprep.subr.bf16.mxu0 %v827_v0 }
 0x4b9   : > { %v814_v13 = vpop.eup %813 }
 0x4ba   : > { %v341_v14 = vmul.f32 %v814_v13, %v808_v60 }
 0x4bc   : > { %v342_v15 = vpack.c.bf16 %v341_v14, %v341_v14 }
 0x4be   : > { %752 = vmatmul.mubr.msk.bf16.vlgmr.msra.gmra.mrb[4].mxu0 %vm169_vm2, %v342_v15  ;;  %v561_v16 = vpop.xlane.xlu0 %560 }
 0x4bf   : > { %763 = vmatprep.mubr.msk.bf16.mxu0 %vm828_vm0, %v827_v0 }
 0x4c2   : > { %v455_v17 = vpop.permute.xlu0 %454 }
 0x4c3   : > { %v460_v5 = vsel %vm235_vm4, %v455_v17, 0 }
 0x4c4   : > { %762 = vmatpush3.bf16.msra.mxu0 %v460_v5 }
 0x4c5   : > { %773 = vmatprep.subr.bf16.mxu0 %v827_v0 }
 0x4e3   : > { %v450_v18 = vpop.xlane.xlu1 %449 }
 0x4e4   : > { %815 = vrcp.f32 %v450_v18 }
 0x4e5   : > { %817 = vrcp.f32 %v561_v16 }
 0x4e7   : > { %v566_v20 = vpop.permute.xlu1 %565 }
 0x4e8   : > { %v571_v22 = vsel %vm235_vm4, %v566_v20, 0 }
 0x4ee   : > { %v816_v19 = vpop.eup %815 }
 0x4ef   : > { %v452_v21 = vmul.f32 %v816_v19, %v812_v8  ;;  %v818_v24 = vpop.eup %817 }
 0x4f0   : > { %v563_v25 = vmul.f32 %v818_v24, %v810_v2 }
 0x4f1   : > { %v453_v23 = vpack.c.bf16 %v452_v21, %v452_v21 }
 0x4f2   : > { %v564_v26 = vpack.c.bf16 %v563_v25, %v563_v25 }
 0x4f3   : > { %764 = vmatmul.mubr.msk.bf16.vlgmr.msra.gmra.mrb[8].mxu0 %vm169_vm2, %v453_v23 }
 0x4f4   : > { %774 = vmatpush3.bf16.msra.mxu0 %v571_v22  ;;  %775 = vmatprep.mubr.msk.bf16.mxu0 %vm828_vm0, %v827_v0 }
 0x4fb   : > { %776 = vmatmul.mubr.msk.bf16.vlgmr.msra.gmra.mrb[12].mxu0 %vm169_vm2, %v564_v26 }
 0x591   : > { %v385_v27 = vpop.f32.mrb[4].mxu0 }
 0x592   : > { %614 = vrot.lane.b32.xlu1 %v385_v27, %s840_s30  ;;  %v753_v28 = vpop.f32.mrb[5].mxu0 }
 0x593   : > { %v388_v29 = vpop.f32.mrb[6].mxu0 }
 0x594   : > { %v754_v30 = vpop.f32.mrb[7].mxu0 }
 0x5c6   : > { %v496_v31 = vpop.f32.mrb[8].mxu0 }
 0x5c7   : > { %618 = vrot.lane.b32.xlu0 %v496_v31, %s841_s3  ;;  %v765_v32 = vpop.f32.mrb[9].mxu0 }
 0x5c8   : > { %v499_v33 = vpop.f32.mrb[10].mxu0 }
 0x5c9   : > { %v766_v34 = vpop.f32.mrb[11].mxu0 }
 0x5ce   : > { %v607_v36 = vpop.f32.mrb[12].mxu0 }
 0x5cf   : > { %622 = vrot.lane.b32.xlu1 %v607_v36, %s842_s4  ;;  %v777_v0 = vpop.f32.mrb[13].mxu0 }
 0x5d0   : > { %v610_v37 = vpop.f32.mrb[14].mxu0 }
 0x5d1   : > { %v778_v38 = vpop.f32.mrb[15].mxu0 }
 0x604   : > { %v615_v39 = vpop.permute.xlu1 %614 }
 0x605   : > { %v625_v41 = vsel %vm169_vm2, %v915_v35, %v615_v39 }
 0x639   : > { %v619_v40 = vpop.permute.xlu0 %618 }
 0x63a   : > { %v627_v42 = vsel %vm626_vm5, %v625_v41, %v619_v40 }
 0x641   : > { %v623_v43 = vpop.permute.xlu1 %622 }
 0x642   : > { %v629_v44 = vsel %vm628_vm6, %v627_v42, %v623_v43 }
 0x643   : > { %631 = vst.msk [vmem:[%s155_s7] sm:$0x7] %vm630_vm7, %v629_v44 }
 0x644 PF: > { %s12_s9 = sadd.s32 1, %s825_s9  }
 0x645   : > { %p9_p4 = scmp.ge.s32.totalorder %s12_s9, 4  }
 0x647   :  { %11 = sbr.rel (!%p9_p4) target bundleno = 1 (0x1), region = 61 }

// kernel: _lambda_.34
= control target key start
LH: loop header
LB: loop body
LE: loop exit
PB: predicated region body
PF: predicated region fallthrough
CT: control target
= control target key end

     0   :  { %vm22_vm0 = vcmask 259072   ;;  %v201_v0 = vmov 0.0   ;;  %vm202_vm1 = vmmov 0   ;;  %s267_s1 = inlined_call_operand.vmem [shape: bf16[128,32], index: 1, kind: input, shape index: {}]   ;;  %s268_s0 = inlined_call_operand.vmem [shape: f32[6,128], index: 0, kind: input, shape index: {}]   ;;  %s269_s2 = inlined_call_operand.vmem [shape: f32[1,32], index: 2, kind: input, shape index: {}]   ;;  %s270_s3 = inlined_call_operand.vmem [shape: f32[6,32], index: 3, kind: input, shape index: {}]   ;;  %s271_s4 = inlined_call_operand.vmem [shape: f32[6,32], index: 4, kind: output, shape index: {}]  }
   0x1   :  { %171 = vmatprep.subr.bf16.mxu0 %v201_v0  ;;  %v193_v1 = vld [vmem:[%s267_s1] sm:$0xff]   ;;  %187 = vmatprep.mubr.msk.bf16.mxu0 %vm202_vm1, %v201_v0  ;;  %23 = vst.msk [vmem:[#allocation2] sm:$0x3f] %vm22_vm0, %v201_v0  ;;  %v194_v2 = vld [vmem:[%s267_s1 + $0x8] sm:$0xff]   ;;  %v195_v3 = vld [vmem:[%s267_s1 + $0x10] sm:$0xff]  }
   0x2   :  { %172 = vmatpush3.bf16.msra.mxu0 %v193_v1  ;;  %v196_v4 = vld [vmem:[%s267_s1 + $0x18] sm:$0xff]   ;;  %v197_v5 = vld [vmem:[%s267_s1 + $0x20] sm:$0xff]   ;;  %v198_v6 = vld [vmem:[%s267_s1 + $0x28] sm:$0xff]  }
   0x3   :  { %173 = vmatprep.subr.bf16.mxu0 %v201_v0  ;;  %v199_v7 = vld [vmem:[%s267_s1 + $0x30] sm:$0xff]   ;;  %v200_v8 = vld [vmem:[%s267_s1 + $0x38] sm:$0xff]   ;;  %v25_v9 = vld [vmem:[%s268_s0] sm:$0x3f] }
   0x4   :  { %v26_v10 = vpack.c.bf16 %v25_v9, %v25_v9  ;;  %v161_v17 = vld [vmem:[%s269_s2] ss:$0 sm:$0xff] }
   0x5   :  { %v146_v19 = vld [vmem:[%s270_s3] sm:$0x3f] }
   0x6   :  { %174 = vmatpush3.bf16.msra.mxu0 %v194_v2 }
   0x7   :  { %175 = vmatprep.subr.bf16.mxu0 %v201_v0 }
   0x8   :  { %v24_v11 = vld [vmem:[#allocation2] sm:$0x3f] }
   0xa   :  { %176 = vmatpush3.bf16.msra.mxu0 %v195_v3 }
   0xb   :  { %177 = vmatprep.subr.bf16.mxu0 %v201_v0 }
   0xe   :  { %178 = vmatpush3.bf16.msra.mxu0 %v196_v4 }
   0xf   :  { %179 = vmatprep.subr.bf16.mxu0 %v201_v0 }
  0x12   :  { %180 = vmatpush3.bf16.msra.mxu0 %v197_v5 }
  0x13   :  { %181 = vmatprep.subr.bf16.mxu0 %v201_v0 }
  0x16   :  { %182 = vmatpush3.bf16.msra.mxu0 %v198_v6 }
  0x17   :  { %183 = vmatprep.subr.bf16.mxu0 %v201_v0 }
  0x1a   :  { %184 = vmatpush3.bf16.msra.mxu0 %v199_v7 }
  0x1b   :  { %185 = vmatprep.subr.bf16.mxu0 %v201_v0 }
  0x1e   :  { %186 = vmatpush3.bf16.msra.mxu0 %v200_v8 }
  0x21   :  { %188 = vmatmul.mubr.bf16.vlgmr.msra.gmra.mrb[0].mxu0 %v26_v10 }
  0xf4   :  { %v125_v12 = vpop.f32.mrb[0].mxu0 }
  0xf5   :  { %v131_v13 = vadd.f32 %v125_v12, %v24_v11  ;;  %v189_v14 = vpop.f32.mrb[1].mxu0 }
  0xf6   :  { %v128_v15 = vpop.f32.mrb[2].mxu0 }
  0xf7   :  { %133 = vst.msk [vmem:[#allocation2] sm:$0x3f] %vm22_vm0, %v131_v13  ;;  %v190_v16 = vpop.f32.mrb[3].mxu0 }
  0xfe   :  { %v137_v18 = vld [vmem:[#allocation2] sm:$0x3f] }
  0xff   :  { %v145_v20 = vadd.f32 %v161_v17, %v137_v18 }
 0x101   :  { %v147_v21 = vadd.f32 %v146_v19, %v145_v20 }
 0x103   :  { %148 = vst.msk [vmem:[%s271_s4] sm:$0x3f] %vm22_vm0, %v147_v21 }

// kernel: _lambda_.46
= control target key start
LH: loop header
LB: loop body
LE: loop exit
PB: predicated region body
PF: predicated region fallthrough
CT: control target
= control target key end

     0   :  { %vm15_vm0 = vcmask 259072   ;;  %s90_s0 = inlined_call_operand.vmem [shape: f32[6,32], index: 0, kind: input, shape index: {}]   ;;  %s91_s1 = inlined_call_operand.vmem [shape: f32[1,32], index: 1, kind: input, shape index: {}]   ;;  %s92_s2 = inlined_call_operand.vmem [shape: f32[1,32], index: 2, kind: input, shape index: {}]   ;;  %s93_s3 = inlined_call_operand.vmem [shape: f32[6,32], index: 3, kind: output, shape index: {}]  }
   0x1   :  { %v14_v0 = vld [vmem:[%s90_s0] sm:$0x3f] }
   0x2   :  { %v16_v1 = vsel %vm15_vm0, %v14_v0, 0.0  ;;  %v51_v11 = vld [vmem:[%s91_s1] ss:$0 sm:$0xff] }
   0x3   :  { %17 = vadd.xlane.f32.xlu0 %v16_v1  ;;  %v52_v13 = vld [vmem:[%s92_s2] ss:$0 sm:$0xff] }
  0x90   :  { %v18_v2 = vpop.xlane.xlu0 %17 }
  0x91   :  { %v20_v3 = vmul.f32 0.03125, %v18_v2 }
  0x93   :  { %v21_v4 = vsub.f32 %v14_v0, %v20_v3 }
  0x95   :  { %v22_v5 = vmul.f32 %v21_v4, %v21_v4 }
  0x97   :  { %v23_v6 = vsel %vm15_vm0, %v22_v5, 0.0 }
  0x98   :  { %24 = vadd.xlane.f32.xlu0 %v23_v6 }
 0x125   :  { %v25_v7 = vpop.xlane.xlu0 %24 }
 0x126   :  { %v26_v8 = vmul.f32 0.03125, %v25_v7 }
 0x128   :  { %v27_v9 = vadd.f32 1e-06, %v26_v8 }
 0x12a   :  { %53 = vrsqrt.f32 %v27_v9 }
 0x134   :  { %v54_v10 = vpop.eup %53 }
 0x135   :  { %v29_v12 = vmul.f32 %v54_v10, %v21_v4 }
 0x137   :  { %v37_v14 = vmul.f32 %v51_v11, %v29_v12 }
 0x139   :  { %v45_v15 = vadd.f32 %v52_v13, %v37_v14 }
 0x13b   :  { %46 = vst.msk [vmem:[%s93_s3] sm:$0x3f] %vm15_vm0, %v45_v15 }

// kernel: _lambda_.47
= control target key start
LH: loop header
LB: loop body
LE: loop exit
PB: predicated region body
PF: predicated region fallthrough
CT: control target
= control target key end

     0   :  { %v157_v1 = vmov 0.0   ;;  %vm158_vm0 = vmmov 0   ;;  %s204_s0 = inlined_call_operand.vmem [shape: f32[2,32], index: 0, kind: input, shape index: {}]   ;;  %s205_s1 = inlined_call_operand.vmem [shape: bf16[32,128], index: 1, kind: input, shape index: {}]   ;;  %s206_s2 = inlined_call_operand.vmem [shape: f32[1,128], index: 2, kind: input, shape index: {}]   ;;  %s207_s3 = inlined_call_operand.hbm [shape: f32[2,128], index: 3, kind: output, shape index: {}]  }
   0x1   :  { %v131_v0 = vld [vmem:[%s205_s1] sm:$0xff]   ;;  %120 = vmatprep.subr.bf16.mxu0 %v157_v1  ;;  %20 = vst [vmem:[#allocation2] sm:$0x3] %v157_v1  ;;  %v132_v2 = vld [vmem:[%s205_s1 + $0x8] sm:$0xff]   ;;  %124 = vmatprep.mubr.msk.bf16.mxu0 %vm158_vm0, %v157_v1 }
   0x2   :  { %121 = vmatpush3.bf16.msra.mxu0 %v131_v0  ;;  %v22_v3 = vld [vmem:[%s204_s0] sm:$0x3] }
   0x3   :  { %8 = vsyncpa [#allocation4], 0  ;;  %122 = vmatprep.subr.bf16.mxu0 %v157_v1  ;;  %v23_v4 = vpack.c.bf16 %v22_v3, %v22_v3  ;;  %vm40_vm1 = vcmask 261120   ;;  %v116_v11 = vld [vmem:[%s206_s2] ss:$0 sm:$0xff]  ;;  %s159_s19 = smov [#allocation3]  }
   0x4   :  { %s105_s20 = sshll.u32 %s159_s19, 4  ;;  %s106_s20 = int_to_ptr.vmem [resolvable:$true] %s105_s20 }
   0x5   :  { %s133_s0 = scalar_lea.vmem %s106_s20, 32  ;;  %p138_p1 = scmp.lt.s32.totalorder %s106_s20, %s106_s20 }
   0x6   :  { %123 = vmatpush3.bf16.msra.mxu0 %v132_v2  ;;  %p134_p0 = scmp.ne.s32.totalorder %s106_s20, %s133_s0  ;;  %p139_p2 = scmp.lt.s32.totalorder %s133_s0, %s133_s0 }
   0x8   :  { %v21_v5 = vld [vmem:[#allocation2] sm:$0x3]  ;;  %p140_p3 = por %p139_p2, %p138_p1 }
   0x9   :  { %125 = vmatmul.mubr.msk.bf16.vlgmr.msra.gmra.mrb[0].mxu0 %vm40_vm1, %v23_v4 }
   0xa   :  { %p141_p4 = pnand %p140_p3, %p134_p0 }
  0xdc   :  { %v78_v6 = vpop.f32.mrb[0].mxu0 }
  0xdd   :  { %v84_v7 = vadd.f32 %v78_v6, %v21_v5  ;;  %v126_v8 = vpop.f32.mrb[1].mxu0 }
  0xde   :  { %v81_v9 = vpop.f32.mrb[2].mxu0 }
  0xdf   :  { %85 = vst [vmem:[#allocation2] sm:$0x3] %v84_v7  ;;  %v127_v10 = vpop.f32.mrb[3].mxu0 }
  0xe6   :  { %v89_v12 = vld [vmem:[#allocation2] sm:$0x3] }
  0xe7   :  { %v97_v13 = vadd.f32 %v116_v11, %v89_v12 }
  0xe9   :  { %98 = vst [vmem:[#allocation3] sm:$0x3] %v97_v13 }
  0xea   :  { %144 = shalt.err (!%p141_p4)
}
  0xeb   :  { %s145_s23 = scalar_lea.hbm %s207_s3, 32 }
  0xec   :  { %p146_p5 = scmp.ne.s32.totalorder %s207_s3, %s145_s23  ;;  %p149_p6 = scmp.lt.u32.totalorder %s145_s23, %s207_s3 }
  0xee   :  { %p151_p7 = pnand %p149_p6, %p146_p5 }
  0xf0   :  { %154 = shalt.err (!%p151_p7)
}
  0xf1   :  { %108 = dma.vmem_to_hbm [thread:$0]  %s106_s20, 32, %s207_s3, [#allocation4]  }
  0xf2   :  { %155 = dma.done.wait [#allocation4], 32  }
  0xf3   :  { %156 = vsyncadd [#allocation4], 4294967264 }
  0xf4   :  { %112 = vsyncpa [#allocation4], 1 }

</bundles_post_ra>
